<compile_context>
chip_gen: v7x
topology: tpu7x:2x2x1
jax: 0.10.0
libtpu: 0.0.40
codegen_flags: <defaults>
</compile_context>

<pallas_src>
from functools import partial

import numpy as np
import jax
import jax.numpy as jnp
from jax import lax
from jax.experimental import pallas as pl
from jax.experimental.pallas import tpu as pltpu


# ---------------------------------------------------------------------------
# Fused forward kernel: B images per grid step, everything 2-D & lane-dense.
# ---------------------------------------------------------------------------
def _net_kernel(x_ref,        # (1, 4, 8*B, 96)  rows grouped by (row mod 4), row = t*B + b
                t1_ref,       # (5, 96, 168)     conv1 banded matrices, one per kh
                s1e_ref,      # (168, 84)        pool1 even-column selector
                s1o_ref,      # (168, 84)        pool1 odd-column selector
                b1_ref,       # (1, 84)          conv1 bias tiled over pooled columns
                t2_ref,       # (5, 84, 160)     conv2 banded matrices
                s2e_ref,      # (160, 80)
                s2o_ref,      # (160, 80)
                b2_ref,       # (1, 80)
                wf1_ref,      # (5, 80, 120)     fc1 weights, (h, w*16+c, out)
                bf1_ref,      # (1, 120)
                wf2_ref,      # (120, 84)
                bf2_ref,      # (1, 84)
                wf3_ref,      # (84, 10)
                bf3_ref,      # (1, 10)
                o_ref,        # (1, B, 10)
                *, bb):
    f32 = jnp.float32

    def colpool_relu(z, se_ref, so_ref, b_ref):
        # Column half of the 2x2 max-pool: two 0/1-selection matmuls + max,
        # then (hoisted) bias add and ReLU.
        pe = jnp.dot(z, se_ref[...], preferred_element_type=f32)
        po = jnp.dot(z, so_ref[...], preferred_element_type=f32)
        return jnp.maximum(jnp.maximum(pe, po) + b_ref[...], 0.0)

    # ---- conv1 (5x5, 3->6, VALID) as banded matmuls -------------------------
    # x_ref[0, k] holds input rows r with r % 4 == k, ordered row = t*B + b.
    # Conv row 4t+j needs input rows 4t+j .. 4t+j+4, so grouping conv rows by
    # j makes every kh-term a static contiguous slice of one mod-4 row group.
    def conv1_group(j):                                   # conv rows {4t+j : t=0..6}
        acc = None
        for kh in range(5):
            s = j + kh
            xs = x_ref[0, s % 4, (s // 4) * bb:(s // 4 + 7) * bb, :]        # (7B, 96)
            term = jnp.dot(xs, t1_ref[kh], preferred_element_type=f32)      # (7B, 168)
            acc = term if acc is None else acc + term
        return acc

    # Row half of pool1: pooled row 2u = max(conv rows 4u, 4u+1),
    #                    pooled row 2u+1 = max(conv rows 4u+2, 4u+3).
    y1_e = colpool_relu(jnp.maximum(conv1_group(0), conv1_group(1)),
                        s1e_ref, s1o_ref, b1_ref)         # (7B, 84): pooled rows 0,2,..,12
    y1_o = colpool_relu(jnp.maximum(conv1_group(2), conv1_group(3)),
                        s1e_ref, s1o_ref, b1_ref)         # (7B, 84): pooled rows 1,3,..,13

    # ---- conv2 (5x5, 6->16, VALID) as banded matmuls ------------------------
    # conv2 row 2p   uses y1 rows 2p..2p+4   -> (even,p)(odd,p)(even,p+1)(odd,p+1)(even,p+2)
    # conv2 row 2p+1 uses y1 rows 2p+1..2p+5 -> (odd,p)(even,p+1)(odd,p+1)(even,p+2)(odd,p+2)
    def conv2_rows(plan):
        acc = None
        for kh, (src, d) in enumerate(plan):
            ys = src[d * bb:(d + 5) * bb, :]                                # (5B, 84)
            term = jnp.dot(ys, t2_ref[kh], preferred_element_type=f32)      # (5B, 160)
            acc = term if acc is None else acc + term
        return acc

    c2_e = conv2_rows([(y1_e, 0), (y1_o, 0), (y1_e, 1), (y1_o, 1), (y1_e, 2)])
    c2_o = conv2_rows([(y1_o, 0), (y1_e, 1), (y1_o, 1), (y1_e, 2), (y1_o, 2)])
    feat = colpool_relu(jnp.maximum(c2_e, c2_o), s2e_ref, s2o_ref, b2_ref)  # (5B, 80)

    # ---- fc1 -> relu -> fc2 -> relu -> fc3 ----------------------------------
    # feat rows are ordered (pooled_row, image); contract the 5 pooled rows
    # against wf1 reshaped to (5, 80, 120) -- avoids a (5,80)->400 lane relayout.
    h = jnp.dot(feat[0:bb, :], wf1_ref[0], preferred_element_type=f32)
    for p in range(1, 5):
        h = h + jnp.dot(feat[p * bb:(p + 1) * bb, :], wf1_ref[p],
                        preferred_element_type=f32)
    h = jnp.maximum(h + bf1_ref[...], 0.0)                                  # (B, 120)
    h = jnp.maximum(jnp.dot(h, wf2_ref[...], preferred_element_type=f32)
                    + bf2_ref[...], 0.0)                                    # (B, 84)
    o_ref[0] = jnp.dot(h, wf3_ref[...], preferred_element_type=f32) + bf3_ref[...]


# ---------------------------------------------------------------------------
# One-time host-side parameter preparation (outside the hot path)
# ---------------------------------------------------------------------------
def _band(w_oihw, kh, out_cols):
    """T[(w+kw)*Cin + c, w*Cout + o] = W[o, c, kh, kw]  (valid 1-D conv as a matmul)."""
    co, ci, _, kw_n = w_oihw.shape
    in_cols = out_cols + kw_n - 1
    t = np.zeros((in_cols * ci, out_cols * co), np.float32)
    for w in range(out_cols):
        for kw in range(kw_n):
            t[(w + kw) * ci:(w + kw + 1) * ci, w * co:(w + 1) * co] = w_oihw[:, :, kh, kw].T
    return t


def _pool_sel(cols, co):
    """Even/odd column selectors: Se[w*co+o, q*co+o] = (w == 2q), So: (w == 2q+1)."""
    q_n = cols // 2
    se = np.zeros((cols * co, q_n * co), np.float32)
    so = np.zeros_like(se)
    for q in range(q_n):
        for o in range(co):
            se[(2 * q) * co + o, q * co + o] = 1.0
            so[(2 * q + 1) * co + o, q * co + o] = 1.0
    return se, so


def prepare_params(params):
    """Re-layout PyTorch-shaped params (OIHW convs, (out,in) linears) once."""
    wc1, bc1, wc2, bc2, wf1, bf1, wf2, bf2, wf3, bf3 = (
        np.asarray(p, np.float32) for p in params)
    t1 = np.stack([_band(wc1, kh, 28) for kh in range(5)])     # (5,  96, 168)
    t2 = np.stack([_band(wc2, kh, 10) for kh in range(5)])     # (5,  84, 160)
    s1e, s1o = _pool_sel(28, 6)                                # (168, 84)
    s2e, s2o = _pool_sel(10, 16)                               # (160, 80)
    b1t = np.tile(bc1, 14)[None, :]                            # (1, 84), lane = q*6+o
    b2t = np.tile(bc2, 5)[None, :]                             # (1, 80), lane = q*16+o
    # PyTorch flatten is (c, h, w); the kernel's feature order is (h, w, c).
    wf1p = wf1.reshape(120, 16, 5, 5).transpose(2, 3, 1, 0).reshape(5, 80, 120)
    prepped = (t1, s1e, s1o, b1t, t2, s2e, s2o, b2t,
               wf1p, bf1[None, :], wf2.T, bf2[None, :], wf3.T, bf3[None, :])
    return tuple(jnp.asarray(p) for p in prepped)


# ---------------------------------------------------------------------------
# pallas_call wrapper
# ---------------------------------------------------------------------------
def net_forward(prepped, x_nchw, block_b=8):
    n, c, hh, ww = x_nchw.shape
    assert (c, hh, ww) == (3, 32, 32), "kernel is specialized to 3x32x32 inputs"

    bb = max(1, min(block_b, n))
    if n >= 2 and pl.cdiv(n, bb) < 2:      # keep >=2 grid steps so both v7x TCs work
        bb = pl.cdiv(n, 2)
    g = pl.cdiv(n, bb)
    n_pad = g * bb

    # NCHW -> rows x (w*3 + c) lanes, pad batch to a multiple of the block.
    x = jnp.transpose(x_nchw, (0, 2, 3, 1)).reshape(n, 32, 96)
    if n_pad != n:
        x = jnp.pad(x, ((0, n_pad - n), (0, 0), (0, 0)))
    # Group image rows by (row mod 4); within a block order rows as (t, image).
    xg = x.reshape(g, bb, 8, 4, 96).transpose(0, 3, 2, 1, 4).reshape(g, 4, 8 * bb, 96)

    wspecs = [pl.BlockSpec(p.shape, lambda i, nd=p.ndim: (0,) * nd) for p in prepped]
    out = pl.pallas_call(
        partial(_net_kernel, bb=bb),
        out_shape=jax.ShapeDtypeStruct((g, bb, 10), jnp.float32),
        grid=(g,),
        in_specs=[pl.BlockSpec((1, 4, 8 * bb, 96), lambda i: (i, 0, 0, 0))] + wspecs,
        out_specs=pl.BlockSpec((1, bb, 10), lambda i: (i, 0, 0)),
        compiler_params=pltpu.CompilerParams(dimension_semantics=("parallel",)),
    )(xg, *prepped)
    return out.reshape(n_pad, 10)[:n]


# ---------------------------------------------------------------------------
# Deterministic parameter init (PyTorch shapes: OIHW convs, (out,in) linears)
# ---------------------------------------------------------------------------
def init_params(key):
    ks = jax.random.split(key, 10)

    def w(k, shape, fan_in):
        return jax.random.normal(k, shape, jnp.float32) / jnp.sqrt(float(fan_in))

    return (w(ks[0], (6, 3, 5, 5), 75), w(ks[1], (6,), 75),
            w(ks[2], (16, 6, 5, 5), 150), w(ks[3], (16,), 150),
            w(ks[4], (120, 400), 400), w(ks[5], (120,), 400),
            w(ks[6], (84, 120), 120), w(ks[7], (84,), 120),
            w(ks[8], (10, 84), 84), w(ks[9], (10,), 84))


# ---------------------------------------------------------------------------
# Pure-JAX reference (direct translation of the PyTorch forward)
# ---------------------------------------------------------------------------
def reference_forward(params, x_nchw):
    wc1, bc1, wc2, bc2, wf1, bf1, wf2, bf2, wf3, bf3 = params
    dn = ("NCHW", "OIHW", "NCHW")
    hp = lax.Precision.HIGHEST
    y = lax.conv_general_dilated(x_nchw, wc1, (1, 1), "VALID",
                                 dimension_numbers=dn, precision=hp)
    y = jnp.maximum(y + bc1[None, :, None, None], 0.0)
    y = lax.reduce_window(y, -jnp.inf, lax.max, (1, 1, 2, 2), (1, 1, 2, 2), "VALID")
    y = lax.conv_general_dilated(y, wc2, (1, 1), "VALID",
                                 dimension_numbers=dn, precision=hp)
    y = jnp.maximum(y + bc2[None, :, None, None], 0.0)
    y = lax.reduce_window(y, -jnp.inf, lax.max, (1, 1, 2, 2), (1, 1, 2, 2), "VALID")
    y = y.reshape(y.shape[0], -1)                              # (N, 400), CHW order
    y = jnp.maximum(jnp.dot(y, wf1.T, precision=hp) + bf1, 0.0)
    y = jnp.maximum(jnp.dot(y, wf2.T, precision=hp) + bf2, 0.0)
    return jnp.dot(y, wf3.T, precision=hp) + bf3


if __name__ == "__main__":
    key = jax.random.PRNGKey(0)
    pkey, xkey = jax.random.split(key)
    params = init_params(pkey)
    # Small batch (16) so two grid steps of B=8 images each exercise batching.
    x = jax.random.normal(xkey, (16, 3, 32, 32), jnp.float32)

    prepped = prepare_params(params)                 # one-time weight re-layout
    fwd = jax.jit(net_forward, static_argnames=("block_b",))
    out = jax.block_until_ready(fwd(prepped, x))
    assert out.shape == (16, 10) and out.dtype == jnp.float32

    ref = reference_forward(params, x)
    max_err = float(jnp.max(jnp.abs(out - ref)))
    # Tolerance accounts for default (bf16-pass) MXU precision in the kernel vs
    # the HIGHEST-precision XLA reference.
    assert jnp.allclose(out, ref, rtol=2e-2, atol=2e-2), f"max_abs_err={max_err}"

    print("KERNEL_OK")
</pallas_src>

<mosaic_0001>
module attributes {stable_mosaic.version = 11 : i64} {
  func.func @_net_kernel(%arg0: i32, %arg1: memref<1x4x64x96xf32, #tpu.memory_space<vmem>>, %arg2: memref<5x96x168xf32, #tpu.memory_space<vmem>>, %arg3: memref<168x84xf32, #tpu.memory_space<vmem>>, %arg4: memref<168x84xf32, #tpu.memory_space<vmem>>, %arg5: memref<1x84xf32, #tpu.memory_space<vmem>>, %arg6: memref<5x84x160xf32, #tpu.memory_space<vmem>>, %arg7: memref<160x80xf32, #tpu.memory_space<vmem>>, %arg8: memref<160x80xf32, #tpu.memory_space<vmem>>, %arg9: memref<1x80xf32, #tpu.memory_space<vmem>>, %arg10: memref<5x80x120xf32, #tpu.memory_space<vmem>>, %arg11: memref<1x120xf32, #tpu.memory_space<vmem>>, %arg12: memref<120x84xf32, #tpu.memory_space<vmem>>, %arg13: memref<1x84xf32, #tpu.memory_space<vmem>>, %arg14: memref<84x10xf32, #tpu.memory_space<vmem>>, %arg15: memref<1x10xf32, #tpu.memory_space<vmem>>, %arg16: memref<1x8x10xf32, #tpu.memory_space<vmem>>) attributes {dimension_semantics = [#tpu.dimension_semantics<parallel>], iteration_bounds = array<i64: 2>, scalar_prefetch = 0 : i64, scratch_operands = 0 : i64, tpu.core_type = #tpu.core_type<tc>, window_params = [{transform_indices = @transform_0, window_bounds = array<i64: 1, 4, 64, 96>}, {pipeline_mode = #tpu.pipeline_mode<synchronous>, transform_indices = @transform_1, window_bounds = array<i64: 5, 96, 168>}, {pipeline_mode = #tpu.pipeline_mode<synchronous>, transform_indices = @transform_2, window_bounds = array<i64: 168, 84>}, {pipeline_mode = #tpu.pipeline_mode<synchronous>, transform_indices = @transform_3, window_bounds = array<i64: 168, 84>}, {pipeline_mode = #tpu.pipeline_mode<synchronous>, transform_indices = @transform_4, window_bounds = array<i64: 1, 84>}, {pipeline_mode = #tpu.pipeline_mode<synchronous>, transform_indices = @transform_5, window_bounds = array<i64: 5, 84, 160>}, {pipeline_mode = #tpu.pipeline_mode<synchronous>, transform_indices = @transform_6, window_bounds = array<i64: 160, 80>}, {pipeline_mode = #tpu.pipeline_mode<synchronous>, transform_indices = @transform_7, window_bounds = array<i64: 160, 80>}, {pipeline_mode = #tpu.pipeline_mode<synchronous>, transform_indices = @transform_8, window_bounds = array<i64: 1, 80>}, {pipeline_mode = #tpu.pipeline_mode<synchronous>, transform_indices = @transform_9, window_bounds = array<i64: 5, 80, 120>}, {pipeline_mode = #tpu.pipeline_mode<synchronous>, transform_indices = @transform_10, window_bounds = array<i64: 1, 120>}, {pipeline_mode = #tpu.pipeline_mode<synchronous>, transform_indices = @transform_11, window_bounds = array<i64: 120, 84>}, {pipeline_mode = #tpu.pipeline_mode<synchronous>, transform_indices = @transform_12, window_bounds = array<i64: 1, 84>}, {pipeline_mode = #tpu.pipeline_mode<synchronous>, transform_indices = @transform_13, window_bounds = array<i64: 84, 10>}, {pipeline_mode = #tpu.pipeline_mode<synchronous>, transform_indices = @transform_14, window_bounds = array<i64: 1, 10>}, {transform_indices = @transform_15, window_bounds = array<i64: 1, 8, 10>}]} {
    %c0 = arith.constant 0 : index
    %c0_0 = arith.constant 0 : index
    %c0_1 = arith.constant 0 : index
    %c0_2 = arith.constant 0 : index
    %0 = vector.load %arg1[%c0, %c0_0, %c0_1, %c0_2] : memref<1x4x64x96xf32, #tpu.memory_space<vmem>>, vector<1x1x56x96xf32>
    %1 = vector.shape_cast %0 : vector<1x1x56x96xf32> to vector<56x96xf32>
    %c0_3 = arith.constant 0 : index
    %c0_4 = arith.constant 0 : index
    %c0_5 = arith.constant 0 : index
    %2 = vector.load %arg2[%c0_3, %c0_4, %c0_5] : memref<5x96x168xf32, #tpu.memory_space<vmem>>, vector<1x96x168xf32>
    %3 = vector.shape_cast %2 : vector<1x96x168xf32> to vector<96x168xf32>
    %cst = arith.constant dense<0.000000e+00> : vector<56x168xf32>
    %4 = tpu.matmul %1, %3, %cst {dimension_numbers = #tpu.dot_dimension_numbers<[1], [0], [0], [1], [0, 0, 1, 1], [], []>} : vector<56x96xf32>, vector<96x168xf32>, vector<56x168xf32> -> vector<56x168xf32>
    %c0_6 = arith.constant 0 : index
    %c1 = arith.constant 1 : index
    %c0_7 = arith.constant 0 : index
    %c0_8 = arith.constant 0 : index
    %5 = vector.load %arg1[%c0_6, %c1, %c0_7, %c0_8] : memref<1x4x64x96xf32, #tpu.memory_space<vmem>>, vector<1x1x56x96xf32>
    %6 = vector.shape_cast %5 : vector<1x1x56x96xf32> to vector<56x96xf32>
    %c1_9 = arith.constant 1 : index
    %c0_10 = arith.constant 0 : index
    %c0_11 = arith.constant 0 : index
    %7 = vector.load %arg2[%c1_9, %c0_10, %c0_11] : memref<5x96x168xf32, #tpu.memory_space<vmem>>, vector<1x96x168xf32>
    %8 = vector.shape_cast %7 : vector<1x96x168xf32> to vector<96x168xf32>
    %cst_12 = arith.constant dense<0.000000e+00> : vector<56x168xf32>
    %9 = tpu.matmul %6, %8, %cst_12 {dimension_numbers = #tpu.dot_dimension_numbers<[1], [0], [0], [1], [0, 0, 1, 1], [], []>} : vector<56x96xf32>, vector<96x168xf32>, vector<56x168xf32> -> vector<56x168xf32>
    %10 = arith.addf %4, %9 : vector<56x168xf32>
    %c0_13 = arith.constant 0 : index
    %c2 = arith.constant 2 : index
    %c0_14 = arith.constant 0 : index
    %c0_15 = arith.constant 0 : index
    %11 = vector.load %arg1[%c0_13, %c2, %c0_14, %c0_15] : memref<1x4x64x96xf32, #tpu.memory_space<vmem>>, vector<1x1x56x96xf32>
    %12 = vector.shape_cast %11 : vector<1x1x56x96xf32> to vector<56x96xf32>
    %c2_16 = arith.constant 2 : index
    %c0_17 = arith.constant 0 : index
    %c0_18 = arith.constant 0 : index
    %13 = vector.load %arg2[%c2_16, %c0_17, %c0_18] : memref<5x96x168xf32, #tpu.memory_space<vmem>>, vector<1x96x168xf32>
    %14 = vector.shape_cast %13 : vector<1x96x168xf32> to vector<96x168xf32>
    %cst_19 = arith.constant dense<0.000000e+00> : vector<56x168xf32>
    %15 = tpu.matmul %12, %14, %cst_19 {dimension_numbers = #tpu.dot_dimension_numbers<[1], [0], [0], [1], [0, 0, 1, 1], [], []>} : vector<56x96xf32>, vector<96x168xf32>, vector<56x168xf32> -> vector<56x168xf32>
    %16 = arith.addf %10, %15 : vector<56x168xf32>
    %c0_20 = arith.constant 0 : index
    %c3 = arith.constant 3 : index
    %c0_21 = arith.constant 0 : index
    %c0_22 = arith.constant 0 : index
    %17 = vector.load %arg1[%c0_20, %c3, %c0_21, %c0_22] : memref<1x4x64x96xf32, #tpu.memory_space<vmem>>, vector<1x1x56x96xf32>
    %18 = vector.shape_cast %17 : vector<1x1x56x96xf32> to vector<56x96xf32>
    %c3_23 = arith.constant 3 : index
    %c0_24 = arith.constant 0 : index
    %c0_25 = arith.constant 0 : index
    %19 = vector.load %arg2[%c3_23, %c0_24, %c0_25] : memref<5x96x168xf32, #tpu.memory_space<vmem>>, vector<1x96x168xf32>
    %20 = vector.shape_cast %19 : vector<1x96x168xf32> to vector<96x168xf32>
    %cst_26 = arith.constant dense<0.000000e+00> : vector<56x168xf32>
    %21 = tpu.matmul %18, %20, %cst_26 {dimension_numbers = #tpu.dot_dimension_numbers<[1], [0], [0], [1], [0, 0, 1, 1], [], []>} : vector<56x96xf32>, vector<96x168xf32>, vector<56x168xf32> -> vector<56x168xf32>
    %22 = arith.addf %16, %21 : vector<56x168xf32>
    %c0_27 = arith.constant 0 : index
    %c0_28 = arith.constant 0 : index
    %c8 = arith.constant 8 : index
    %c0_29 = arith.constant 0 : index
    %23 = vector.load %arg1[%c0_27, %c0_28, %c8, %c0_29] : memref<1x4x64x96xf32, #tpu.memory_space<vmem>>, vector<1x1x56x96xf32>
    %24 = vector.shape_cast %23 : vector<1x1x56x96xf32> to vector<56x96xf32>
    %c4 = arith.constant 4 : index
    %c0_30 = arith.constant 0 : index
    %c0_31 = arith.constant 0 : index
    %25 = vector.load %arg2[%c4, %c0_30, %c0_31] : memref<5x96x168xf32, #tpu.memory_space<vmem>>, vector<1x96x168xf32>
    %26 = vector.shape_cast %25 : vector<1x96x168xf32> to vector<96x168xf32>
    %cst_32 = arith.constant dense<0.000000e+00> : vector<56x168xf32>
    %27 = tpu.matmul %24, %26, %cst_32 {dimension_numbers = #tpu.dot_dimension_numbers<[1], [0], [0], [1], [0, 0, 1, 1], [], []>} : vector<56x96xf32>, vector<96x168xf32>, vector<56x168xf32> -> vector<56x168xf32>
    %28 = arith.addf %22, %27 : vector<56x168xf32>
    %c0_33 = arith.constant 0 : index
    %c1_34 = arith.constant 1 : index
    %c0_35 = arith.constant 0 : index
    %c0_36 = arith.constant 0 : index
    %29 = vector.load %arg1[%c0_33, %c1_34, %c0_35, %c0_36] : memref<1x4x64x96xf32, #tpu.memory_space<vmem>>, vector<1x1x56x96xf32>
    %30 = vector.shape_cast %29 : vector<1x1x56x96xf32> to vector<56x96xf32>
    %c0_37 = arith.constant 0 : index
    %c0_38 = arith.constant 0 : index
    %c0_39 = arith.constant 0 : index
    %31 = vector.load %arg2[%c0_37, %c0_38, %c0_39] : memref<5x96x168xf32, #tpu.memory_space<vmem>>, vector<1x96x168xf32>
    %32 = vector.shape_cast %31 : vector<1x96x168xf32> to vector<96x168xf32>
    %cst_40 = arith.constant dense<0.000000e+00> : vector<56x168xf32>
    %33 = tpu.matmul %30, %32, %cst_40 {dimension_numbers = #tpu.dot_dimension_numbers<[1], [0], [0], [1], [0, 0, 1, 1], [], []>} : vector<56x96xf32>, vector<96x168xf32>, vector<56x168xf32> -> vector<56x168xf32>
    %c0_41 = arith.constant 0 : index
    %c2_42 = arith.constant 2 : index
    %c0_43 = arith.constant 0 : index
    %c0_44 = arith.constant 0 : index
    %34 = vector.load %arg1[%c0_41, %c2_42, %c0_43, %c0_44] : memref<1x4x64x96xf32, #tpu.memory_space<vmem>>, vector<1x1x56x96xf32>
    %35 = vector.shape_cast %34 : vector<1x1x56x96xf32> to vector<56x96xf32>
    %c1_45 = arith.constant 1 : index
    %c0_46 = arith.constant 0 : index
    %c0_47 = arith.constant 0 : index
    %36 = vector.load %arg2[%c1_45, %c0_46, %c0_47] : memref<5x96x168xf32, #tpu.memory_space<vmem>>, vector<1x96x168xf32>
    %37 = vector.shape_cast %36 : vector<1x96x168xf32> to vector<96x168xf32>
    %cst_48 = arith.constant dense<0.000000e+00> : vector<56x168xf32>
    %38 = tpu.matmul %35, %37, %cst_48 {dimension_numbers = #tpu.dot_dimension_numbers<[1], [0], [0], [1], [0, 0, 1, 1], [], []>} : vector<56x96xf32>, vector<96x168xf32>, vector<56x168xf32> -> vector<56x168xf32>
    %39 = arith.addf %33, %38 : vector<56x168xf32>
    %c0_49 = arith.constant 0 : index
    %c3_50 = arith.constant 3 : index
    %c0_51 = arith.constant 0 : index
    %c0_52 = arith.constant 0 : index
    %40 = vector.load %arg1[%c0_49, %c3_50, %c0_51, %c0_52] : memref<1x4x64x96xf32, #tpu.memory_space<vmem>>, vector<1x1x56x96xf32>
    %41 = vector.shape_cast %40 : vector<1x1x56x96xf32> to vector<56x96xf32>
    %c2_53 = arith.constant 2 : index
    %c0_54 = arith.constant 0 : index
    %c0_55 = arith.constant 0 : index
    %42 = vector.load %arg2[%c2_53, %c0_54, %c0_55] : memref<5x96x168xf32, #tpu.memory_space<vmem>>, vector<1x96x168xf32>
    %43 = vector.shape_cast %42 : vector<1x96x168xf32> to vector<96x168xf32>
    %cst_56 = arith.constant dense<0.000000e+00> : vector<56x168xf32>
    %44 = tpu.matmul %41, %43, %cst_56 {dimension_numbers = #tpu.dot_dimension_numbers<[1], [0], [0], [1], [0, 0, 1, 1], [], []>} : vector<56x96xf32>, vector<96x168xf32>, vector<56x168xf32> -> vector<56x168xf32>
    %45 = arith.addf %39, %44 : vector<56x168xf32>
    %c0_57 = arith.constant 0 : index
    %c0_58 = arith.constant 0 : index
    %c8_59 = arith.constant 8 : index
    %c0_60 = arith.constant 0 : index
    %46 = vector.load %arg1[%c0_57, %c0_58, %c8_59, %c0_60] : memref<1x4x64x96xf32, #tpu.memory_space<vmem>>, vector<1x1x56x96xf32>
    %47 = vector.shape_cast %46 : vector<1x1x56x96xf32> to vector<56x96xf32>
    %c3_61 = arith.constant 3 : index
    %c0_62 = arith.constant 0 : index
    %c0_63 = arith.constant 0 : index
    %48 = vector.load %arg2[%c3_61, %c0_62, %c0_63] : memref<5x96x168xf32, #tpu.memory_space<vmem>>, vector<1x96x168xf32>
    %49 = vector.shape_cast %48 : vector<1x96x168xf32> to vector<96x168xf32>
    %cst_64 = arith.constant dense<0.000000e+00> : vector<56x168xf32>
    %50 = tpu.matmul %47, %49, %cst_64 {dimension_numbers = #tpu.dot_dimension_numbers<[1], [0], [0], [1], [0, 0, 1, 1], [], []>} : vector<56x96xf32>, vector<96x168xf32>, vector<56x168xf32> -> vector<56x168xf32>
    %51 = arith.addf %45, %50 : vector<56x168xf32>
    %c0_65 = arith.constant 0 : index
    %c1_66 = arith.constant 1 : index
    %c8_67 = arith.constant 8 : index
    %c0_68 = arith.constant 0 : index
    %52 = vector.load %arg1[%c0_65, %c1_66, %c8_67, %c0_68] : memref<1x4x64x96xf32, #tpu.memory_space<vmem>>, vector<1x1x56x96xf32>
    %53 = vector.shape_cast %52 : vector<1x1x56x96xf32> to vector<56x96xf32>
    %c4_69 = arith.constant 4 : index
    %c0_70 = arith.constant 0 : index
    %c0_71 = arith.constant 0 : index
    %54 = vector.load %arg2[%c4_69, %c0_70, %c0_71] : memref<5x96x168xf32, #tpu.memory_space<vmem>>, vector<1x96x168xf32>
    %55 = vector.shape_cast %54 : vector<1x96x168xf32> to vector<96x168xf32>
    %cst_72 = arith.constant dense<0.000000e+00> : vector<56x168xf32>
    %56 = tpu.matmul %53, %55, %cst_72 {dimension_numbers = #tpu.dot_dimension_numbers<[1], [0], [0], [1], [0, 0, 1, 1], [], []>} : vector<56x96xf32>, vector<96x168xf32>, vector<56x168xf32> -> vector<56x168xf32>
    %57 = arith.addf %51, %56 : vector<56x168xf32>
    %58 = arith.maximumf %28, %57 : vector<56x168xf32>
    %c0_73 = arith.constant 0 : index
    %c0_74 = arith.constant 0 : index
    %59 = vector.load %arg3[%c0_73, %c0_74] : memref<168x84xf32, #tpu.memory_space<vmem>>, vector<168x84xf32>
    %cst_75 = arith.constant dense<0.000000e+00> : vector<56x84xf32>
    %60 = tpu.matmul %58, %59, %cst_75 {dimension_numbers = #tpu.dot_dimension_numbers<[1], [0], [0], [1], [0, 0, 1, 1], [], []>} : vector<56x168xf32>, vector<168x84xf32>, vector<56x84xf32> -> vector<56x84xf32>
    %c0_76 = arith.constant 0 : index
    %c0_77 = arith.constant 0 : index
    %61 = vector.load %arg4[%c0_76, %c0_77] : memref<168x84xf32, #tpu.memory_space<vmem>>, vector<168x84xf32>
    %cst_78 = arith.constant dense<0.000000e+00> : vector<56x84xf32>
    %62 = tpu.matmul %58, %61, %cst_78 {dimension_numbers = #tpu.dot_dimension_numbers<[1], [0], [0], [1], [0, 0, 1, 1], [], []>} : vector<56x168xf32>, vector<168x84xf32>, vector<56x84xf32> -> vector<56x84xf32>
    %63 = arith.maximumf %60, %62 : vector<56x84xf32>
    %c0_79 = arith.constant 0 : index
    %c0_80 = arith.constant 0 : index
    %64 = vector.load %arg5[%c0_79, %c0_80] : memref<1x84xf32, #tpu.memory_space<vmem>>, vector<1x84xf32>
    %65 = vector.broadcast %64 : vector<1x84xf32> to vector<56x84xf32>
    %66 = arith.addf %63, %65 : vector<56x84xf32>
    %cst_81 = arith.constant 0.000000e+00 : f32
    %67 = vector.broadcast %cst_81 : f32 to vector<56x84xf32>
    %68 = arith.maximumf %66, %67 : vector<56x84xf32>
    %c0_82 = arith.constant 0 : index
    %c2_83 = arith.constant 2 : index
    %c0_84 = arith.constant 0 : index
    %c0_85 = arith.constant 0 : index
    %69 = vector.load %arg1[%c0_82, %c2_83, %c0_84, %c0_85] : memref<1x4x64x96xf32, #tpu.memory_space<vmem>>, vector<1x1x56x96xf32>
    %70 = vector.shape_cast %69 : vector<1x1x56x96xf32> to vector<56x96xf32>
    %c0_86 = arith.constant 0 : index
    %c0_87 = arith.constant 0 : index
    %c0_88 = arith.constant 0 : index
    %71 = vector.load %arg2[%c0_86, %c0_87, %c0_88] : memref<5x96x168xf32, #tpu.memory_space<vmem>>, vector<1x96x168xf32>
    %72 = vector.shape_cast %71 : vector<1x96x168xf32> to vector<96x168xf32>
    %cst_89 = arith.constant dense<0.000000e+00> : vector<56x168xf32>
    %73 = tpu.matmul %70, %72, %cst_89 {dimension_numbers = #tpu.dot_dimension_numbers<[1], [0], [0], [1], [0, 0, 1, 1], [], []>} : vector<56x96xf32>, vector<96x168xf32>, vector<56x168xf32> -> vector<56x168xf32>
    %c0_90 = arith.constant 0 : index
    %c3_91 = arith.constant 3 : index
    %c0_92 = arith.constant 0 : index
    %c0_93 = arith.constant 0 : index
    %74 = vector.load %arg1[%c0_90, %c3_91, %c0_92, %c0_93] : memref<1x4x64x96xf32, #tpu.memory_space<vmem>>, vector<1x1x56x96xf32>
    %75 = vector.shape_cast %74 : vector<1x1x56x96xf32> to vector<56x96xf32>
    %c1_94 = arith.constant 1 : index
    %c0_95 = arith.constant 0 : index
    %c0_96 = arith.constant 0 : index
    %76 = vector.load %arg2[%c1_94, %c0_95, %c0_96] : memref<5x96x168xf32, #tpu.memory_space<vmem>>, vector<1x96x168xf32>
    %77 = vector.shape_cast %76 : vector<1x96x168xf32> to vector<96x168xf32>
    %cst_97 = arith.constant dense<0.000000e+00> : vector<56x168xf32>
    %78 = tpu.matmul %75, %77, %cst_97 {dimension_numbers = #tpu.dot_dimension_numbers<[1], [0], [0], [1], [0, 0, 1, 1], [], []>} : vector<56x96xf32>, vector<96x168xf32>, vector<56x168xf32> -> vector<56x168xf32>
    %79 = arith.addf %73, %78 : vector<56x168xf32>
    %c0_98 = arith.constant 0 : index
    %c0_99 = arith.constant 0 : index
    %c8_100 = arith.constant 8 : index
    %c0_101 = arith.constant 0 : index
    %80 = vector.load %arg1[%c0_98, %c0_99, %c8_100, %c0_101] : memref<1x4x64x96xf32, #tpu.memory_space<vmem>>, vector<1x1x56x96xf32>
    %81 = vector.shape_cast %80 : vector<1x1x56x96xf32> to vector<56x96xf32>
    %c2_102 = arith.constant 2 : index
    %c0_103 = arith.constant 0 : index
    %c0_104 = arith.constant 0 : index
    %82 = vector.load %arg2[%c2_102, %c0_103, %c0_104] : memref<5x96x168xf32, #tpu.memory_space<vmem>>, vector<1x96x168xf32>
    %83 = vector.shape_cast %82 : vector<1x96x168xf32> to vector<96x168xf32>
    %cst_105 = arith.constant dense<0.000000e+00> : vector<56x168xf32>
    %84 = tpu.matmul %81, %83, %cst_105 {dimension_numbers = #tpu.dot_dimension_numbers<[1], [0], [0], [1], [0, 0, 1, 1], [], []>} : vector<56x96xf32>, vector<96x168xf32>, vector<56x168xf32> -> vector<56x168xf32>
    %85 = arith.addf %79, %84 : vector<56x168xf32>
    %c0_106 = arith.constant 0 : index
    %c1_107 = arith.constant 1 : index
    %c8_108 = arith.constant 8 : index
    %c0_109 = arith.constant 0 : index
    %86 = vector.load %arg1[%c0_106, %c1_107, %c8_108, %c0_109] : memref<1x4x64x96xf32, #tpu.memory_space<vmem>>, vector<1x1x56x96xf32>
    %87 = vector.shape_cast %86 : vector<1x1x56x96xf32> to vector<56x96xf32>
    %c3_110 = arith.constant 3 : index
    %c0_111 = arith.constant 0 : index
    %c0_112 = arith.constant 0 : index
    %88 = vector.load %arg2[%c3_110, %c0_111, %c0_112] : memref<5x96x168xf32, #tpu.memory_space<vmem>>, vector<1x96x168xf32>
    %89 = vector.shape_cast %88 : vector<1x96x168xf32> to vector<96x168xf32>
    %cst_113 = arith.constant dense<0.000000e+00> : vector<56x168xf32>
    %90 = tpu.matmul %87, %89, %cst_113 {dimension_numbers = #tpu.dot_dimension_numbers<[1], [0], [0], [1], [0, 0, 1, 1], [], []>} : vector<56x96xf32>, vector<96x168xf32>, vector<56x168xf32> -> vector<56x168xf32>
    %91 = arith.addf %85, %90 : vector<56x168xf32>
    %c0_114 = arith.constant 0 : index
    %c2_115 = arith.constant 2 : index
    %c8_116 = arith.constant 8 : index
    %c0_117 = arith.constant 0 : index
    %92 = vector.load %arg1[%c0_114, %c2_115, %c8_116, %c0_117] : memref<1x4x64x96xf32, #tpu.memory_space<vmem>>, vector<1x1x56x96xf32>
    %93 = vector.shape_cast %92 : vector<1x1x56x96xf32> to vector<56x96xf32>
    %c4_118 = arith.constant 4 : index
    %c0_119 = arith.constant 0 : index
    %c0_120 = arith.constant 0 : index
    %94 = vector.load %arg2[%c4_118, %c0_119, %c0_120] : memref<5x96x168xf32, #tpu.memory_space<vmem>>, vector<1x96x168xf32>
    %95 = vector.shape_cast %94 : vector<1x96x168xf32> to vector<96x168xf32>
    %cst_121 = arith.constant dense<0.000000e+00> : vector<56x168xf32>
    %96 = tpu.matmul %93, %95, %cst_121 {dimension_numbers = #tpu.dot_dimension_numbers<[1], [0], [0], [1], [0, 0, 1, 1], [], []>} : vector<56x96xf32>, vector<96x168xf32>, vector<56x168xf32> -> vector<56x168xf32>
    %97 = arith.addf %91, %96 : vector<56x168xf32>
    %c0_122 = arith.constant 0 : index
    %c3_123 = arith.constant 3 : index
    %c0_124 = arith.constant 0 : index
    %c0_125 = arith.constant 0 : index
    %98 = vector.load %arg1[%c0_122, %c3_123, %c0_124, %c0_125] : memref<1x4x64x96xf32, #tpu.memory_space<vmem>>, vector<1x1x56x96xf32>
    %99 = vector.shape_cast %98 : vector<1x1x56x96xf32> to vector<56x96xf32>
    %c0_126 = arith.constant 0 : index
    %c0_127 = arith.constant 0 : index
    %c0_128 = arith.constant 0 : index
    %100 = vector.load %arg2[%c0_126, %c0_127, %c0_128] : memref<5x96x168xf32, #tpu.memory_space<vmem>>, vector<1x96x168xf32>
    %101 = vector.shape_cast %100 : vector<1x96x168xf32> to vector<96x168xf32>
    %cst_129 = arith.constant dense<0.000000e+00> : vector<56x168xf32>
    %102 = tpu.matmul %99, %101, %cst_129 {dimension_numbers = #tpu.dot_dimension_numbers<[1], [0], [0], [1], [0, 0, 1, 1], [], []>} : vector<56x96xf32>, vector<96x168xf32>, vector<56x168xf32> -> vector<56x168xf32>
    %c0_130 = arith.constant 0 : index
    %c0_131 = arith.constant 0 : index
    %c8_132 = arith.constant 8 : index
    %c0_133 = arith.constant 0 : index
    %103 = vector.load %arg1[%c0_130, %c0_131, %c8_132, %c0_133] : memref<1x4x64x96xf32, #tpu.memory_space<vmem>>, vector<1x1x56x96xf32>
    %104 = vector.shape_cast %103 : vector<1x1x56x96xf32> to vector<56x96xf32>
    %c1_134 = arith.constant 1 : index
    %c0_135 = arith.constant 0 : index
    %c0_136 = arith.constant 0 : index
    %105 = vector.load %arg2[%c1_134, %c0_135, %c0_136] : memref<5x96x168xf32, #tpu.memory_space<vmem>>, vector<1x96x168xf32>
    %106 = vector.shape_cast %105 : vector<1x96x168xf32> to vector<96x168xf32>
    %cst_137 = arith.constant dense<0.000000e+00> : vector<56x168xf32>
    %107 = tpu.matmul %104, %106, %cst_137 {dimension_numbers = #tpu.dot_dimension_numbers<[1], [0], [0], [1], [0, 0, 1, 1], [], []>} : vector<56x96xf32>, vector<96x168xf32>, vector<56x168xf32> -> vector<56x168xf32>
    %108 = arith.addf %102, %107 : vector<56x168xf32>
    %c0_138 = arith.constant 0 : index
    %c1_139 = arith.constant 1 : index
    %c8_140 = arith.constant 8 : index
    %c0_141 = arith.constant 0 : index
    %109 = vector.load %arg1[%c0_138, %c1_139, %c8_140, %c0_141] : memref<1x4x64x96xf32, #tpu.memory_space<vmem>>, vector<1x1x56x96xf32>
    %110 = vector.shape_cast %109 : vector<1x1x56x96xf32> to vector<56x96xf32>
    %c2_142 = arith.constant 2 : index
    %c0_143 = arith.constant 0 : index
    %c0_144 = arith.constant 0 : index
    %111 = vector.load %arg2[%c2_142, %c0_143, %c0_144] : memref<5x96x168xf32, #tpu.memory_space<vmem>>, vector<1x96x168xf32>
    %112 = vector.shape_cast %111 : vector<1x96x168xf32> to vector<96x168xf32>
    %cst_145 = arith.constant dense<0.000000e+00> : vector<56x168xf32>
    %113 = tpu.matmul %110, %112, %cst_145 {dimension_numbers = #tpu.dot_dimension_numbers<[1], [0], [0], [1], [0, 0, 1, 1], [], []>} : vector<56x96xf32>, vector<96x168xf32>, vector<56x168xf32> -> vector<56x168xf32>
    %114 = arith.addf %108, %113 : vector<56x168xf32>
    %c0_146 = arith.constant 0 : index
    %c2_147 = arith.constant 2 : index
    %c8_148 = arith.constant 8 : index
    %c0_149 = arith.constant 0 : index
    %115 = vector.load %arg1[%c0_146, %c2_147, %c8_148, %c0_149] : memref<1x4x64x96xf32, #tpu.memory_space<vmem>>, vector<1x1x56x96xf32>
    %116 = vector.shape_cast %115 : vector<1x1x56x96xf32> to vector<56x96xf32>
    %c3_150 = arith.constant 3 : index
    %c0_151 = arith.constant 0 : index
    %c0_152 = arith.constant 0 : index
    %117 = vector.load %arg2[%c3_150, %c0_151, %c0_152] : memref<5x96x168xf32, #tpu.memory_space<vmem>>, vector<1x96x168xf32>
    %118 = vector.shape_cast %117 : vector<1x96x168xf32> to vector<96x168xf32>
    %cst_153 = arith.constant dense<0.000000e+00> : vector<56x168xf32>
    %119 = tpu.matmul %116, %118, %cst_153 {dimension_numbers = #tpu.dot_dimension_numbers<[1], [0], [0], [1], [0, 0, 1, 1], [], []>} : vector<56x96xf32>, vector<96x168xf32>, vector<56x168xf32> -> vector<56x168xf32>
    %120 = arith.addf %114, %119 : vector<56x168xf32>
    %c0_154 = arith.constant 0 : index
    %c3_155 = arith.constant 3 : index
    %c8_156 = arith.constant 8 : index
    %c0_157 = arith.constant 0 : index
    %121 = vector.load %arg1[%c0_154, %c3_155, %c8_156, %c0_157] : memref<1x4x64x96xf32, #tpu.memory_space<vmem>>, vector<1x1x56x96xf32>
    %122 = vector.shape_cast %121 : vector<1x1x56x96xf32> to vector<56x96xf32>
    %c4_158 = arith.constant 4 : index
    %c0_159 = arith.constant 0 : index
    %c0_160 = arith.constant 0 : index
    %123 = vector.load %arg2[%c4_158, %c0_159, %c0_160] : memref<5x96x168xf32, #tpu.memory_space<vmem>>, vector<1x96x168xf32>
    %124 = vector.shape_cast %123 : vector<1x96x168xf32> to vector<96x168xf32>
    %cst_161 = arith.constant dense<0.000000e+00> : vector<56x168xf32>
    %125 = tpu.matmul %122, %124, %cst_161 {dimension_numbers = #tpu.dot_dimension_numbers<[1], [0], [0], [1], [0, 0, 1, 1], [], []>} : vector<56x96xf32>, vector<96x168xf32>, vector<56x168xf32> -> vector<56x168xf32>
    %126 = arith.addf %120, %125 : vector<56x168xf32>
    %127 = arith.maximumf %97, %126 : vector<56x168xf32>
    %c0_162 = arith.constant 0 : index
    %c0_163 = arith.constant 0 : index
    %128 = vector.load %arg3[%c0_162, %c0_163] : memref<168x84xf32, #tpu.memory_space<vmem>>, vector<168x84xf32>
    %cst_164 = arith.constant dense<0.000000e+00> : vector<56x84xf32>
    %129 = tpu.matmul %127, %128, %cst_164 {dimension_numbers = #tpu.dot_dimension_numbers<[1], [0], [0], [1], [0, 0, 1, 1], [], []>} : vector<56x168xf32>, vector<168x84xf32>, vector<56x84xf32> -> vector<56x84xf32>
    %c0_165 = arith.constant 0 : index
    %c0_166 = arith.constant 0 : index
    %130 = vector.load %arg4[%c0_165, %c0_166] : memref<168x84xf32, #tpu.memory_space<vmem>>, vector<168x84xf32>
    %cst_167 = arith.constant dense<0.000000e+00> : vector<56x84xf32>
    %131 = tpu.matmul %127, %130, %cst_167 {dimension_numbers = #tpu.dot_dimension_numbers<[1], [0], [0], [1], [0, 0, 1, 1], [], []>} : vector<56x168xf32>, vector<168x84xf32>, vector<56x84xf32> -> vector<56x84xf32>
    %132 = arith.maximumf %129, %131 : vector<56x84xf32>
    %c0_168 = arith.constant 0 : index
    %c0_169 = arith.constant 0 : index
    %133 = vector.load %arg5[%c0_168, %c0_169] : memref<1x84xf32, #tpu.memory_space<vmem>>, vector<1x84xf32>
    %134 = vector.broadcast %133 : vector<1x84xf32> to vector<56x84xf32>
    %135 = arith.addf %132, %134 : vector<56x84xf32>
    %cst_170 = arith.constant 0.000000e+00 : f32
    %136 = vector.broadcast %cst_170 : f32 to vector<56x84xf32>
    %137 = arith.maximumf %135, %136 : vector<56x84xf32>
    %138 = vector.extract_strided_slice %68 {offsets = [0, 0], sizes = [40, 84], strides = [1, 1]} : vector<56x84xf32> to vector<40x84xf32>
    %c0_171 = arith.constant 0 : index
    %c0_172 = arith.constant 0 : index
    %c0_173 = arith.constant 0 : index
    %139 = vector.load %arg6[%c0_171, %c0_172, %c0_173] : memref<5x84x160xf32, #tpu.memory_space<vmem>>, vector<1x84x160xf32>
    %140 = vector.shape_cast %139 : vector<1x84x160xf32> to vector<84x160xf32>
    %cst_174 = arith.constant dense<0.000000e+00> : vector<40x160xf32>
    %141 = tpu.matmul %138, %140, %cst_174 {dimension_numbers = #tpu.dot_dimension_numbers<[1], [0], [0], [1], [0, 0, 1, 1], [], []>} : vector<40x84xf32>, vector<84x160xf32>, vector<40x160xf32> -> vector<40x160xf32>
    %142 = vector.extract_strided_slice %137 {offsets = [0, 0], sizes = [40, 84], strides = [1, 1]} : vector<56x84xf32> to vector<40x84xf32>
    %c1_175 = arith.constant 1 : index
    %c0_176 = arith.constant 0 : index
    %c0_177 = arith.constant 0 : index
    %143 = vector.load %arg6[%c1_175, %c0_176, %c0_177] : memref<5x84x160xf32, #tpu.memory_space<vmem>>, vector<1x84x160xf32>
    %144 = vector.shape_cast %143 : vector<1x84x160xf32> to vector<84x160xf32>
    %cst_178 = arith.constant dense<0.000000e+00> : vector<40x160xf32>
    %145 = tpu.matmul %142, %144, %cst_178 {dimension_numbers = #tpu.dot_dimension_numbers<[1], [0], [0], [1], [0, 0, 1, 1], [], []>} : vector<40x84xf32>, vector<84x160xf32>, vector<40x160xf32> -> vector<40x160xf32>
    %146 = arith.addf %141, %145 : vector<40x160xf32>
    %147 = vector.extract_strided_slice %68 {offsets = [8, 0], sizes = [40, 84], strides = [1, 1]} : vector<56x84xf32> to vector<40x84xf32>
    %c2_179 = arith.constant 2 : index
    %c0_180 = arith.constant 0 : index
    %c0_181 = arith.constant 0 : index
    %148 = vector.load %arg6[%c2_179, %c0_180, %c0_181] : memref<5x84x160xf32, #tpu.memory_space<vmem>>, vector<1x84x160xf32>
    %149 = vector.shape_cast %148 : vector<1x84x160xf32> to vector<84x160xf32>
    %cst_182 = arith.constant dense<0.000000e+00> : vector<40x160xf32>
    %150 = tpu.matmul %147, %149, %cst_182 {dimension_numbers = #tpu.dot_dimension_numbers<[1], [0], [0], [1], [0, 0, 1, 1], [], []>} : vector<40x84xf32>, vector<84x160xf32>, vector<40x160xf32> -> vector<40x160xf32>
    %151 = arith.addf %146, %150 : vector<40x160xf32>
    %152 = vector.extract_strided_slice %137 {offsets = [8, 0], sizes = [40, 84], strides = [1, 1]} : vector<56x84xf32> to vector<40x84xf32>
    %c3_183 = arith.constant 3 : index
    %c0_184 = arith.constant 0 : index
    %c0_185 = arith.constant 0 : index
    %153 = vector.load %arg6[%c3_183, %c0_184, %c0_185] : memref<5x84x160xf32, #tpu.memory_space<vmem>>, vector<1x84x160xf32>
    %154 = vector.shape_cast %153 : vector<1x84x160xf32> to vector<84x160xf32>
    %cst_186 = arith.constant dense<0.000000e+00> : vector<40x160xf32>
    %155 = tpu.matmul %152, %154, %cst_186 {dimension_numbers = #tpu.dot_dimension_numbers<[1], [0], [0], [1], [0, 0, 1, 1], [], []>} : vector<40x84xf32>, vector<84x160xf32>, vector<40x160xf32> -> vector<40x160xf32>
    %156 = arith.addf %151, %155 : vector<40x160xf32>
    %157 = vector.extract_strided_slice %68 {offsets = [16, 0], sizes = [40, 84], strides = [1, 1]} : vector<56x84xf32> to vector<40x84xf32>
    %c4_187 = arith.constant 4 : index
    %c0_188 = arith.constant 0 : index
    %c0_189 = arith.constant 0 : index
    %158 = vector.load %arg6[%c4_187, %c0_188, %c0_189] : memref<5x84x160xf32, #tpu.memory_space<vmem>>, vector<1x84x160xf32>
    %159 = vector.shape_cast %158 : vector<1x84x160xf32> to vector<84x160xf32>
    %cst_190 = arith.constant dense<0.000000e+00> : vector<40x160xf32>
    %160 = tpu.matmul %157, %159, %cst_190 {dimension_numbers = #tpu.dot_dimension_numbers<[1], [0], [0], [1], [0, 0, 1, 1], [], []>} : vector<40x84xf32>, vector<84x160xf32>, vector<40x160xf32> -> vector<40x160xf32>
    %161 = arith.addf %156, %160 : vector<40x160xf32>
    %162 = vector.extract_strided_slice %137 {offsets = [0, 0], sizes = [40, 84], strides = [1, 1]} : vector<56x84xf32> to vector<40x84xf32>
    %c0_191 = arith.constant 0 : index
    %c0_192 = arith.constant 0 : index
    %c0_193 = arith.constant 0 : index
    %163 = vector.load %arg6[%c0_191, %c0_192, %c0_193] : memref<5x84x160xf32, #tpu.memory_space<vmem>>, vector<1x84x160xf32>
    %164 = vector.shape_cast %163 : vector<1x84x160xf32> to vector<84x160xf32>
    %cst_194 = arith.constant dense<0.000000e+00> : vector<40x160xf32>
    %165 = tpu.matmul %162, %164, %cst_194 {dimension_numbers = #tpu.dot_dimension_numbers<[1], [0], [0], [1], [0, 0, 1, 1], [], []>} : vector<40x84xf32>, vector<84x160xf32>, vector<40x160xf32> -> vector<40x160xf32>
    %166 = vector.extract_strided_slice %68 {offsets = [8, 0], sizes = [40, 84], strides = [1, 1]} : vector<56x84xf32> to vector<40x84xf32>
    %c1_195 = arith.constant 1 : index
    %c0_196 = arith.constant 0 : index
    %c0_197 = arith.constant 0 : index
    %167 = vector.load %arg6[%c1_195, %c0_196, %c0_197] : memref<5x84x160xf32, #tpu.memory_space<vmem>>, vector<1x84x160xf32>
    %168 = vector.shape_cast %167 : vector<1x84x160xf32> to vector<84x160xf32>
    %cst_198 = arith.constant dense<0.000000e+00> : vector<40x160xf32>
    %169 = tpu.matmul %166, %168, %cst_198 {dimension_numbers = #tpu.dot_dimension_numbers<[1], [0], [0], [1], [0, 0, 1, 1], [], []>} : vector<40x84xf32>, vector<84x160xf32>, vector<40x160xf32> -> vector<40x160xf32>
    %170 = arith.addf %165, %169 : vector<40x160xf32>
    %171 = vector.extract_strided_slice %137 {offsets = [8, 0], sizes = [40, 84], strides = [1, 1]} : vector<56x84xf32> to vector<40x84xf32>
    %c2_199 = arith.constant 2 : index
    %c0_200 = arith.constant 0 : index
    %c0_201 = arith.constant 0 : index
    %172 = vector.load %arg6[%c2_199, %c0_200, %c0_201] : memref<5x84x160xf32, #tpu.memory_space<vmem>>, vector<1x84x160xf32>
    %173 = vector.shape_cast %172 : vector<1x84x160xf32> to vector<84x160xf32>
    %cst_202 = arith.constant dense<0.000000e+00> : vector<40x160xf32>
    %174 = tpu.matmul %171, %173, %cst_202 {dimension_numbers = #tpu.dot_dimension_numbers<[1], [0], [0], [1], [0, 0, 1, 1], [], []>} : vector<40x84xf32>, vector<84x160xf32>, vector<40x160xf32> -> vector<40x160xf32>
    %175 = arith.addf %170, %174 : vector<40x160xf32>
    %176 = vector.extract_strided_slice %68 {offsets = [16, 0], sizes = [40, 84], strides = [1, 1]} : vector<56x84xf32> to vector<40x84xf32>
    %c3_203 = arith.constant 3 : index
    %c0_204 = arith.constant 0 : index
    %c0_205 = arith.constant 0 : index
    %177 = vector.load %arg6[%c3_203, %c0_204, %c0_205] : memref<5x84x160xf32, #tpu.memory_space<vmem>>, vector<1x84x160xf32>
    %178 = vector.shape_cast %177 : vector<1x84x160xf32> to vector<84x160xf32>
    %cst_206 = arith.constant dense<0.000000e+00> : vector<40x160xf32>
    %179 = tpu.matmul %176, %178, %cst_206 {dimension_numbers = #tpu.dot_dimension_numbers<[1], [0], [0], [1], [0, 0, 1, 1], [], []>} : vector<40x84xf32>, vector<84x160xf32>, vector<40x160xf32> -> vector<40x160xf32>
    %180 = arith.addf %175, %179 : vector<40x160xf32>
    %181 = vector.extract_strided_slice %137 {offsets = [16, 0], sizes = [40, 84], strides = [1, 1]} : vector<56x84xf32> to vector<40x84xf32>
    %c4_207 = arith.constant 4 : index
    %c0_208 = arith.constant 0 : index
    %c0_209 = arith.constant 0 : index
    %182 = vector.load %arg6[%c4_207, %c0_208, %c0_209] : memref<5x84x160xf32, #tpu.memory_space<vmem>>, vector<1x84x160xf32>
    %183 = vector.shape_cast %182 : vector<1x84x160xf32> to vector<84x160xf32>
    %cst_210 = arith.constant dense<0.000000e+00> : vector<40x160xf32>
    %184 = tpu.matmul %181, %183, %cst_210 {dimension_numbers = #tpu.dot_dimension_numbers<[1], [0], [0], [1], [0, 0, 1, 1], [], []>} : vector<40x84xf32>, vector<84x160xf32>, vector<40x160xf32> -> vector<40x160xf32>
    %185 = arith.addf %180, %184 : vector<40x160xf32>
    %186 = arith.maximumf %161, %185 : vector<40x160xf32>
    %c0_211 = arith.constant 0 : index
    %c0_212 = arith.constant 0 : index
    %187 = vector.load %arg7[%c0_211, %c0_212] : memref<160x80xf32, #tpu.memory_space<vmem>>, vector<160x80xf32>
    %cst_213 = arith.constant dense<0.000000e+00> : vector<40x80xf32>
    %188 = tpu.matmul %186, %187, %cst_213 {dimension_numbers = #tpu.dot_dimension_numbers<[1], [0], [0], [1], [0, 0, 1, 1], [], []>} : vector<40x160xf32>, vector<160x80xf32>, vector<40x80xf32> -> vector<40x80xf32>
    %c0_214 = arith.constant 0 : index
    %c0_215 = arith.constant 0 : index
    %189 = vector.load %arg8[%c0_214, %c0_215] : memref<160x80xf32, #tpu.memory_space<vmem>>, vector<160x80xf32>
    %cst_216 = arith.constant dense<0.000000e+00> : vector<40x80xf32>
    %190 = tpu.matmul %186, %189, %cst_216 {dimension_numbers = #tpu.dot_dimension_numbers<[1], [0], [0], [1], [0, 0, 1, 1], [], []>} : vector<40x160xf32>, vector<160x80xf32>, vector<40x80xf32> -> vector<40x80xf32>
    %191 = arith.maximumf %188, %190 : vector<40x80xf32>
    %c0_217 = arith.constant 0 : index
    %c0_218 = arith.constant 0 : index
    %192 = vector.load %arg9[%c0_217, %c0_218] : memref<1x80xf32, #tpu.memory_space<vmem>>, vector<1x80xf32>
    %193 = vector.broadcast %192 : vector<1x80xf32> to vector<40x80xf32>
    %194 = arith.addf %191, %193 : vector<40x80xf32>
    %cst_219 = arith.constant 0.000000e+00 : f32
    %195 = vector.broadcast %cst_219 : f32 to vector<40x80xf32>
    %196 = arith.maximumf %194, %195 : vector<40x80xf32>
    %197 = vector.extract_strided_slice %196 {offsets = [0, 0], sizes = [8, 80], strides = [1, 1]} : vector<40x80xf32> to vector<8x80xf32>
    %c0_220 = arith.constant 0 : index
    %c0_221 = arith.constant 0 : index
    %c0_222 = arith.constant 0 : index
    %198 = vector.load %arg10[%c0_220, %c0_221, %c0_222] : memref<5x80x120xf32, #tpu.memory_space<vmem>>, vector<1x80x120xf32>
    %199 = vector.shape_cast %198 : vector<1x80x120xf32> to vector<80x120xf32>
    %cst_223 = arith.constant dense<0.000000e+00> : vector<8x120xf32>
    %200 = tpu.matmul %197, %199, %cst_223 {dimension_numbers = #tpu.dot_dimension_numbers<[1], [0], [0], [1], [0, 0, 1, 1], [], []>} : vector<8x80xf32>, vector<80x120xf32>, vector<8x120xf32> -> vector<8x120xf32>
    %201 = vector.extract_strided_slice %196 {offsets = [8, 0], sizes = [8, 80], strides = [1, 1]} : vector<40x80xf32> to vector<8x80xf32>
    %c1_224 = arith.constant 1 : index
    %c0_225 = arith.constant 0 : index
    %c0_226 = arith.constant 0 : index
    %202 = vector.load %arg10[%c1_224, %c0_225, %c0_226] : memref<5x80x120xf32, #tpu.memory_space<vmem>>, vector<1x80x120xf32>
    %203 = vector.shape_cast %202 : vector<1x80x120xf32> to vector<80x120xf32>
    %cst_227 = arith.constant dense<0.000000e+00> : vector<8x120xf32>
    %204 = tpu.matmul %201, %203, %cst_227 {dimension_numbers = #tpu.dot_dimension_numbers<[1], [0], [0], [1], [0, 0, 1, 1], [], []>} : vector<8x80xf32>, vector<80x120xf32>, vector<8x120xf32> -> vector<8x120xf32>
    %205 = arith.addf %200, %204 : vector<8x120xf32>
    %206 = vector.extract_strided_slice %196 {offsets = [16, 0], sizes = [8, 80], strides = [1, 1]} : vector<40x80xf32> to vector<8x80xf32>
    %c2_228 = arith.constant 2 : index
    %c0_229 = arith.constant 0 : index
    %c0_230 = arith.constant 0 : index
    %207 = vector.load %arg10[%c2_228, %c0_229, %c0_230] : memref<5x80x120xf32, #tpu.memory_space<vmem>>, vector<1x80x120xf32>
    %208 = vector.shape_cast %207 : vector<1x80x120xf32> to vector<80x120xf32>
    %cst_231 = arith.constant dense<0.000000e+00> : vector<8x120xf32>
    %209 = tpu.matmul %206, %208, %cst_231 {dimension_numbers = #tpu.dot_dimension_numbers<[1], [0], [0], [1], [0, 0, 1, 1], [], []>} : vector<8x80xf32>, vector<80x120xf32>, vector<8x120xf32> -> vector<8x120xf32>
    %210 = arith.addf %205, %209 : vector<8x120xf32>
    %211 = vector.extract_strided_slice %196 {offsets = [24, 0], sizes = [8, 80], strides = [1, 1]} : vector<40x80xf32> to vector<8x80xf32>
    %c3_232 = arith.constant 3 : index
    %c0_233 = arith.constant 0 : index
    %c0_234 = arith.constant 0 : index
    %212 = vector.load %arg10[%c3_232, %c0_233, %c0_234] : memref<5x80x120xf32, #tpu.memory_space<vmem>>, vector<1x80x120xf32>
    %213 = vector.shape_cast %212 : vector<1x80x120xf32> to vector<80x120xf32>
    %cst_235 = arith.constant dense<0.000000e+00> : vector<8x120xf32>
    %214 = tpu.matmul %211, %213, %cst_235 {dimension_numbers = #tpu.dot_dimension_numbers<[1], [0], [0], [1], [0, 0, 1, 1], [], []>} : vector<8x80xf32>, vector<80x120xf32>, vector<8x120xf32> -> vector<8x120xf32>
    %215 = arith.addf %210, %214 : vector<8x120xf32>
    %216 = vector.extract_strided_slice %196 {offsets = [32, 0], sizes = [8, 80], strides = [1, 1]} : vector<40x80xf32> to vector<8x80xf32>
    %c4_236 = arith.constant 4 : index
    %c0_237 = arith.constant 0 : index
    %c0_238 = arith.constant 0 : index
    %217 = vector.load %arg10[%c4_236, %c0_237, %c0_238] : memref<5x80x120xf32, #tpu.memory_space<vmem>>, vector<1x80x120xf32>
    %218 = vector.shape_cast %217 : vector<1x80x120xf32> to vector<80x120xf32>
    %cst_239 = arith.constant dense<0.000000e+00> : vector<8x120xf32>
    %219 = tpu.matmul %216, %218, %cst_239 {dimension_numbers = #tpu.dot_dimension_numbers<[1], [0], [0], [1], [0, 0, 1, 1], [], []>} : vector<8x80xf32>, vector<80x120xf32>, vector<8x120xf32> -> vector<8x120xf32>
    %220 = arith.addf %215, %219 : vector<8x120xf32>
    %c0_240 = arith.constant 0 : index
    %c0_241 = arith.constant 0 : index
    %221 = vector.load %arg11[%c0_240, %c0_241] : memref<1x120xf32, #tpu.memory_space<vmem>>, vector<1x120xf32>
    %222 = vector.broadcast %221 : vector<1x120xf32> to vector<8x120xf32>
    %223 = arith.addf %220, %222 : vector<8x120xf32>
    %cst_242 = arith.constant 0.000000e+00 : f32
    %224 = vector.broadcast %cst_242 : f32 to vector<8x120xf32>
    %225 = arith.maximumf %223, %224 : vector<8x120xf32>
    %c0_243 = arith.constant 0 : index
    %c0_244 = arith.constant 0 : index
    %226 = vector.load %arg12[%c0_243, %c0_244] : memref<120x84xf32, #tpu.memory_space<vmem>>, vector<120x84xf32>
    %cst_245 = arith.constant dense<0.000000e+00> : vector<8x84xf32>
    %227 = tpu.matmul %225, %226, %cst_245 {dimension_numbers = #tpu.dot_dimension_numbers<[1], [0], [0], [1], [0, 0, 1, 1], [], []>} : vector<8x120xf32>, vector<120x84xf32>, vector<8x84xf32> -> vector<8x84xf32>
    %c0_246 = arith.constant 0 : index
    %c0_247 = arith.constant 0 : index
    %228 = vector.load %arg13[%c0_246, %c0_247] : memref<1x84xf32, #tpu.memory_space<vmem>>, vector<1x84xf32>
    %229 = vector.broadcast %228 : vector<1x84xf32> to vector<8x84xf32>
    %230 = arith.addf %227, %229 : vector<8x84xf32>
    %cst_248 = arith.constant 0.000000e+00 : f32
    %231 = vector.broadcast %cst_248 : f32 to vector<8x84xf32>
    %232 = arith.maximumf %230, %231 : vector<8x84xf32>
    %c0_249 = arith.constant 0 : index
    %c0_250 = arith.constant 0 : index
    %233 = vector.load %arg14[%c0_249, %c0_250] : memref<84x10xf32, #tpu.memory_space<vmem>>, vector<84x10xf32>
    %cst_251 = arith.constant dense<0.000000e+00> : vector<8x10xf32>
    %234 = tpu.matmul %232, %233, %cst_251 {dimension_numbers = #tpu.dot_dimension_numbers<[1], [0], [0], [1], [0, 0, 1, 1], [], []>} : vector<8x84xf32>, vector<84x10xf32>, vector<8x10xf32> -> vector<8x10xf32>
    %c0_252 = arith.constant 0 : index
    %c0_253 = arith.constant 0 : index
    %235 = vector.load %arg15[%c0_252, %c0_253] : memref<1x10xf32, #tpu.memory_space<vmem>>, vector<1x10xf32>
    %236 = vector.broadcast %235 : vector<1x10xf32> to vector<8x10xf32>
    %237 = arith.addf %234, %236 : vector<8x10xf32>
    %c0_254 = arith.constant 0 : index
    %c0_255 = arith.constant 0 : index
    %c0_256 = arith.constant 0 : index
    %238 = vector.load %arg16[%c0_254, %c0_255, %c0_256] : memref<1x8x10xf32, #tpu.memory_space<vmem>>, vector<1x8x10xf32>
    %239 = vector.shape_cast %238 : vector<1x8x10xf32> to vector<8x10xf32>
    %240 = vector.shape_cast %237 : vector<8x10xf32> to vector<1x8x10xf32>
    tpu.vector_store %arg16[%c0_254, %c0_255, %c0_256], %240 {strides = array<i32>} : memref<1x8x10xf32, #tpu.memory_space<vmem>>, vector<1x8x10xf32>,
    return
  }
  func.func @transform_0(%arg0: i32) -> (i32, i32, i32, i32) {
    %c0_i32 = arith.constant 0 : i32
    %c0_i32_0 = arith.constant 0 : i32
    %c0_i32_1 = arith.constant 0 : i32
    %c0_i32_2 = arith.constant 0 : i32
    return %arg0, %c0_i32, %c0_i32_0, %c0_i32_1 : i32, i32, i32, i32
  }
  func.func @transform_1(%arg0: i32) -> (i32, i32, i32) {
    %c0_i32 = arith.constant 0 : i32
    %c0_i32_0 = arith.constant 0 : i32
    %c0_i32_1 = arith.constant 0 : i32
    %c0_i32_2 = arith.constant 0 : i32
    return %c0_i32, %c0_i32_0, %c0_i32_1 : i32, i32, i32
  }
  func.func @transform_2(%arg0: i32) -> (i32, i32) {
    %c0_i32 = arith.constant 0 : i32
    %c0_i32_0 = arith.constant 0 : i32
    %c0_i32_1 = arith.constant 0 : i32
    return %c0_i32, %c0_i32_0 : i32, i32
  }
  func.func @transform_3(%arg0: i32) -> (i32, i32) {
    %c0_i32 = arith.constant 0 : i32
    %c0_i32_0 = arith.constant 0 : i32
    %c0_i32_1 = arith.constant 0 : i32
    return %c0_i32, %c0_i32_0 : i32, i32
  }
  func.func @transform_4(%arg0: i32) -> (i32, i32) {
    %c0_i32 = arith.constant 0 : i32
    %c0_i32_0 = arith.constant 0 : i32
    %c0_i32_1 = arith.constant 0 : i32
    return %c0_i32, %c0_i32_0 : i32, i32
  }
  func.func @transform_5(%arg0: i32) -> (i32, i32, i32) {
    %c0_i32 = arith.constant 0 : i32
    %c0_i32_0 = arith.constant 0 : i32
    %c0_i32_1 = arith.constant 0 : i32
    %c0_i32_2 = arith.constant 0 : i32
    return %c0_i32, %c0_i32_0, %c0_i32_1 : i32, i32, i32
  }
  func.func @transform_6(%arg0: i32) -> (i32, i32) {
    %c0_i32 = arith.constant 0 : i32
    %c0_i32_0 = arith.constant 0 : i32
    %c0_i32_1 = arith.constant 0 : i32
    return %c0_i32, %c0_i32_0 : i32, i32
  }
  func.func @transform_7(%arg0: i32) -> (i32, i32) {
    %c0_i32 = arith.constant 0 : i32
    %c0_i32_0 = arith.constant 0 : i32
    %c0_i32_1 = arith.constant 0 : i32
    return %c0_i32, %c0_i32_0 : i32, i32
  }
  func.func @transform_8(%arg0: i32) -> (i32, i32) {
    %c0_i32 = arith.constant 0 : i32
    %c0_i32_0 = arith.constant 0 : i32
    %c0_i32_1 = arith.constant 0 : i32
    return %c0_i32, %c0_i32_0 : i32, i32
  }
  func.func @transform_9(%arg0: i32) -> (i32, i32, i32) {
    %c0_i32 = arith.constant 0 : i32
    %c0_i32_0 = arith.constant 0 : i32
    %c0_i32_1 = arith.constant 0 : i32
    %c0_i32_2 = arith.constant 0 : i32
    return %c0_i32, %c0_i32_0, %c0_i32_1 : i32, i32, i32
  }
  func.func @transform_10(%arg0: i32) -> (i32, i32) {
    %c0_i32 = arith.constant 0 : i32
    %c0_i32_0 = arith.constant 0 : i32
    %c0_i32_1 = arith.constant 0 : i32
    return %c0_i32, %c0_i32_0 : i32, i32
  }
  func.func @transform_11(%arg0: i32) -> (i32, i32) {
    %c0_i32 = arith.constant 0 : i32
    %c0_i32_0 = arith.constant 0 : i32
    %c0_i32_1 = arith.constant 0 : i32
    return %c0_i32, %c0_i32_0 : i32, i32
  }
  func.func @transform_12(%arg0: i32) -> (i32, i32) {
    %c0_i32 = arith.constant 0 : i32
    %c0_i32_0 = arith.constant 0 : i32
    %c0_i32_1 = arith.constant 0 : i32
    return %c0_i32, %c0_i32_0 : i32, i32
  }
  func.func @transform_13(%arg0: i32) -> (i32, i32) {
    %c0_i32 = arith.constant 0 : i32
    %c0_i32_0 = arith.constant 0 : i32
    %c0_i32_1 = arith.constant 0 : i32
    return %c0_i32, %c0_i32_0 : i32, i32
  }
  func.func @transform_14(%arg0: i32) -> (i32, i32) {
    %c0_i32 = arith.constant 0 : i32
    %c0_i32_0 = arith.constant 0 : i32
    %c0_i32_1 = arith.constant 0 : i32
    return %c0_i32, %c0_i32_0 : i32, i32
  }
  func.func @transform_15(%arg0: i32) -> (i32, i32, i32) {
    %c0_i32 = arith.constant 0 : i32
    %c0_i32_0 = arith.constant 0 : i32
    %c0_i32_1 = arith.constant 0 : i32
    return %arg0, %c0_i32, %c0_i32_0 : i32, i32, i32
  }
}

</mosaic_0001>

<bundles_post_ra>
// kernel: net_forward.1
= control target key start
LH: loop header
LB: loop body
LE: loop exit
PB: predicated region body
PF: predicated region fallthrough
CT: control target
= control target key end

     0   :  { %20 = vsyncpa [#allocation3], 0  ;;  %s11048_s0 = inlined_call_operand.vmem [shape: f32[2,4,64,96], index: 0, kind: input, shape index: {}]   ;;  %s11049_s1 = inlined_call_operand.vmem [shape: f32[5,96,168], index: 1, kind: input, shape index: {}]   ;;  %s11050_s2 = inlined_call_operand.vmem [shape: f32[168,84], index: 2, kind: input, shape index: {}]   ;;  %s11051_s3 = inlined_call_operand.vmem [shape: f32[168,84], index: 3, kind: input, shape index: {}]   ;;  %s11052_s4 = inlined_call_operand.vmem [shape: f32[1,84], index: 4, kind: input, shape index: {}]   ;;  %s11053_s5 = inlined_call_operand.vmem [shape: f32[5,84,160], index: 5, kind: input, shape index: {}]   ;;  %s11054_s6 = inlined_call_operand.vmem [shape: f32[160,80], index: 6, kind: input, shape index: {}]   ;;  %s11055_s7 = inlined_call_operand.vmem [shape: f32[160,80], index: 7, kind: input, shape index: {}]   ;;  %s11056_s8 = inlined_call_operand.vmem [shape: f32[1,80], index: 8, kind: input, shape index: {}]   ;;  %s11057_s9 = inlined_call_operand.vmem [shape: f32[5,80,120], index: 9, kind: input, shape index: {}]   ;;  %s11058_s10 = inlined_call_operand.vmem [shape: f32[1,120], index: 10, kind: input, shape index: {}]   ;;  %s11059_s11 = inlined_call_operand.vmem [shape: f32[120,84], index: 11, kind: input, shape index: {}]   ;;  %s11060_s12 = inlined_call_operand.vmem [shape: f32[1,84], index: 12, kind: input, shape index: {}]   ;;  %s11061_s13 = inlined_call_operand.vmem [shape: f32[84,10], index: 13, kind: input, shape index: {}]   ;;  %s11062_s14 = inlined_call_operand.vmem [shape: f32[1,10], index: 14, kind: input, shape index: {}]   ;;  %s11063_s15 = inlined_call_operand.hbm [shape: f32[2,8,10], index: 15, kind: output, shape index: {}]  }
   0x1   :  { %22 = vsyncpa [#allocation3 + $0x1], 0  ;;  %s8158_s18 = smov 0   ;;  %s8160_s19 = smov 0  }
   0x2   :  { %s8162_s20 = smov 0   ;;  %s8164_s21 = smov 0  }
   0x3 LB: > { %11147 = sst [smem:[#allocation5_spill]] %s8060_s18  ;;  %s8179_s22 = sadd.s32 4294967295, %s8072_s21   ;;  %s8072_s21 = sphi %s8164_s21, %s11252_s21   ;;  %s8068_s20 = sphi %s8162_s20, %s11254_s20   ;;  %s8064_s19 = sphi %s8160_s19, %s11256_s19   ;;  %s8060_s18 = sphi %s8158_s18, %s11255_s18  }
   0x4   : > { %11148 = sst [smem:[#allocation6_spill]] %s8068_s20  ;;  %s5879_s23 = sadd.s32 4294967294, %s8072_s21  }
   0x5   : > { %s8183_s24 = sadd.s32 1, %s8072_s21   ;;  %s355_s25 = sadd.s32 1, %s8068_s20 }
   0x6   : > { %11149 = sst [smem:[#allocation7_spill]] %s8183_s24  ;;  %s352_s26 = ssub.s32 %s8072_s21, %s8183_s24 }
   0x7   : > { %p365_p0 = scmp.ne.s32.totalorder %s8068_s20, %s8064_s19  ;;  %p353_p1 = scmp.eq.s32.totalorder %s352_s26, 0 }
   0x8   : > { %p366_p2 = scmp.eq.s32.totalorder %s8179_s22, 1  ;;  %p371_p3 = scmp.ne.s32.totalorder %s8064_s19, %s8060_s18 }
   0x9   : > { %p372_p4 = scmp.eq.s32.totalorder %s5879_s23, 1  ;;  %p5882_p7 = scmp.ge.s32.totalorder %s8072_s21, 1 }
   0xa   : > { %s8194_s27 = scalar_select %p353_p1, %s8068_s20, %s355_s25  }
   0xb   : > { %p8196_p5 = por %p366_p2, %p365_p0  ;;  %p8200_p6 = por %p372_p4, %p371_p3 }
   0xc   : > { %11150 = sst [smem:[#allocation8_spill]] %s8194_s27  ;;  %p440_p8 = scmp.lt.s32.totalorder %s8072_s21, 3 }
   0xd   : > { %s11152_s29 = scalar_select %p8200_p6, 1, 0 }
   0xe   : > { %p441_p9 = pnand %p5882_p7, %p440_p8 }
   0xf   : > { %11153 = sst [smem:[#allocation9_spill]] %s11152_s29 }
  0x10   : > { %444 = sbr.rel (%p441_p9) target bundleno = 2182 (0x886), region = 80 }
  0x17   : > { %v5894_v0 = vld [vmem:[%s11049_s1 + $0xc8] sm:$0xff]  ;;  %v5896_v1 = vld [vmem:[%s11049_s1 + $0xd8] sm:$0xff]  ;;  %v5893_v2 = vld [vmem:[%s11049_s1 + $0xc0] sm:$0xff]  ;;  %v11083_v7 = vmov 0.0   ;;  %p488_p10 = scmp.lt.s32.totalorder %s8179_s22, 1  ;;  %vm557_vm0 = vcmask 785408  }
  0x18   : > { %v8215_v3 = vpack.c.bf16 %v5896_v1, %v5894_v0  ;;  %v5895_v4 = vld [vmem:[%s11049_s1 + $0xd0] sm:$0xff]  ;;  %v5898_v5 = vld [vmem:[%s11049_s1 + $0xe8] sm:$0xff]  ;;  %v5900_v6 = vld [vmem:[%s11049_s1 + $0xf8] sm:$0xff]  ;;  %643 = vmatprep.mubr.f32.mxu0 %v11083_v7  ;;  %1402 = vmatprep.mubr.f32.mxu1 %v11083_v7  ;;  %vm1978_vm1 = vcmask 326656   ;;  %vm3776_vm2 = vcmask 1043456   ;;  %vm3760_vm3 = vcmask 687104  }
  0x19   : > { %v8228_v8 = vpack.c.bf16 %v5895_v4, %v5893_v2  ;;  %v8230_v9 = vpack.c.bf16 %v5900_v6, %v5898_v5  ;;  %v5897_v10 = vld [vmem:[%s11049_s1 + $0xe0] sm:$0xff]  ;;  %v5899_v11 = vld [vmem:[%s11049_s1 + $0xf0] sm:$0xff]  ;;  %v5902_v12 = vld [vmem:[%s11049_s1 + $0x108] sm:$0xff]  ;;  %s489_s27 = scalar_select %p488_p10, %s8179_s22, 1  ;;  %vm4943_vm4 = vcmask 261120   ;;  %vm8076_vm5 = vmmov 0  }
  0x1a   : > { %6675 = vmatprep.subr.bf16.mxu0 %v8215_v3  ;;  %6795 = vmatprep.subr.bf16.mxu1 %v8215_v3  ;;  %v5904_v13 = vld [vmem:[%s11049_s1 + $0x118] sm:$0xff]  ;;  %v8248_v14 = vpack.c.bf16 %v5899_v11, %v5897_v10  ;;  %v5901_v16 = vld [vmem:[%s11049_s1 + $0x100] sm:$0xff]  ;;  %v5903_v17 = vld [vmem:[%s11049_s1 + $0x110] sm:$0xff]  ;;  %vm5202_vm6 = vcmask 654336   ;;  %vm5635_vm7 = vcmask 982016   ;;  %s6414_s30 = sshll.u32 %s8179_s22, 7 }
  0x1b   : > { %6677 = vmatpush1.bf16.msra.mxu0 %v8228_v8  ;;  %6797 = vmatpush1.bf16.msra.mxu1 %v8228_v8  ;;  %v8252_v15 = vpack.c.bf16 %v5904_v13, %v5902_v12  ;;  %v5906_v18 = vld [vmem:[%s11049_s1 + $0x128] sm:$0xff]  ;;  %v5908_v19 = vld [vmem:[%s11049_s1 + $0x138] sm:$0xff]  ;;  %v8268_v20 = vpack.c.bf16 %v5903_v17, %v5901_v16  ;;  %v5905_v22 = vld [vmem:[%s11049_s1 + $0x120] sm:$0xff]  ;;  %s6417_s26 = sshll.u32 %s489_s27, 8  ;;  %s485_s27 = sand.u32 1, %s8064_s19   ;;  %vm5804_vm8 = vcmask 80896  }
  0x1c   : > { %6679 = vmatprep.subr.bf16.mxu0 %v8230_v9  ;;  %6799 = vmatprep.subr.bf16.mxu1 %v8230_v9  ;;  %v8272_v21 = vpack.c.bf16 %v5908_v19, %v5906_v18  ;;  %v5907_v23 = vld [vmem:[%s11049_s1 + $0x130] sm:$0xff]  ;;  %v5910_v24 = vld [vmem:[%s11049_s1 + $0x148] sm:$0xff]  ;;  %v5912_v25 = vld [vmem:[%s11049_s1 + $0x158] sm:$0xff]  ;;  %s8337_s29 = scalar_lea.vmem %s11048_s0, %s6417_s26  ;;  %s5883_s23 = sshll.u32 %s485_s27, 3 }
  0x1d   : > { %v8289_v26 = vpack.c.bf16 %v5907_v23, %v5905_v22  ;;  %v8293_v27 = vpack.c.bf16 %v5912_v25, %v5910_v24  ;;  %v5909_v28 = vld [vmem:[%s11049_s1 + $0x140] sm:$0xff]  ;;  %v5911_v29 = vld [vmem:[%s11049_s1 + $0x150] sm:$0xff]  ;;  %v5914_v30 = vld [vmem:[%s11049_s1 + $0x168] sm:$0xff]  ;;  %s487_s16 = scalar_lea.vmem [#allocation2], %s5883_s23  ;;  %s11006_s26 = scalar_lea.hbm %s11063_s15, %s6414_s30 }
  0x1e   : > { %v5916_v31 = vld [vmem:[%s11049_s1 + $0x178] sm:$0xff]  ;;  %v8310_v32 = vpack.c.bf16 %v5911_v29, %v5909_v28  ;;  %v5913_v34 = vld [vmem:[%s11049_s1 + $0x160] sm:$0xff]  ;;  %v5915_v35 = vld [vmem:[%s11049_s1 + $0x170] sm:$0xff]  ;;  %s5820_s17 = sshll.u32 %s487_s16, 4  ;;  %s5807_s18 = scalar_lea.sflag [#allocation3], %s485_s27  ;;  %s11008_s17 = int_to_ptr.vmem [resolvable:$true] %s5820_s17 }
  0x1f   : > { %6681 = vmatpush1.bf16.msra.mxu0 %v8248_v14  ;;  %6801 = vmatpush1.bf16.msra.mxu1 %v8248_v14  ;;  %v8314_v33 = vpack.c.bf16 %v5916_v31, %v5914_v30  ;;  %v501_v36 = vld [vmem:[%s11049_s1 + $0x8] sm:$0xff]  ;;  %v503_v37 = vld [vmem:[%s11049_s1 + $0x18] sm:$0xff]  ;;  %v8330_v38 = vpack.c.bf16 %v5915_v35, %v5913_v34  ;;  %v500_v40 = vld [vmem:[%s11049_s1] sm:$0xff]  ;;  %s8077_s22 = smov [#allocation2]  }
  0x20   : > { %6683 = vmatprep.subr.bf16.mxu0 %v8252_v15  ;;  %6803 = vmatprep.subr.bf16.mxu1 %v8252_v15  ;;  %v8339_v39 = vpack.c.bf16 %v503_v37, %v501_v36  ;;  %v502_v41 = vld [vmem:[%s11049_s1 + $0x10] sm:$0xff]  ;;  %v505_v42 = vld [vmem:[%s11049_s1 + $0x28] sm:$0xff]  ;;  %v507_v43 = vld [vmem:[%s11049_s1 + $0x38] sm:$0xff]  ;;  %s8014_s23 = sshll.u32 %s8077_s22, 4  ;;  %s8015_s23 = int_to_ptr.vmem [resolvable:$false] %s8014_s23 }
  0x21   : > { %v8356_v44 = vld [vmem:[%s8337_s29 + $0x40] sm:$0xff]  ;;  %v8361_v46 = vpack.c.bf16 %v502_v41, %v500_v40  ;;  %v506_v48 = vld [vmem:[%s11049_s1 + $0x30] sm:$0xff]  ;;  %v8371_v49 = vpack.c.bf16 %v507_v43, %v505_v42  ;;  %v509_v50 = vld [vmem:[%s11049_s1 + $0x48] sm:$0xff]  ;;  %s8016_s25 = scalar_lea.vmem %s8015_s23, 256  ;;  %p8017_p0 = scmp.lt.s32.totalorder %s11008_s17, %s8015_s23 }
  0x22   : > { %v8359_v45 = vld [vmem:[%s8337_s29 + $0x80] sm:$0xff]  ;;  %v511_v51 = vld [vmem:[%s11049_s1 + $0x58] sm:$0xff]  ;;  %v8386_v52 = vld [vmem:[%s8337_s29 + $0x48] sm:$0xff] }
  0x23   : > { %6685 = vmatpush1.bf16.msra.mxu0 %v8268_v20  ;;  %6805 = vmatpush1.bf16.msra.mxu1 %v8268_v20  ;;  %v504_v47 = vld [vmem:[%s11049_s1 + $0x20] sm:$0xff]  ;;  %v8389_v53 = vld [vmem:[%s8337_s29 + $0x88] sm:$0xff]  ;;  %v8397_v55 = vpack.c.bf16 %v511_v51, %v509_v50  ;;  %v510_v57 = vld [vmem:[%s11049_s1 + $0x50] sm:$0xff] }
  0x24   : > { %6687 = vmatprep.subr.bf16.mxu0 %v8272_v21  ;;  %6807 = vmatprep.subr.bf16.mxu1 %v8272_v21  ;;  %v8391_v54 = vpack.c.bf16 %v506_v48, %v504_v47  ;;  %v508_v56 = vld [vmem:[%s11049_s1 + $0x40] sm:$0xff]  ;;  %v513_v58 = vld [vmem:[%s11049_s1 + $0x68] sm:$0xff]  ;;  %v515_v59 = vld [vmem:[%s11049_s1 + $0x78] sm:$0xff] }
  0x25   : > { %v8418_v60 = vld [vmem:[%s8337_s29 + $0x50] sm:$0xff]  ;;  %v8425_v62 = vpack.c.bf16 %v510_v57, %v508_v56  ;;  %v8429_v63 = vpack.c.bf16 %v515_v59, %v513_v58  ;;  %v512_v0 = vld [vmem:[%s11049_s1 + $0x60] sm:$0xff]  ;;  %v517_v2 = vld [vmem:[%s11049_s1 + $0x88] sm:$0xff] }
  0x26   : > { %v8421_v61 = vld [vmem:[%s8337_s29 + $0x90] sm:$0xff]  ;;  %v519_v4 = vld [vmem:[%s11049_s1 + $0x98] sm:$0xff]  ;;  %v516_v12 = vld [vmem:[%s11049_s1 + $0x80] sm:$0xff] }
  0x27   : > { %6689 = vmatpush1.bf16.msra.mxu0 %v8289_v26  ;;  %6809 = vmatpush1.bf16.msra.mxu1 %v8289_v26  ;;  %v514_v1 = vld [vmem:[%s11049_s1 + $0x70] sm:$0xff]  ;;  %v8450_v5 = vld [vmem:[%s8337_s29 + $0x58] sm:$0xff]  ;;  %v8461_v11 = vpack.c.bf16 %v519_v4, %v517_v2  ;;  %v521_v16 = vld [vmem:[%s11049_s1 + $0xa8] sm:$0xff] }
  0x28   : > { %6691 = vmatprep.subr.bf16.mxu0 %v8293_v27  ;;  %6811 = vmatprep.subr.bf16.mxu1 %v8293_v27  ;;  %v8453_v6 = vld [vmem:[%s8337_s29 + $0x98] sm:$0xff]  ;;  %v8457_v10 = vpack.c.bf16 %v514_v1, %v512_v0  ;;  %v518_v13 = vld [vmem:[%s11049_s1 + $0x90] sm:$0xff]  ;;  %v8482_v18 = vld [vmem:[%s8337_s29 + $0x60] sm:$0xff] }
  0x29   : > { %v523_v17 = vld [vmem:[%s11049_s1 + $0xb8] sm:$0xff]  ;;  %v8485_v19 = vld [vmem:[%s8337_s29 + $0xa0] sm:$0xff]  ;;  %v8489_v22 = vpack.c.bf16 %v518_v13, %v516_v12  ;;  %v522_v25 = vld [vmem:[%s11049_s1 + $0xb0] sm:$0xff] }
  0x2a   : > { %v8493_v23 = vpack.c.bf16 %v523_v17, %v521_v16  ;;  %v520_v24 = vld [vmem:[%s11049_s1 + $0xa0] sm:$0xff]  ;;  %v5939_v28 = vld [vmem:[%s11049_s1 + $0x188] sm:$0xff]  ;;  %v5941_v29 = vld [vmem:[%s11049_s1 + $0x198] sm:$0xff] }
  0x2b   : > { %6693 = vmatpush1.bf16.msra.mxu0 %v8310_v32  ;;  %6813 = vmatpush1.bf16.msra.mxu1 %v8310_v32  ;;  %v8514_v30 = vld [vmem:[%s8337_s29 + $0x68] sm:$0xff]  ;;  %v8521_v34 = vpack.c.bf16 %v522_v25, %v520_v24  ;;  %v8525_v35 = vpack.c.bf16 %v5941_v29, %v5939_v28  ;;  %v8534_v36 = vld [vmem:[%s8337_s29 + $0x70] sm:$0xff]  ;;  %v5938_v40 = vld [vmem:[%s11049_s1 + $0x180] sm:$0xff] }
  0x2c   : > { %6695 = vmatprep.subr.bf16.mxu0 %v8314_v33  ;;  %6815 = vmatprep.subr.bf16.mxu1 %v8314_v33  ;;  %v8517_v31 = vld [vmem:[%s8337_s29 + $0xa8] sm:$0xff]  ;;  %v8537_v37 = vld [vmem:[%s8337_s29 + $0xb0] sm:$0xff]  ;;  %v5945_v43 = vld [vmem:[%s11049_s1 + $0x1b8] sm:$0xff] }
  0x2d   : > { %v5940_v41 = vld [vmem:[%s11049_s1 + $0x190] sm:$0xff]  ;;  %v5943_v42 = vld [vmem:[%s11049_s1 + $0x1a8] sm:$0xff]  ;;  %v493_v47 = vld [vmem:[%s8337_s29] sm:$0xff] }
  0x2e   : > { %v8562_v48 = vpack.c.bf16 %v5940_v41, %v5938_v40  ;;  %v5942_v50 = vld [vmem:[%s11049_s1 + $0x1a0] sm:$0xff]  ;;  %v5944_v51 = vld [vmem:[%s11049_s1 + $0x1b0] sm:$0xff]  ;;  %v8570_v56 = vpack.c.bf16 %v5945_v43, %v5943_v42  ;;  %v5947_v57 = vld [vmem:[%s11049_s1 + $0x1c8] sm:$0xff] }
  0x2f   : > { %6697 = vmatpush1.bf16.msra.mxu0 %v8330_v38  ;;  %6817 = vmatpush1.bf16.msra.mxu1 %v8330_v38  ;;  %v5949_v58 = vld [vmem:[%s11049_s1 + $0x1d8] sm:$0xff]  ;;  %v8584_v59 = vld [vmem:[%s8337_s29 + $0x8] sm:$0xff]  ;;  %v8586_v0 = vpack.c.bf16 %v5944_v51, %v5942_v50  ;;  %v5946_v1 = vld [vmem:[%s11049_s1 + $0x1c0] sm:$0xff] }
  0x30   : > { %6699 = vmatprep.subr.bf16.mxu0 %v8339_v39  ;;  %6819 = vmatprep.subr.bf16.mxu1 %v8339_v39  ;;  %v5948_v2 = vld [vmem:[%s11049_s1 + $0x1d0] sm:$0xff]  ;;  %v5951_v4 = vld [vmem:[%s11049_s1 + $0x1e8] sm:$0xff]  ;;  %v5953_v12 = vld [vmem:[%s11049_s1 + $0x1f8] sm:$0xff] }
  0x31   : > { %v8613_v13 = vld [vmem:[%s8337_s29 + $0x10] sm:$0xff]  ;;  %v8617_v16 = vpack.c.bf16 %v5948_v2, %v5946_v1  ;;  %v8621_v17 = vpack.c.bf16 %v5953_v12, %v5951_v4  ;;  %v5950_v24 = vld [vmem:[%s11049_s1 + $0x1e0] sm:$0xff]  ;;  %v5955_v28 = vld [vmem:[%s11049_s1 + $0x208] sm:$0xff] }
  0x32   : > { %5917 = vmatmul.mubr.msk.f32.vlgmr.msra.gmra.mrb[0].mxu0 %vm557_vm0, %v8356_v44  ;;  %6038 = vmatmul.mubr.msk.f32.vlgmr.msra.gmra.mrb[0].mxu1 %vm557_vm0, %v8359_v45  ;;  %v5952_v25 = vld [vmem:[%s11049_s1 + $0x1f0] sm:$0xff]  ;;  %v5957_v29 = vld [vmem:[%s11049_s1 + $0x218] sm:$0xff]  ;;  %v5954_v43 = vld [vmem:[%s11049_s1 + $0x200] sm:$0xff] }
  0x33   : > { %6701 = vmatpush1.bf16.msra.mxu0 %v8361_v46  ;;  %6821 = vmatpush1.bf16.msra.mxu1 %v8361_v46  ;;  %v8642_v40 = vld [vmem:[%s8337_s29 + $0x18] sm:$0xff]  ;;  %v8646_v41 = vpack.c.bf16 %v5952_v25, %v5950_v24  ;;  %v8650_v42 = vpack.c.bf16 %v5957_v29, %v5955_v28  ;;  %v5959_v50 = vld [vmem:[%s11049_s1 + $0x228] sm:$0xff]  ;;  %v5958_v2 = vld [vmem:[%s11049_s1 + $0x220] sm:$0xff] }
  0x34   : > { %649 = vmatprep.mubr.f32.mxu0 %v11083_v7  ;;  %1408 = vmatprep.mubr.f32.mxu1 %v11083_v7  ;;  %v5961_v51 = vld [vmem:[%s11049_s1 + $0x238] sm:$0xff]  ;;  %v5960_v4 = vld [vmem:[%s11049_s1 + $0x230] sm:$0xff]  ;;  %v5977_v12 = vld [vmem:[%s11049_s1 + $0x248] sm:$0xff] }
  0x35   : > { %6703 = vmatprep.subr.bf16.mxu0 %v8371_v49  ;;  %6823 = vmatprep.subr.bf16.mxu1 %v8371_v49  ;;  %v8679_v1 = vpack.c.bf16 %v5961_v51, %v5959_v50  ;;  %v5979_v24 = vld [vmem:[%s11049_s1 + $0x258] sm:$0xff]  ;;  %v8700_v25 = vld [vmem:[%s8337_s29 + $0x28] sm:$0xff]  ;;  %v8704_v28 = vpack.c.bf16 %v5960_v4, %v5958_v2  ;;  %v5978_v50 = vld [vmem:[%s11049_s1 + $0x250] sm:$0xff] }
  0x36   : > { %5918 = vmatmul.mubr.msk.f32.gmra.mrb[2].mxu0 %vm557_vm0, %v8386_v52  ;;  %6039 = vmatmul.mubr.msk.f32.gmra.mrb[2].mxu1 %vm557_vm0, %v8389_v53  ;;  %v8708_v29 = vpack.c.bf16 %v5979_v24, %v5977_v12  ;;  %v5981_v51 = vld [vmem:[%s11049_s1 + $0x268] sm:$0xff]  ;;  %v5983_v2 = vld [vmem:[%s11049_s1 + $0x278] sm:$0xff]  ;;  %v8742_v4 = vld [vmem:[%s8337_s29 + $0xc0] sm:$0xff] }
  0x37   : > { %655 = vmatprep.mubr.f32.mxu0 %v11083_v7  ;;  %6705 = vmatpush1.bf16.msra.mxu0 %v8391_v54  ;;  %11155 = vst [vmem:[#allocation11_spill] sm:$0xff] %v8679_v1  ;;  %11156 = vst [vmem:[#allocation12_spill] sm:$0xff] %v8704_v28  ;;  %v5980_v24 = vld [vmem:[%s11049_s1 + $0x260] sm:$0xff] }
  0x38   : > { %1414 = vmatprep.mubr.f32.mxu1 %v11083_v7  ;;  %6825 = vmatpush1.bf16.msra.mxu1 %v8391_v54  ;;  %11157 = vst [vmem:[#allocation13_spill] sm:$0xff] %v8708_v29 }
  0x39   : > { %6707 = vmatprep.subr.bf16.mxu0 %v8397_v55  ;;  %6827 = vmatprep.subr.bf16.mxu1 %v8397_v55 }
  0x3a   : > { %5919 = vmatmul.mubr.msk.f32.gmra.mrb[4].mxu0 %vm557_vm0, %v8418_v60  ;;  %6040 = vmatmul.mubr.msk.f32.gmra.mrb[4].mxu1 %vm557_vm0, %v8421_v61 }
  0x3b   : > { %661 = vmatprep.mubr.f32.mxu0 %v11083_v7  ;;  %1420 = vmatprep.mubr.f32.mxu1 %v11083_v7 }
  0x3c   : > { %6709 = vmatpush1.bf16.msra.mxu0 %v8425_v62  ;;  %6829 = vmatpush1.bf16.msra.mxu1 %v8425_v62 }
  0x3d   : > { %6711 = vmatprep.subr.bf16.mxu0 %v8429_v63  ;;  %6831 = vmatprep.subr.bf16.mxu1 %v8429_v63 }
  0x3e   : > { %5920 = vmatmul.mubr.msk.f32.gmra.mrb[6].mxu0 %vm557_vm0, %v8450_v5  ;;  %6041 = vmatmul.mubr.msk.f32.gmra.mrb[6].mxu1 %vm557_vm0, %v8453_v6 }
  0x3f   : > { %667 = vmatprep.mubr.f32.mxu0 %v11083_v7  ;;  %1426 = vmatprep.mubr.f32.mxu1 %v11083_v7 }
  0x40   : > { %6713 = vmatpush1.bf16.msra.mxu0 %v8457_v10  ;;  %6833 = vmatpush1.bf16.msra.mxu1 %v8457_v10 }
  0x41   : > { %6715 = vmatprep.subr.bf16.mxu0 %v8461_v11  ;;  %6835 = vmatprep.subr.bf16.mxu1 %v8461_v11 }
  0x42   : > { %5921 = vmatmul.mubr.msk.f32.gmra.mrb[8].mxu0 %vm557_vm0, %v8482_v18  ;;  %6042 = vmatmul.mubr.msk.f32.gmra.mrb[8].mxu1 %vm557_vm0, %v8485_v19 }
  0x43   : > { %673 = vmatprep.mubr.f32.mxu0 %v11083_v7  ;;  %1432 = vmatprep.mubr.f32.mxu1 %v11083_v7 }
  0x44   : > { %6717 = vmatpush1.bf16.msra.mxu0 %v8489_v22  ;;  %6837 = vmatpush1.bf16.msra.mxu1 %v8489_v22 }
  0x45   : > { %6719 = vmatprep.subr.bf16.mxu0 %v8493_v23  ;;  %6839 = vmatprep.subr.bf16.mxu1 %v8493_v23 }
  0x46   : > { %5922 = vmatmul.mubr.msk.f32.gmra.mrb[10].mxu0 %vm557_vm0, %v8514_v30  ;;  %6043 = vmatmul.mubr.msk.f32.gmra.mrb[10].mxu1 %vm557_vm0, %v8517_v31 }
  0x47   : > { %679 = vmatprep.mubr.f32.mxu0 %v11083_v7  ;;  %1438 = vmatprep.mubr.f32.mxu1 %v11083_v7 }
  0x48   : > { %6721 = vmatpush1.bf16.msra.mxu0 %v8521_v34  ;;  %6841 = vmatpush1.bf16.msra.mxu1 %v8521_v34 }
  0x49   : > { %6723 = vmatprep.subr.bf16.mxu0 %v8525_v35  ;;  %6843 = vmatprep.subr.bf16.mxu1 %v8525_v35 }
  0x4a   : > { %5923 = vmatmul.mubr.msk.f32.gmra.mrb[12].mxu0 %vm557_vm0, %v8534_v36  ;;  %6044 = vmatmul.mubr.msk.f32.gmra.mrb[12].mxu1 %vm557_vm0, %v8537_v37 }
  0x4b   : > { %771 = vmatprep.mubr.f32.mxu0 %v11083_v7  ;;  %1509 = vmatprep.mubr.f32.mxu1 %v11083_v7 }
  0x4e   : > { %5924 = vmatmul.mubr.msk.f32.vlgmr.msra.gmra.mrb[0].mxu0 %vm557_vm0, %v493_v47  ;;  %6045 = vmatmul.mubr.msk.f32.vlgmr.msra.gmra.mrb[0].mxu1 %vm557_vm0, %v8356_v44  ;;  %v8592_v44 = vpack.c.bf16 %v5949_v58, %v5947_v57  ;;  %v5956_v47 = vld [vmem:[%s11049_s1 + $0x210] sm:$0xff]  ;;  %v8671_v57 = vld [vmem:[%s8337_s29 + $0x20] sm:$0xff] }
  0x4f   : > { %6725 = vmatpush1.bf16.msra.mxu0 %v8562_v48  ;;  %6845 = vmatpush1.bf16.msra.mxu1 %v8562_v48  ;;  %v8675_v58 = vpack.c.bf16 %v5956_v47, %v5954_v43  ;;  %v8717_v43 = vld [vmem:[%s8337_s29 + $0x30] sm:$0xff]  ;;  %v5976_v47 = vld [vmem:[%s11049_s1 + $0x240] sm:$0xff] }
  0x50   : > { %777 = vmatprep.mubr.f32.mxu0 %v11083_v7  ;;  %1515 = vmatprep.mubr.f32.mxu1 %v11083_v7  ;;  %v8744_v12 = vpack.c.bf16 %v5978_v50, %v5976_v47  ;;  %v5985_v47 = vld [vmem:[%s11049_s1 + $0x288] sm:$0xff]  ;;  %v5987_v50 = vld [vmem:[%s11049_s1 + $0x298] sm:$0xff] }
  0x51   : > { %6727 = vmatprep.subr.bf16.mxu0 %v8570_v56  ;;  %6847 = vmatprep.subr.bf16.mxu1 %v8570_v56  ;;  %11154 = vst [vmem:[#allocation10_spill] sm:$0xff] %v8675_v58 }
  0x52   : > { %5925 = vmatmul.mubr.msk.f32.gmra.mrb[2].mxu0 %vm557_vm0, %v8584_v59  ;;  %6046 = vmatmul.mubr.msk.f32.gmra.mrb[2].mxu1 %vm557_vm0, %v8386_v52  ;;  %11158 = vst [vmem:[#allocation14_spill] sm:$0xff] %v8744_v12 }
  0x53   : > { %783 = vmatprep.mubr.f32.mxu0 %v11083_v7  ;;  %6729 = vmatpush1.bf16.msra.mxu0 %v8586_v0 }
  0x54   : > { %1521 = vmatprep.mubr.f32.mxu1 %v11083_v7  ;;  %6849 = vmatpush1.bf16.msra.mxu1 %v8586_v0 }
  0x55   : > { %6731 = vmatprep.subr.bf16.mxu0 %v8592_v44  ;;  %6851 = vmatprep.subr.bf16.mxu1 %v8592_v44 }
  0x56   : > { %5926 = vmatmul.mubr.msk.f32.gmra.mrb[4].mxu0 %vm557_vm0, %v8613_v13  ;;  %6047 = vmatmul.mubr.msk.f32.gmra.mrb[4].mxu1 %vm557_vm0, %v8418_v60 }
  0x57   : > { %789 = vmatprep.mubr.f32.mxu0 %v11083_v7  ;;  %1527 = vmatprep.mubr.f32.mxu1 %v11083_v7 }
  0x58   : > { %6733 = vmatpush1.bf16.msra.mxu0 %v8617_v16  ;;  %6853 = vmatpush1.bf16.msra.mxu1 %v8617_v16 }
  0x59   : > { %6735 = vmatprep.subr.bf16.mxu0 %v8621_v17  ;;  %6855 = vmatprep.subr.bf16.mxu1 %v8621_v17 }
  0x5a   : > { %5927 = vmatmul.mubr.msk.f32.gmra.mrb[6].mxu0 %vm557_vm0, %v8642_v40  ;;  %6048 = vmatmul.mubr.msk.f32.gmra.mrb[6].mxu1 %vm557_vm0, %v8450_v5 }
  0x5b   : > { %795 = vmatprep.mubr.f32.mxu0 %v11083_v7  ;;  %1533 = vmatprep.mubr.f32.mxu1 %v11083_v7 }
  0x5c   : > { %6737 = vmatpush1.bf16.msra.mxu0 %v8646_v41  ;;  %6857 = vmatpush1.bf16.msra.mxu1 %v8646_v41 }
  0x5d   : > { %6739 = vmatprep.subr.bf16.mxu0 %v8650_v42  ;;  %6859 = vmatprep.subr.bf16.mxu1 %v8650_v42 }
  0x5e   : > { %5928 = vmatmul.mubr.msk.f32.gmra.mrb[8].mxu0 %vm557_vm0, %v8671_v57  ;;  %6049 = vmatmul.mubr.msk.f32.gmra.mrb[8].mxu1 %vm557_vm0, %v8482_v18 }
  0x5f   : > { %801 = vmatprep.mubr.f32.mxu0 %v11083_v7  ;;  %1539 = vmatprep.mubr.f32.mxu1 %v11083_v7 }
  0x60   : > { %6741 = vmatpush1.bf16.msra.mxu0 %v8675_v58  ;;  %6861 = vmatpush1.bf16.msra.mxu1 %v8675_v58  ;;  %v5990_v58 = vld [vmem:[%s11049_s1 + $0x2b0] sm:$0xff] }
  0x61   : > { %6743 = vmatprep.subr.bf16.mxu0 %v8679_v1  ;;  %6863 = vmatprep.subr.bf16.mxu1 %v8679_v1  ;;  %v5984_v1 = vld [vmem:[%s11049_s1 + $0x280] sm:$0xff] }
  0x62   : > { %5929 = vmatmul.mubr.msk.f32.gmra.mrb[10].mxu0 %vm557_vm0, %v8700_v25  ;;  %6050 = vmatmul.mubr.msk.f32.gmra.mrb[10].mxu1 %vm557_vm0, %v8514_v30 }
  0x63   : > { %807 = vmatprep.mubr.f32.mxu0 %v11083_v7  ;;  %1545 = vmatprep.mubr.f32.mxu1 %v11083_v7 }
  0x64   : > { %6745 = vmatpush1.bf16.msra.mxu0 %v8704_v28  ;;  %6865 = vmatpush1.bf16.msra.mxu1 %v8704_v28  ;;  %v8752_v28 = vpack.c.bf16 %v5983_v2, %v5981_v51  ;;  %v8767_v51 = vld [vmem:[%s8337_s29 + $0xc8] sm:$0xff] }
  0x65   : > { %6747 = vmatprep.subr.bf16.mxu0 %v8708_v29  ;;  %6867 = vmatprep.subr.bf16.mxu1 %v8708_v29  ;;  %v5982_v29 = vld [vmem:[%s11049_s1 + $0x270] sm:$0xff] }
  0x66   : > { %5930 = vmatmul.mubr.msk.f32.gmra.mrb[12].mxu0 %vm557_vm0, %v8717_v43  ;;  %6051 = vmatmul.mubr.msk.f32.gmra.mrb[12].mxu1 %vm557_vm0, %v8534_v36  ;;  %11159 = vst [vmem:[#allocation15_spill] sm:$0xff] %v8752_v28  ;;  %v8769_v2 = vpack.c.bf16 %v5982_v29, %v5980_v24  ;;  %v5989_v29 = vld [vmem:[%s11049_s1 + $0x2a8] sm:$0xff]  ;;  %v5991_v24 = vld [vmem:[%s11049_s1 + $0x2b8] sm:$0xff] }
  0x67   : > { %932 = vmatprep.mubr.f32.mxu0 %v11083_v7  ;;  %1616 = vmatprep.mubr.f32.mxu1 %v11083_v7 }
  0x68   : > { %11160 = vst [vmem:[#allocation16_spill] sm:$0xff] %v8769_v2 }
  0x6a   : > { %5962 = vmatmul.mubr.msk.f32.vlgmr.msra.gmra.mrb[0].mxu0 %vm557_vm0, %v8359_v45  ;;  %6052 = vmatmul.mubr.msk.f32.vlgmr.msra.gmra.mrb[0].mxu1 %vm557_vm0, %v8742_v4  ;;  %v8775_v45 = vpack.c.bf16 %v5987_v50, %v5985_v47  ;;  %v8796_v47 = vld [vmem:[%s8337_s29 + $0xd0] sm:$0xff]  ;;  %v8804_v50 = vpack.c.bf16 %v5991_v24, %v5989_v29  ;;  %v8825_v29 = vld [vmem:[%s8337_s29 + $0xd8] sm:$0xff] }
  0x6b   : > { %6749 = vmatpush1.bf16.msra.mxu0 %v8744_v12  ;;  %6869 = vmatpush1.bf16.msra.mxu1 %v8744_v12  ;;  %v5986_v12 = vld [vmem:[%s11049_s1 + $0x290] sm:$0xff] }
  0x6c   : > { %938 = vmatprep.mubr.f32.mxu0 %v11083_v7  ;;  %1622 = vmatprep.mubr.f32.mxu1 %v11083_v7  ;;  %11161 = vst [vmem:[#allocation17_spill] sm:$0xff] %v8775_v45  ;;  %11163 = vst [vmem:[#allocation19_spill] sm:$0xff] %v8804_v50 }
  0x6d   : > { %6751 = vmatprep.subr.bf16.mxu0 %v8752_v28  ;;  %6871 = vmatprep.subr.bf16.mxu1 %v8752_v28  ;;  %v5988_v28 = vld [vmem:[%s11049_s1 + $0x2a0] sm:$0xff] }
  0x6e   : > { %5963 = vmatmul.mubr.msk.f32.gmra.mrb[2].mxu0 %vm557_vm0, %v8389_v53  ;;  %6053 = vmatmul.mubr.msk.f32.gmra.mrb[2].mxu1 %vm557_vm0, %v8767_v51  ;;  %v8800_v53 = vpack.c.bf16 %v5986_v12, %v5984_v1  ;;  %v5993_v1 = vld [vmem:[%s11049_s1 + $0x2c8] sm:$0xff]  ;;  %v5995_v12 = vld [vmem:[%s11049_s1 + $0x2d8] sm:$0xff] }
  0x6f   : > { %944 = vmatprep.mubr.f32.mxu0 %v11083_v7  ;;  %6753 = vmatpush1.bf16.msra.mxu0 %v8769_v2  ;;  %v8833_v24 = vpack.c.bf16 %v5995_v12, %v5993_v1  ;;  %v11166_v1 = vmov 0.0   ;;  %v8854_v12 = vld [vmem:[%s8337_s29 + $0xe0] sm:$0xff] }
  0x70   : > { %1628 = vmatprep.mubr.f32.mxu1 %v11083_v7  ;;  %6873 = vmatpush1.bf16.msra.mxu1 %v8769_v2  ;;  %11162 = vst [vmem:[#allocation18_spill] sm:$0xff] %v8800_v53  ;;  %v5998_v2 = vld [vmem:[%s11049_s1 + $0x2f0] sm:$0xff] }
  0x71   : > { %6755 = vmatprep.subr.bf16.mxu0 %v8775_v45  ;;  %6875 = vmatprep.subr.bf16.mxu1 %v8775_v45  ;;  %11165 = vst [vmem:[#allocation21_spill] sm:$0xff] %v8833_v24  ;;  %v5992_v45 = vld [vmem:[%s11049_s1 + $0x2c0] sm:$0xff] }
  0x72   : > { %5964 = vmatmul.mubr.msk.f32.gmra.mrb[4].mxu0 %vm557_vm0, %v8421_v61  ;;  %6054 = vmatmul.mubr.msk.f32.gmra.mrb[4].mxu1 %vm557_vm0, %v8796_v47  ;;  %v8829_v61 = vpack.c.bf16 %v5990_v58, %v5988_v28  ;;  %v5997_v58 = vld [vmem:[%s11049_s1 + $0x2e8] sm:$0xff]  ;;  %v5999_v28 = vld [vmem:[%s11049_s1 + $0x2f8] sm:$0xff] }
  0x73   : > { %950 = vmatprep.mubr.f32.mxu0 %v11083_v7  ;;  %1634 = vmatprep.mubr.f32.mxu1 %v11083_v7  ;;  %v5994_v7 = vld [vmem:[%s11049_s1 + $0x2d0] sm:$0xff] }
  0x74   : > { %6757 = vmatpush1.bf16.msra.mxu0 %v8800_v53  ;;  %6877 = vmatpush1.bf16.msra.mxu1 %v8800_v53  ;;  %11164 = vst [vmem:[#allocation20_spill] sm:$0xff] %v8829_v61  ;;  %v5996_v53 = vld [vmem:[%s11049_s1 + $0x2e0] sm:$0xff] }
  0x75   : > { %6759 = vmatprep.subr.bf16.mxu0 %v8804_v50  ;;  %6879 = vmatprep.subr.bf16.mxu1 %v8804_v50  ;;  %v8862_v50 = vpack.c.bf16 %v5999_v28, %v5997_v58  ;;  %v8883_v58 = vld [vmem:[%s8337_s29 + $0xe8] sm:$0xff] }
  0x76   : > { %5965 = vmatmul.mubr.msk.f32.gmra.mrb[6].mxu0 %vm557_vm0, %v8453_v6  ;;  %6055 = vmatmul.mubr.msk.f32.gmra.mrb[6].mxu1 %vm557_vm0, %v8825_v29  ;;  %v8858_v6 = vpack.c.bf16 %v5994_v7, %v5992_v45  ;;  %v6008_v7 = vld [vmem:[%s11049_s1 + $0x308] sm:$0xff]  ;;  %v6010_v45 = vld [vmem:[%s11049_s1 + $0x318] sm:$0xff] }
  0x77   : > { %956 = vmatprep.mubr.f32.mxu0 %v11166_v1  ;;  %1640 = vmatprep.mubr.f32.mxu1 %v11166_v1  ;;  %11168 = vst [vmem:[#allocation23_spill] sm:$0xff] %v8862_v50  ;;  %v8891_v28 = vpack.c.bf16 %v6010_v45, %v6008_v7  ;;  %v6014_v7 = vld [vmem:[%s11049_s1 + $0x338] sm:$0xff] }
  0x78   : > { %6761 = vmatpush1.bf16.msra.mxu0 %v8829_v61  ;;  %6881 = vmatpush1.bf16.msra.mxu1 %v8829_v61  ;;  %11167 = vst [vmem:[#allocation22_spill] sm:$0xff] %v8858_v6  ;;  %v2103_v61 = vld [vmem:[%s11051_s3 + $0x18] sm:$0xff] }
  0x79   : > { %6763 = vmatprep.subr.bf16.mxu0 %v8833_v24  ;;  %6883 = vmatprep.subr.bf16.mxu1 %v8833_v24  ;;  %11170 = vst [vmem:[#allocation25_spill] sm:$0xff] %v8891_v28  ;;  %v8900_v24 = vld [vmem:[%s8337_s29 + $0xf0] sm:$0xff] }
  0x7a   : > { %5966 = vmatmul.mubr.msk.f32.gmra.mrb[8].mxu0 %vm557_vm0, %v8485_v19  ;;  %6056 = vmatmul.mubr.msk.f32.gmra.mrb[8].mxu1 %vm557_vm0, %v8854_v12  ;;  %v8887_v19 = vpack.c.bf16 %v5998_v2, %v5996_v53  ;;  %v6007_v2 = vld [vmem:[%s11049_s1 + $0x300] sm:$0xff]  ;;  %v6012_v53 = vld [vmem:[%s11049_s1 + $0x328] sm:$0xff] }
  0x7b   : > { %962 = vmatprep.mubr.f32.mxu0 %v11166_v1  ;;  %1646 = vmatprep.mubr.f32.mxu1 %v11166_v1 }
  0x7c   : > { %6765 = vmatpush1.bf16.msra.mxu0 %v8858_v6  ;;  %6885 = vmatpush1.bf16.msra.mxu1 %v8858_v6  ;;  %11169 = vst [vmem:[#allocation24_spill] sm:$0xff] %v8887_v19  ;;  %v6021_v6 = vld [vmem:[%s11049_s1 + $0x370] sm:$0xff] }
  0x7d   : > { %6767 = vmatprep.subr.bf16.mxu0 %v8862_v50  ;;  %6887 = vmatprep.subr.bf16.mxu1 %v8862_v50  ;;  %v6015_v50 = vld [vmem:[%s11049_s1 + $0x340] sm:$0xff] }
  0x7e   : > { %5967 = vmatmul.mubr.msk.f32.gmra.mrb[10].mxu0 %vm557_vm0, %v8517_v31  ;;  %6057 = vmatmul.mubr.msk.f32.gmra.mrb[10].mxu1 %vm557_vm0, %v8883_v58  ;;  %v6009_v31 = vld [vmem:[%s11049_s1 + $0x310] sm:$0xff] }
  0x7f   : > { %968 = vmatprep.mubr.f32.mxu0 %v11166_v1  ;;  %1652 = vmatprep.mubr.f32.mxu1 %v11166_v1  ;;  %v8924_v45 = vpack.c.bf16 %v6009_v31, %v6007_v2  ;;  %v6016_v2 = vld [vmem:[%s11049_s1 + $0x348] sm:$0xff]  ;;  %v6018_v31 = vld [vmem:[%s11049_s1 + $0x358] sm:$0xff] }
  0x80   : > { %6769 = vmatpush1.bf16.msra.mxu0 %v8887_v19  ;;  %6889 = vmatpush1.bf16.msra.mxu1 %v8887_v19  ;;  %v8932_v19 = vpack.c.bf16 %v6014_v7, %v6012_v53  ;;  %v8952_v7 = vpack.c.bf16 %v6018_v31, %v6016_v2 }
  0x81   : > { %6771 = vmatprep.subr.bf16.mxu0 %v8891_v28  ;;  %6891 = vmatprep.subr.bf16.mxu1 %v8891_v28  ;;  %11171 = vst [vmem:[#allocation26_spill] sm:$0xff] %v8924_v45  ;;  %v6013_v28 = vld [vmem:[%s11049_s1 + $0x330] sm:$0xff] }
  0x82   : > { %5968 = vmatmul.mubr.msk.f32.gmra.mrb[12].mxu0 %vm557_vm0, %v8537_v37  ;;  %6058 = vmatmul.mubr.msk.f32.gmra.mrb[12].mxu1 %vm557_vm0, %v8900_v24  ;;  %v6011_v37 = vld [vmem:[%s11049_s1 + $0x320] sm:$0xff]  ;;  %11172 = vst [vmem:[#allocation27_spill] sm:$0xff] %v8932_v19  ;;  %11174 = vst [vmem:[#allocation29_spill] sm:$0xff] %v8952_v7 }
  0x83   : > { %1107 = vmatprep.mubr.f32.mxu0 %v11166_v1  ;;  %1737 = vmatprep.mubr.f32.mxu1 %v11166_v1  ;;  %v8946_v53 = vpack.c.bf16 %v6013_v28, %v6011_v37  ;;  %v6020_v28 = vld [vmem:[%s11049_s1 + $0x368] sm:$0xff]  ;;  %v6022_v37 = vld [vmem:[%s11049_s1 + $0x378] sm:$0xff] }
  0x84   : > { %v8978_v31 = vpack.c.bf16 %v6022_v37, %v6020_v28 }
  0x85   : > { %11173 = vst [vmem:[#allocation28_spill] sm:$0xff] %v8946_v53 }
  0x86   : > { %6000 = vmatmul.mubr.msk.f32.vlgmr.msra.gmra.mrb[0].mxu0 %vm557_vm0, %v8742_v4  ;;  %6059 = vmatmul.mubr.msk.f32.vlgmr.msra.gmra.mrb[0].mxu1 %vm557_vm0, %v8584_v59  ;;  %11176 = vst [vmem:[#allocation31_spill] sm:$0xff] %v8978_v31 }
  0x87   : > { %6773 = vmatpush1.bf16.msra.mxu0 %v8924_v45  ;;  %6893 = vmatpush1.bf16.msra.mxu1 %v8924_v45  ;;  %v6017_v45 = vld [vmem:[%s11049_s1 + $0x350] sm:$0xff] }
  0x88   : > { %1113 = vmatprep.mubr.f32.mxu0 %v11166_v1  ;;  %1743 = vmatprep.mubr.f32.mxu1 %v11166_v1  ;;  %v8974_v2 = vpack.c.bf16 %v6017_v45, %v6015_v50  ;;  %v6024_v50 = vld [vmem:[%s11049_s1 + $0x388] sm:$0xff]  ;;  %v6026_v45 = vld [vmem:[%s11049_s1 + $0x398] sm:$0xff] }
  0x89   : > { %6775 = vmatprep.subr.bf16.mxu0 %v8932_v19  ;;  %6895 = vmatprep.subr.bf16.mxu1 %v8932_v19  ;;  %v6019_v19 = vld [vmem:[%s11049_s1 + $0x360] sm:$0xff]  ;;  %v9004_v37 = vpack.c.bf16 %v6026_v45, %v6024_v50 }
  0x8a   : > { %6001 = vmatmul.mubr.msk.f32.gmra.mrb[2].mxu0 %vm557_vm0, %v8767_v51  ;;  %6060 = vmatmul.mubr.msk.f32.gmra.mrb[2].mxu1 %vm557_vm0, %v8613_v13  ;;  %11175 = vst [vmem:[#allocation30_spill] sm:$0xff] %v8974_v2  ;;  %v9000_v28 = vpack.c.bf16 %v6021_v6, %v6019_v19  ;;  %v6028_v6 = vld [vmem:[%s11049_s1 + $0x3a8] sm:$0xff]  ;;  %v6030_v19 = vld [vmem:[%s11049_s1 + $0x3b8] sm:$0xff] }
  0x8b   : > { %1119 = vmatprep.mubr.f32.mxu0 %v11166_v1  ;;  %6777 = vmatpush1.bf16.msra.mxu0 %v8946_v53  ;;  %11178 = vst [vmem:[#allocation33_spill] sm:$0xff] %v9004_v37  ;;  %v9030_v45 = vpack.c.bf16 %v6030_v19, %v6028_v6  ;;  %v1958_v6 = vld [vmem:[%s11050_s2 + $0x8] sm:$0xff]  ;;  %v2100_v19 = vld [vmem:[%s11051_s3] sm:$0xff] }
  0x8c   : > { %1749 = vmatprep.mubr.f32.mxu1 %v11166_v1  ;;  %6897 = vmatpush1.bf16.msra.mxu1 %v8946_v53  ;;  %11177 = vst [vmem:[#allocation32_spill] sm:$0xff] %v9000_v28  ;;  %v6025_v53 = vld [vmem:[%s11049_s1 + $0x390] sm:$0xff] }
  0x8d   : > { %6779 = vmatprep.subr.bf16.mxu0 %v8952_v7  ;;  %6899 = vmatprep.subr.bf16.mxu1 %v8952_v7  ;;  %v6023_v7 = vld [vmem:[%s11049_s1 + $0x380] sm:$0xff]  ;;  %11180 = vst [vmem:[#allocation35_spill] sm:$0xff] %v9030_v45 }
  0x8e   : > { %6002 = vmatmul.mubr.msk.f32.gmra.mrb[4].mxu0 %vm557_vm0, %v8796_v47  ;;  %6061 = vmatmul.mubr.msk.f32.gmra.mrb[4].mxu1 %vm557_vm0, %v8642_v40  ;;  %v9026_v50 = vpack.c.bf16 %v6025_v53, %v6023_v7  ;;  %v9057_v7 = vld [vmem:[%s8337_s29 + $0x38] sm:$0xff] }
  0x8f   : > { %1125 = vmatprep.mubr.f32.mxu0 %v11166_v1  ;;  %1755 = vmatprep.mubr.f32.mxu1 %v11166_v1 }
  0x90   : > { %6781 = vmatpush1.bf16.msra.mxu0 %v8974_v2  ;;  %6901 = vmatpush1.bf16.msra.mxu1 %v8974_v2  ;;  %11179 = vst [vmem:[#allocation34_spill] sm:$0xff] %v9026_v50  ;;  %v6029_v2 = vld [vmem:[%s11049_s1 + $0x3b0] sm:$0xff] }
  0x91   : > { %6783 = vmatprep.subr.bf16.mxu0 %v8978_v31  ;;  %6903 = vmatprep.subr.bf16.mxu1 %v8978_v31  ;;  %v6027_v31 = vld [vmem:[%s11049_s1 + $0x3a0] sm:$0xff] }
  0x92   : > { %6003 = vmatmul.mubr.msk.f32.gmra.mrb[6].mxu0 %vm557_vm0, %v8825_v29  ;;  %6062 = vmatmul.mubr.msk.f32.gmra.mrb[6].mxu1 %vm557_vm0, %v8671_v57  ;;  %v9046_v53 = vpack.c.bf16 %v6029_v2, %v6027_v31  ;;  %v1957_v2 = vld [vmem:[%s11050_s2] sm:$0xff]  ;;  %v11115_v31 = vmov 0.0|0.0  }
  0x93   : > { %1131 = vmatprep.mubr.f32.mxu0 %v11166_v1  ;;  %1761 = vmatprep.mubr.f32.mxu1 %v11166_v1 }
  0x94   : > { %6785 = vmatpush1.bf16.msra.mxu0 %v9000_v28  ;;  %6905 = vmatpush1.bf16.msra.mxu1 %v9000_v28  ;;  %11181 = vst [vmem:[#allocation36_spill] sm:$0xff] %v9046_v53  ;;  %v2102_v28 = vld [vmem:[%s11051_s3 + $0x10] sm:$0xff] }
  0x95   : > { %6787 = vmatprep.subr.bf16.mxu0 %v9004_v37  ;;  %6907 = vmatprep.subr.bf16.mxu1 %v9004_v37  ;;  %v1960_v37 = vld [vmem:[%s11050_s2 + $0x18] sm:$0xff] }
  0x96   : > { %6004 = vmatmul.mubr.msk.f32.gmra.mrb[8].mxu0 %vm557_vm0, %v8854_v12  ;;  %6063 = vmatmul.mubr.msk.f32.gmra.mrb[8].mxu1 %vm557_vm0, %v8700_v25 }
  0x97   : > { %1137 = vmatprep.mubr.f32.mxu0 %v11166_v1  ;;  %1767 = vmatprep.mubr.f32.mxu1 %v11166_v1 }
  0x98   : > { %6789 = vmatpush1.bf16.msra.mxu0 %v9026_v50  ;;  %6909 = vmatpush1.bf16.msra.mxu1 %v9026_v50  ;;  %v1959_v50 = vld [vmem:[%s11050_s2 + $0x10] sm:$0xff] }
  0x99   : > { %6791 = vmatprep.subr.bf16.mxu0 %v9030_v45  ;;  %6911 = vmatprep.subr.bf16.mxu1 %v9030_v45 }
  0x9a   : > { %6005 = vmatmul.mubr.msk.f32.gmra.mrb[10].mxu0 %vm557_vm0, %v8883_v58  ;;  %6064 = vmatmul.mubr.msk.f32.gmra.mrb[10].mxu1 %vm557_vm0, %v8717_v43 }
  0x9b   : > { %1143 = vmatprep.mubr.f32.mxu0 %v11166_v1  ;;  %1773 = vmatprep.mubr.f32.mxu1 %v11166_v1 }
  0x9c   : > { %6793 = vmatpush1.bf16.msra.mxu0 %v9046_v53  ;;  %6913 = vmatpush1.bf16.msra.mxu1 %v9046_v53  ;;  %v2101_v53 = vld [vmem:[%s11051_s3 + $0x8] sm:$0xff] }
  0x9d   : > { %6914 = vmatprep.subr.bf16.mxu0 %v11115_v31  ;;  %6944 = vmatprep.subr.bf16.mxu1 %v11115_v31  ;;  %v9081_v31 = vpack.c.bf16 %v1958_v6, %v1957_v2  ;;  %v9083_v45 = vpack.c.bf16 %v2101_v53, %v2100_v19  ;;  %v9105_v53 = vpack.c.bf16 %v1960_v37, %v1959_v50  ;;  %v1961_v6 = vld [vmem:[%s11050_s2 + $0x20] sm:$0xff]  ;;  %v11184_v19 = vmov 0.0|0.0   ;;  %v1963_v50 = vld [vmem:[%s11050_s2 + $0x30] sm:$0xff] }
  0x9e   : > { %6006 = vmatmul.mubr.msk.f32.gmra.mrb[12].mxu0 %vm557_vm0, %v8900_v24  ;;  %6065 = vmatmul.mubr.msk.f32.gmra.mrb[12].mxu1 %vm557_vm0, %v9057_v7  ;;  %v9107_v2 = vpack.c.bf16 %v2103_v61, %v2102_v28  ;;  %v2105_v61 = vld [vmem:[%s11051_s3 + $0x28] sm:$0xff] }
  0x9f   : > { %1281 = vmatprep.mubr.f32.mxu0 %v11166_v1  ;;  %1886 = vmatprep.mubr.f32.mxu1 %v11166_v1  ;;  %11182 = vst [vmem:[#allocation37_spill] sm:$0xff] %v9083_v45 }
  0xa0   : > { %11183 = vst [vmem:[#allocation38_spill] sm:$0xff] %v9107_v2 }
  0xa2   : > { %6031 = vmatmul.mubr.msk.f32.vlgmr.msra.gmra.mrb[0].mxu0 %vm557_vm0, %v8584_v59  ;;  %6073 = vmatmul.mubr.msk.f32.vlgmr.msra.gmra.mrb[0].mxu1 %vm557_vm0, %v8386_v52  ;;  %v1962_v52 = vld [vmem:[%s11050_s2 + $0x28] sm:$0xff] }
  0xa3   : > { %1287 = vmatprep.mubr.f32.mxu0 %v11166_v1  ;;  %1892 = vmatprep.mubr.f32.mxu1 %v11166_v1  ;;  %v9131_v28 = vpack.c.bf16 %v1962_v52, %v1961_v6 }
  0xa4   : > { %6916 = vmatpush1.bf16.msra.mxu0 %v9081_v31  ;;  %6946 = vmatpush1.bf16.msra.mxu1 %v9083_v45  ;;  %v2104_v45 = vld [vmem:[%s11051_s3 + $0x20] sm:$0xff] }
  0xa5   : > { %6917 = vmatprep.subr.bf16.mxu0 %v11184_v19  ;;  %6947 = vmatprep.subr.bf16.mxu1 %v11184_v19  ;;  %11185 = vst [vmem:[#allocation39_spill] sm:$0xff] %v9131_v28  ;;  %v9133_v37 = vpack.c.bf16 %v2105_v61, %v2104_v45  ;;  %v2107_v45 = vld [vmem:[%s11051_s3 + $0x38] sm:$0xff]  ;;  %v1965_v61 = vld [vmem:[%s11050_s2 + $0x40] sm:$0xff] }
  0xa6   : > { %6032 = vmatmul.mubr.msk.f32.gmra.mrb[2].mxu0 %vm557_vm0, %v8613_v13  ;;  %6074 = vmatmul.mubr.msk.f32.gmra.mrb[2].mxu1 %vm557_vm0, %v8418_v60  ;;  %v1964_v60 = vld [vmem:[%s11050_s2 + $0x38] sm:$0xff] }
  0xa7   : > { %1293 = vmatprep.mubr.f32.mxu0 %v11166_v1  ;;  %1898 = vmatprep.mubr.f32.mxu1 %v11166_v1  ;;  %11186 = vst [vmem:[#allocation40_spill] sm:$0xff] %v9133_v37  ;;  %v9157_v6 = vpack.c.bf16 %v1964_v60, %v1963_v50 }
  0xa8   : > { %6919 = vmatpush1.bf16.msra.mxu0 %v9105_v53  ;;  %6949 = vmatpush1.bf16.msra.mxu1 %v9107_v2  ;;  %v2106_v2 = vld [vmem:[%s11051_s3 + $0x30] sm:$0xff] }
  0xa9   : > { %6920 = vmatprep.subr.bf16.mxu0 %v11184_v19  ;;  %6950 = vmatprep.subr.bf16.mxu1 %v11184_v19  ;;  %11187 = vst [vmem:[#allocation41_spill] sm:$0xff] %v9157_v6  ;;  %v9159_v52 = vpack.c.bf16 %v2107_v45, %v2106_v2  ;;  %v2109_v2 = vld [vmem:[%s11051_s3 + $0x48] sm:$0xff]  ;;  %v1967_v45 = vld [vmem:[%s11050_s2 + $0x50] sm:$0xff] }
  0xaa   : > { %6033 = vmatmul.mubr.msk.f32.gmra.mrb[4].mxu0 %vm557_vm0, %v8642_v40  ;;  %6075 = vmatmul.mubr.msk.f32.gmra.mrb[4].mxu1 %vm557_vm0, %v8450_v5  ;;  %v1966_v5 = vld [vmem:[%s11050_s2 + $0x48] sm:$0xff] }
  0xab   : > { %1299 = vmatprep.mubr.f32.mxu0 %v11166_v1  ;;  %1904 = vmatprep.mubr.f32.mxu1 %v11166_v1  ;;  %11188 = vst [vmem:[#allocation42_spill] sm:$0xff] %v9159_v52  ;;  %v9183_v50 = vpack.c.bf16 %v1966_v5, %v1965_v61 }
  0xac   : > { %6922 = vmatpush1.bf16.msra.mxu0 %v9131_v28  ;;  %6952 = vmatpush1.bf16.msra.mxu1 %v9133_v37  ;;  %v2108_v37 = vld [vmem:[%s11051_s3 + $0x40] sm:$0xff] }
  0xad   : > { %6923 = vmatprep.subr.bf16.mxu0 %v11184_v19  ;;  %6953 = vmatprep.subr.bf16.mxu1 %v11184_v19  ;;  %11189 = vst [vmem:[#allocation43_spill] sm:$0xff] %v9183_v50  ;;  %v9185_v60 = vpack.c.bf16 %v2109_v2, %v2108_v37  ;;  %v2111_v37 = vld [vmem:[%s11051_s3 + $0x58] sm:$0xff]  ;;  %v1969_v2 = vld [vmem:[%s11050_s2 + $0x60] sm:$0xff] }
  0xae   : > { %6034 = vmatmul.mubr.msk.f32.gmra.mrb[6].mxu0 %vm557_vm0, %v8671_v57  ;;  %6076 = vmatmul.mubr.msk.f32.gmra.mrb[6].mxu1 %vm557_vm0, %v8482_v18  ;;  %v1968_v18 = vld [vmem:[%s11050_s2 + $0x58] sm:$0xff] }
  0xaf   : > { %1305 = vmatprep.mubr.f32.mxu0 %v11166_v1  ;;  %1910 = vmatprep.mubr.f32.mxu1 %v11166_v1  ;;  %11190 = vst [vmem:[#allocation44_spill] sm:$0xff] %v9185_v60  ;;  %v9209_v61 = vpack.c.bf16 %v1968_v18, %v1967_v45  ;;  %v9234_v45 = vld [vmem:[%s8337_s29 + $0x78] sm:$0xff] }
  0xb0   : > { %6925 = vmatpush1.bf16.msra.mxu0 %v9157_v6  ;;  %6955 = vmatpush1.bf16.msra.mxu1 %v9159_v52  ;;  %v2110_v52 = vld [vmem:[%s11051_s3 + $0x50] sm:$0xff] }
  0xb1   : > { %6926 = vmatprep.subr.bf16.mxu0 %v11184_v19  ;;  %6956 = vmatprep.subr.bf16.mxu1 %v11184_v19  ;;  %11191 = vst [vmem:[#allocation45_spill] sm:$0xff] %v9209_v61  ;;  %v9211_v5 = vpack.c.bf16 %v2111_v37, %v2110_v52  ;;  %v2113_v52 = vld [vmem:[%s11051_s3 + $0x68] sm:$0xff] }
  0xb2   : > { %6035 = vmatmul.mubr.msk.f32.gmra.mrb[8].mxu0 %vm557_vm0, %v8700_v25  ;;  %6077 = vmatmul.mubr.msk.f32.gmra.mrb[8].mxu1 %vm557_vm0, %v8514_v30  ;;  %v1970_v30 = vld [vmem:[%s11050_s2 + $0x68] sm:$0xff] }
  0xb3   : > { %1311 = vmatprep.mubr.f32.mxu0 %v11166_v1  ;;  %1916 = vmatprep.mubr.f32.mxu1 %v11166_v1  ;;  %11192 = vst [vmem:[#allocation46_spill] sm:$0xff] %v9211_v5  ;;  %v9238_v18 = vpack.c.bf16 %v1970_v30, %v1969_v2 }
  0xb4   : > { %6928 = vmatpush1.bf16.msra.mxu0 %v9183_v50  ;;  %6958 = vmatpush1.bf16.msra.mxu1 %v9185_v60  ;;  %v2112_v60 = vld [vmem:[%s11051_s3 + $0x60] sm:$0xff]  ;;  %v1971_v50 = vld [vmem:[%s11050_s2 + $0x70] sm:$0xff] }
  0xb5   : > { %6929 = vmatprep.subr.bf16.mxu0 %v11184_v19  ;;  %6959 = vmatprep.subr.bf16.mxu1 %v11184_v19  ;;  %11193 = vst [vmem:[#allocation47_spill] sm:$0xff] %v9238_v18  ;;  %v9240_v37 = vpack.c.bf16 %v2113_v52, %v2112_v60  ;;  %v2115_v60 = vld [vmem:[%s11051_s3 + $0x78] sm:$0xff]  ;;  %v1973_v52 = vld [vmem:[%s11050_s2 + $0x80] sm:$0xff] }
  0xb6   : > { %6036 = vmatmul.mubr.msk.f32.gmra.mrb[10].mxu0 %vm557_vm0, %v8717_v43  ;;  %6078 = vmatmul.mubr.msk.f32.gmra.mrb[10].mxu1 %vm557_vm0, %v8534_v36  ;;  %v1972_v36 = vld [vmem:[%s11050_s2 + $0x78] sm:$0xff] }
  0xb7   : > { %1317 = vmatprep.mubr.f32.mxu0 %v11166_v1  ;;  %1922 = vmatprep.mubr.f32.mxu1 %v11166_v1  ;;  %11194 = vst [vmem:[#allocation48_spill] sm:$0xff] %v9240_v37  ;;  %v9262_v2 = vpack.c.bf16 %v1972_v36, %v1971_v50  ;;  %v2117_v50 = vld [vmem:[%s11051_s3 + $0x88] sm:$0xff] }
  0xb8   : > { %6931 = vmatpush1.bf16.msra.mxu0 %v9209_v61  ;;  %6961 = vmatpush1.bf16.msra.mxu1 %v9211_v5  ;;  %v2114_v5 = vld [vmem:[%s11051_s3 + $0x70] sm:$0xff]  ;;  %v1974_v61 = vld [vmem:[%s11050_s2 + $0x88] sm:$0xff] }
  0xb9   : > { %6932 = vmatprep.subr.bf16.mxu0 %v11184_v19  ;;  %6962 = vmatprep.subr.bf16.mxu1 %v11184_v19  ;;  %11195 = vst [vmem:[#allocation49_spill] sm:$0xff] %v9262_v2  ;;  %v9264_v30 = vpack.c.bf16 %v2115_v60, %v2114_v5  ;;  %v9282_v5 = vpack.c.bf16 %v1974_v61, %v1973_v52  ;;  %v1975_v60 = vld [vmem:[%s11050_s2 + $0x90] sm:$0xff]  ;;  %v1976_v61 = vld [vmem:[%s11050_s2 + $0x98] sm:$0xff] }
  0xba   : > { %6037 = vmatmul.mubr.msk.f32.gmra.mrb[12].mxu0 %vm557_vm0, %v9057_v7  ;;  %6079 = vmatmul.mubr.msk.f32.gmra.mrb[12].mxu1 %vm557_vm0, %v9234_v45  ;;  %v9301_v52 = vpack.c.bf16 %v1976_v61, %v1975_v60  ;;  %v9320_v60 = vld [vmem:[%s11051_s3 + $0xa0] sm:$0xff] }
  0xbb   : > { %11196 = vst [vmem:[#allocation50_spill] sm:$0xff] %v9264_v30  ;;  %11197 = vst [vmem:[#allocation51_spill] sm:$0xff] %v9282_v5 }
  0xbc   : > { %6934 = vmatpush1.bf16.msra.mxu0 %v9238_v18  ;;  %6964 = vmatpush1.bf16.msra.mxu1 %v9240_v37  ;;  %v2116_v37 = vld [vmem:[%s11051_s3 + $0x80] sm:$0xff]  ;;  %11199 = vst [vmem:[#allocation53_spill] sm:$0xff] %v9301_v52  ;;  %11202 = vst [vmem:[#allocation56_spill] sm:$0xff] %v9320_v60 }
  0xbd   : > { %6935 = vmatprep.subr.bf16.mxu0 %v11184_v19  ;;  %6965 = vmatprep.subr.bf16.mxu1 %v11184_v19  ;;  %v9284_v36 = vpack.c.bf16 %v2117_v50, %v2116_v37  ;;  %v2118_v37 = vld [vmem:[%s11051_s3 + $0x90] sm:$0xff]  ;;  %v2119_v50 = vld [vmem:[%s11051_s3 + $0x98] sm:$0xff] }
  0xbf   : > { %11198 = vst [vmem:[#allocation52_spill] sm:$0xff] %v9284_v36 }
  0xc0   : > { %6937 = vmatpush1.bf16.msra.mxu0 %v9262_v2  ;;  %6967 = vmatpush1.bf16.msra.mxu1 %v9264_v30 }
  0xc1   : > { %6938 = vmatprep.subr.bf16.mxu0 %v11184_v19  ;;  %6968 = vmatprep.subr.bf16.mxu1 %v11184_v19 }
  0xc4   : > { %6940 = vmatpush1.bf16.msra.mxu0 %v9282_v5  ;;  %6970 = vmatpush1.bf16.msra.mxu1 %v9284_v36  ;;  %v9306_v36 = vpack.c.bf16 %v2119_v50, %v2118_v37  ;;  %v9315_v5 = vld [vmem:[%s11050_s2 + $0xa0] sm:$0xff] }
  0xc5   : > { %6941 = vmatprep.subr.bf16.mxu0 %v11184_v19  ;;  %6971 = vmatprep.subr.bf16.mxu1 %v11184_v19  ;;  %11201 = vst [vmem:[#allocation55_spill] sm:$0xff] %v9315_v5 }
  0xc6   : > { %11200 = vst [vmem:[#allocation54_spill] sm:$0xff] %v9306_v36 }
  0xc8   : > { %6943 = vmatpush1.bf16.msra.mxu0 %v9301_v52  ;;  %6973 = vmatpush1.bf16.msra.mxu1 %v9306_v36 }
  0xc9   : > { %2040 = vmatprep.subr.mxu0 %v11166_v1  ;;  %2161 = vmatprep.subr.mxu1 %v11166_v1 }
  0xcc   : > { %2041 = vmatpush1.msra.mxu0 %v9315_v5  ;;  %2162 = vmatpush1.msra.mxu1 %v9320_v60 }
  0xcd   : > { %6975 = vmatprep.subr.bf16.mxu0 %v8215_v3  ;;  %7095 = vmatprep.subr.bf16.mxu1 %v8215_v3 }
 0x175   : > { %v1283_v61 = vpop.f32.mrb[0].mxu0  ;;  %v1888_v37 = vpop.f32.mrb[0].mxu1 }
 0x176   : > { %v1943_v50 = vmax.f32 %v1283_v61, %v1888_v37  ;;  %v1285_v36 = vpop.f32.mrb[1].mxu0  ;;  %v1890_v52 = vpop.f32.mrb[1].mxu1 }
 0x177   : > { %v1944_v30 = vmax.f32 %v1285_v36, %v1890_v52 }
 0x179   : > { %v1289_v2 = vpop.f32.mrb[2].mxu0  ;;  %v1894_v18 = vpop.f32.mrb[2].mxu1  ;;  %6080 = vmatprep.mubr.msk.f32.mxu0 %vm1978_vm1, %v1944_v30  ;;  %6087 = vmatprep.mubr.msk.f32.mxu1 %vm1978_vm1, %v1944_v30 }
 0x17a   : > { %v1945_v5 = vmax.f32 %v1289_v2, %v1894_v18  ;;  %v1291_v6 = vpop.f32.mrb[3].mxu0  ;;  %v1896_v60 = vpop.f32.mrb[3].mxu1  ;;  %2065 = vmatmul.mubr.f32.vlgmr.msra.gmra.mrb[14].mxu0 %v1943_v50  ;;  %2186 = vmatmul.mubr.f32.vlgmr.msra.gmra.mrb[14].mxu1 %v1943_v50 }
 0x17b   : > { %v1946_v28 = vmax.f32 %v1291_v6, %v1896_v60  ;;  %6977 = vmatpush1.bf16.msra.mxu0 %v8228_v8  ;;  %7097 = vmatpush1.bf16.msra.mxu1 %v8228_v8 }
 0x17c   : > { %6979 = vmatprep.subr.bf16.mxu0 %v8230_v9  ;;  %7099 = vmatprep.subr.bf16.mxu1 %v8230_v9 }
 0x17d   : > { %v1295_v3 = vpop.f32.mrb[4].mxu0  ;;  %v1900_v36 = vpop.f32.mrb[4].mxu1  ;;  %6081 = vmatprep.mubr.msk.f32.mxu0 %vm1978_vm1, %v1946_v28  ;;  %6088 = vmatprep.mubr.msk.f32.mxu1 %vm1978_vm1, %v1946_v28 }
 0x17e   : > { %v1947_v18 = vmax.f32 %v1295_v3, %v1900_v36  ;;  %v1297_v2 = vpop.f32.mrb[5].mxu0  ;;  %v1902_v30 = vpop.f32.mrb[5].mxu1  ;;  %2070 = vmatmul.mubr.f32.gmra.mrb[16].mxu0 %v1945_v5  ;;  %2191 = vmatmul.mubr.f32.gmra.mrb[16].mxu1 %v1945_v5 }
 0x17f   : > { %v1948_v6 = vmax.f32 %v1297_v2, %v1902_v30  ;;  %6981 = vmatpush1.bf16.msra.mxu0 %v8248_v14  ;;  %7101 = vmatpush1.bf16.msra.mxu1 %v8248_v14 }
 0x180   : > { %6983 = vmatprep.subr.bf16.mxu0 %v8252_v15  ;;  %7103 = vmatprep.subr.bf16.mxu1 %v8252_v15 }
 0x181   : > { %v1301_v8 = vpop.f32.mrb[6].mxu0  ;;  %v1906_v9 = vpop.f32.mrb[6].mxu1  ;;  %6082 = vmatprep.mubr.msk.f32.mxu0 %vm1978_vm1, %v1948_v6  ;;  %6089 = vmatprep.mubr.msk.f32.mxu1 %vm1978_vm1, %v1948_v6 }
 0x182   : > { %v1949_v28 = vmax.f32 %v1301_v8, %v1906_v9  ;;  %v1303_v52 = vpop.f32.mrb[7].mxu0  ;;  %v1908_v60 = vpop.f32.mrb[7].mxu1  ;;  %2075 = vmatmul.mubr.f32.gmra.mrb[18].mxu0 %v1947_v18  ;;  %2196 = vmatmul.mubr.f32.gmra.mrb[18].mxu1 %v1947_v18 }
 0x183   : > { %v1950_v5 = vmax.f32 %v1303_v52, %v1908_v60  ;;  %6985 = vmatpush1.bf16.msra.mxu0 %v8268_v20  ;;  %7105 = vmatpush1.bf16.msra.mxu1 %v8268_v20  ;;  %v9574_v52 = vld [vmem:[%s8337_s29 + $0x90] sm:$0xff]  ;;  %v11221_v60 = vld [vmem:[#allocation28_spill] sm:$0xff] }
 0x184   : > { %6987 = vmatprep.subr.bf16.mxu0 %v8272_v21  ;;  %7107 = vmatprep.subr.bf16.mxu1 %v8272_v21 }
 0x185   : > { %v1307_v14 = vpop.f32.mrb[8].mxu0  ;;  %v1912_v15 = vpop.f32.mrb[8].mxu1  ;;  %6083 = vmatprep.mubr.msk.f32.mxu0 %vm1978_vm1, %v1950_v5  ;;  %6090 = vmatprep.mubr.msk.f32.mxu1 %vm1978_vm1, %v1950_v5  ;;  %v9586_v5 = vld [vmem:[%s8337_s29 + $0x98] sm:$0xff] }
 0x186   : > { %v1951_v61 = vmax.f32 %v1307_v14, %v1912_v15  ;;  %v1309_v37 = vpop.f32.mrb[9].mxu0  ;;  %v1914_v50 = vpop.f32.mrb[9].mxu1  ;;  %2080 = vmatmul.mubr.f32.gmra.mrb[20].mxu0 %v1949_v28  ;;  %2201 = vmatmul.mubr.f32.gmra.mrb[20].mxu1 %v1949_v28  ;;  %v11222_v14 = vld [vmem:[#allocation29_spill] sm:$0xff]  ;;  %v9598_v15 = vld [vmem:[%s8337_s29 + $0xa0] sm:$0xff] }
 0x187   : > { %v1952_v3 = vmax.f32 %v1309_v37, %v1914_v50  ;;  %6989 = vmatpush1.bf16.msra.mxu0 %v8289_v26  ;;  %7109 = vmatpush1.bf16.msra.mxu1 %v8289_v26  ;;  %v11224_v37 = vld [vmem:[#allocation31_spill] sm:$0xff]  ;;  %v9610_v50 = vld [vmem:[%s8337_s29 + $0xa8] sm:$0xff] }
 0x188   : > { %6991 = vmatprep.subr.bf16.mxu0 %v8293_v27  ;;  %7111 = vmatprep.subr.bf16.mxu1 %v8293_v27 }
 0x189   : > { %v1313_v20 = vpop.f32.mrb[10].mxu0  ;;  %v1918_v21 = vpop.f32.mrb[10].mxu1  ;;  %6084 = vmatprep.mubr.msk.f32.mxu0 %vm1978_vm1, %v1952_v3  ;;  %6091 = vmatprep.mubr.msk.f32.mxu1 %vm1978_vm1, %v1952_v3  ;;  %v11225_v3 = vld [vmem:[#allocation32_spill] sm:$0xff] }
 0x18a   : > { %v1953_v36 = vmax.f32 %v1313_v20, %v1918_v21  ;;  %v1315_v18 = vpop.f32.mrb[11].mxu0  ;;  %v1920_v2 = vpop.f32.mrb[11].mxu1  ;;  %2085 = vmatmul.mubr.f32.gmra.mrb[22].mxu0 %v1951_v61  ;;  %2206 = vmatmul.mubr.f32.gmra.mrb[22].mxu1 %v1951_v61  ;;  %v11223_v61 = vld [vmem:[#allocation30_spill] sm:$0xff]  ;;  %v11226_v20 = vld [vmem:[#allocation33_spill] sm:$0xff] }
 0x18b   : > { %v1954_v30 = vmax.f32 %v1315_v18, %v1920_v2  ;;  %6993 = vmatpush1.bf16.msra.mxu0 %v8310_v32  ;;  %7113 = vmatpush1.bf16.msra.mxu1 %v8310_v32  ;;  %v7991_v32 = vld [vmem:[%s8337_s29 + $0x80] sm:$0xff]  ;;  %v9622_v21 = vld [vmem:[%s8337_s29 + $0xb0] sm:$0xff]  ;;  %v11228_v18 = vld [vmem:[#allocation35_spill] sm:$0xff] }
 0x18c   : > { %6995 = vmatprep.subr.bf16.mxu0 %v8314_v33  ;;  %7115 = vmatprep.subr.bf16.mxu1 %v8314_v33  ;;  %v7992_v33 = vld [vmem:[%s8337_s29 + $0x88] sm:$0xff]  ;;  %v9634_v2 = vld [vmem:[%s8337_s29 + $0xb8] sm:$0xff] }
 0x18d   : > { %v1319_v26 = vpop.f32.mrb[12].mxu0  ;;  %v1924_v27 = vpop.f32.mrb[12].mxu1  ;;  %6085 = vmatprep.mubr.msk.f32.mxu0 %vm1978_vm1, %v1954_v30  ;;  %6092 = vmatprep.mubr.msk.f32.mxu1 %vm1978_vm1, %v1954_v30  ;;  %v11229_v30 = vld [vmem:[#allocation36_spill] sm:$0xff] }
 0x18e   : > { %v1955_v6 = vmax.f32 %v1319_v26, %v1924_v27  ;;  %v1321_v8 = vpop.f32.mrb[13].mxu0  ;;  %v1926_v9 = vpop.f32.mrb[13].mxu1  ;;  %2090 = vmatmul.mubr.f32.gmra.mrb[24].mxu0 %v1953_v36  ;;  %2211 = vmatmul.mubr.f32.gmra.mrb[24].mxu1 %v1953_v36  ;;  %v11227_v36 = vld [vmem:[#allocation34_spill] sm:$0xff]  ;;  %v6165_v26 = vld [vmem:[%s8337_s29 + $0xc8] sm:$0xff] }
 0x18f   : > { %v1956_v28 = vmax.f32 %v1321_v8, %v1926_v9  ;;  %6997 = vmatpush1.bf16.msra.mxu0 %v8330_v38  ;;  %7117 = vmatpush1.bf16.msra.mxu1 %v8330_v38  ;;  %v7993_v38 = vld [vmem:[%s8337_s29 + $0x90] sm:$0xff]  ;;  %v6168_v8 = vld [vmem:[%s8337_s29 + $0xe0] sm:$0xff]  ;;  %v11232_v9 = vld [vmem:[#allocation39_spill] sm:$0xff] }
 0x190   : > { %6999 = vmatprep.subr.bf16.mxu0 %v8339_v39  ;;  %7119 = vmatprep.subr.bf16.mxu1 %v8339_v39  ;;  %v7994_v39 = vld [vmem:[%s8337_s29 + $0x98] sm:$0xff]  ;;  %v6166_v27 = vld [vmem:[%s8337_s29 + $0xd0] sm:$0xff] }
 0x191   : > { %6086 = vmatprep.mubr.msk.f32.mxu0 %vm1978_vm1, %v1956_v28  ;;  %6093 = vmatprep.mubr.msk.f32.mxu1 %vm1978_vm1, %v1956_v28  ;;  %v6169_v28 = vld [vmem:[%s8337_s29 + $0xe8] sm:$0xff] }
 0x192   : > { %2095 = vmatmul.mubr.f32.gmra.mrb[26].mxu0 %v1955_v6  ;;  %2216 = vmatmul.mubr.f32.gmra.mrb[26].mxu1 %v1955_v6  ;;  %v6167_v6 = vld [vmem:[%s8337_s29 + $0xd8] sm:$0xff] }
 0x193   : > { %2313 = vmatprep.mubr.f32.mxu0 %v11166_v1  ;;  %2918 = vmatprep.mubr.f32.mxu1 %v11166_v1 }
 0x196   : > { %6095 = vmatmul.mubr.msk.f32.vlgmr.msra.gmra.mrb[28].mxu0 %vm557_vm0, %v8742_v4  ;;  %6137 = vmatmul.mubr.msk.f32.vlgmr.msra.gmra.mrb[28].mxu1 %vm557_vm0, %v8584_v59  ;;  %v11210_v59 = vld [vmem:[#allocation17_spill] sm:$0xff] }
 0x197   : > { %7001 = vmatpush1.bf16.msra.mxu0 %v8361_v46  ;;  %7121 = vmatpush1.bf16.msra.mxu1 %v8361_v46  ;;  %v7995_v46 = vld [vmem:[%s8337_s29 + $0xa0] sm:$0xff] }
 0x198   : > { %2319 = vmatprep.mubr.f32.mxu0 %v11166_v1  ;;  %2924 = vmatprep.mubr.f32.mxu1 %v11166_v1 }
 0x199   : > { %7003 = vmatprep.subr.bf16.mxu0 %v8371_v49  ;;  %7123 = vmatprep.subr.bf16.mxu1 %v8371_v49  ;;  %v11203_v49 = vld [vmem:[#allocation10_spill] sm:$0xff] }
 0x19a   : > { %6096 = vmatmul.mubr.msk.f32.gmra.mrb[30].mxu0 %vm557_vm0, %v8767_v51  ;;  %6138 = vmatmul.mubr.msk.f32.gmra.mrb[30].mxu1 %vm557_vm0, %v8613_v13  ;;  %v11211_v13 = vld [vmem:[#allocation18_spill] sm:$0xff] }
 0x19b   : > { %2325 = vmatprep.mubr.f32.mxu0 %v11166_v1  ;;  %7005 = vmatpush1.bf16.msra.mxu0 %v8391_v54 }
 0x19c   : > { %2930 = vmatprep.mubr.f32.mxu1 %v11166_v1  ;;  %7125 = vmatpush1.bf16.msra.mxu1 %v8391_v54  ;;  %v11204_v54 = vld [vmem:[#allocation11_spill] sm:$0xff] }
 0x19d   : > { %7007 = vmatprep.subr.bf16.mxu0 %v8397_v55  ;;  %7127 = vmatprep.subr.bf16.mxu1 %v8397_v55  ;;  %v7996_v55 = vld [vmem:[%s8337_s29 + $0xa8] sm:$0xff] }
 0x19e   : > { %6097 = vmatmul.mubr.msk.f32.gmra.mrb[32].mxu0 %vm557_vm0, %v8796_v47  ;;  %6139 = vmatmul.mubr.msk.f32.gmra.mrb[32].mxu1 %vm557_vm0, %v8642_v40  ;;  %v8005_v40 = vld [vmem:[%s8337_s29 + $0x60] sm:$0xff] }
 0x19f   : > { %2331 = vmatprep.mubr.f32.mxu0 %v11166_v1  ;;  %2936 = vmatprep.mubr.f32.mxu1 %v11166_v1 }
 0x1a0   : > { %7009 = vmatpush1.bf16.msra.mxu0 %v8425_v62  ;;  %7129 = vmatpush1.bf16.msra.mxu1 %v8425_v62  ;;  %v11205_v62 = vld [vmem:[#allocation12_spill] sm:$0xff] }
 0x1a1   : > { %7011 = vmatprep.subr.bf16.mxu0 %v8429_v63  ;;  %7131 = vmatprep.subr.bf16.mxu1 %v8429_v63  ;;  %v11206_v63 = vld [vmem:[#allocation13_spill] sm:$0xff] }
 0x1a2   : > { %6098 = vmatmul.mubr.msk.f32.gmra.mrb[34].mxu0 %vm557_vm0, %v8825_v29  ;;  %6140 = vmatmul.mubr.msk.f32.gmra.mrb[34].mxu1 %vm557_vm0, %v8671_v57  ;;  %v8006_v57 = vld [vmem:[%s8337_s29 + $0x28] sm:$0xff] }
 0x1a3   : > { %2337 = vmatprep.mubr.f32.mxu0 %v11166_v1  ;;  %2942 = vmatprep.mubr.f32.mxu1 %v11166_v1 }
 0x1a4   : > { %7013 = vmatpush1.bf16.msra.mxu0 %v8457_v10  ;;  %7133 = vmatpush1.bf16.msra.mxu1 %v8457_v10  ;;  %v7997_v10 = vld [vmem:[%s8337_s29 + $0xb0] sm:$0xff] }
 0x1a5   : > { %7015 = vmatprep.subr.bf16.mxu0 %v8461_v11  ;;  %7135 = vmatprep.subr.bf16.mxu1 %v8461_v11  ;;  %v7998_v11 = vld [vmem:[%s8337_s29 + $0x8] sm:$0xff] }
 0x1a6   : > { %6099 = vmatmul.mubr.msk.f32.gmra.mrb[36].mxu0 %vm557_vm0, %v8854_v12  ;;  %6141 = vmatmul.mubr.msk.f32.gmra.mrb[36].mxu1 %vm557_vm0, %v8700_v25  ;;  %v8007_v25 = vld [vmem:[%s8337_s29 + $0x68] sm:$0xff] }
 0x1a7   : > { %2343 = vmatprep.mubr.f32.mxu0 %v11166_v1  ;;  %2948 = vmatprep.mubr.f32.mxu1 %v11166_v1 }
 0x1a8   : > { %7017 = vmatpush1.bf16.msra.mxu0 %v8489_v22  ;;  %7137 = vmatpush1.bf16.msra.mxu1 %v8489_v22  ;;  %v9501_v22 = vld [vmem:[%s8337_s29 + $0x48] sm:$0xff] }
 0x1a9   : > { %7019 = vmatprep.subr.bf16.mxu0 %v8493_v23  ;;  %7139 = vmatprep.subr.bf16.mxu1 %v8493_v23  ;;  %v11207_v23 = vld [vmem:[#allocation14_spill] sm:$0xff] }
 0x1aa   : > { %6100 = vmatmul.mubr.msk.f32.gmra.mrb[38].mxu0 %vm557_vm0, %v8883_v58  ;;  %6142 = vmatmul.mubr.msk.f32.gmra.mrb[38].mxu1 %vm557_vm0, %v8717_v43  ;;  %v11215_v43 = vld [vmem:[#allocation22_spill] sm:$0xff] }
 0x1ab   : > { %2349 = vmatprep.mubr.f32.mxu0 %v11166_v1  ;;  %2954 = vmatprep.mubr.f32.mxu1 %v11166_v1 }
 0x1ac   : > { %7021 = vmatpush1.bf16.msra.mxu0 %v8521_v34  ;;  %7141 = vmatpush1.bf16.msra.mxu1 %v8521_v34  ;;  %v11208_v34 = vld [vmem:[#allocation15_spill] sm:$0xff] }
 0x1ad   : > { %7023 = vmatprep.subr.bf16.mxu0 %v8525_v35  ;;  %7143 = vmatprep.subr.bf16.mxu1 %v8525_v35  ;;  %v8000_v35 = vld [vmem:[%s8337_s29 + $0x10] sm:$0xff] }
 0x1ae   : > { %6101 = vmatmul.mubr.msk.f32.gmra.mrb[40].mxu0 %vm557_vm0, %v8900_v24  ;;  %6143 = vmatmul.mubr.msk.f32.gmra.mrb[40].mxu1 %vm557_vm0, %v9057_v7 }
 0x1af   : > { %2420 = vmatprep.mubr.f32.mxu0 %v11166_v1  ;;  %3025 = vmatprep.mubr.f32.mxu1 %v11166_v1 }
 0x1b2   : > { %6102 = vmatmul.mubr.msk.f32.vlgmr.msra.gmra.mrb[28].mxu0 %vm557_vm0, %v7991_v32  ;;  %6144 = vmatmul.mubr.msk.f32.vlgmr.msra.gmra.mrb[28].mxu1 %vm557_vm0, %v8742_v4  ;;  %v11216_v4 = vld [vmem:[#allocation23_spill] sm:$0xff]  ;;  %v11234_v32 = vld [vmem:[#allocation41_spill] sm:$0xff] }
 0x1b3   : > { %7025 = vmatpush1.bf16.msra.mxu0 %v8562_v48  ;;  %7145 = vmatpush1.bf16.msra.mxu1 %v8562_v48  ;;  %v8001_v48 = vld [vmem:[%s8337_s29 + $0x50] sm:$0xff] }
 0x1b4   : > { %2426 = vmatprep.mubr.f32.mxu0 %v11166_v1  ;;  %3031 = vmatprep.mubr.f32.mxu1 %v11166_v1 }
 0x1b5   : > { %7027 = vmatprep.subr.bf16.mxu0 %v8570_v56  ;;  %7147 = vmatprep.subr.bf16.mxu1 %v8570_v56  ;;  %v11209_v56 = vld [vmem:[#allocation16_spill] sm:$0xff] }
 0x1b6   : > { %6103 = vmatmul.mubr.msk.f32.gmra.mrb[30].mxu0 %vm557_vm0, %v7992_v33  ;;  %6145 = vmatmul.mubr.msk.f32.gmra.mrb[30].mxu1 %vm557_vm0, %v8767_v51  ;;  %v8008_v51 = vld [vmem:[%s8337_s29 + $0x30] sm:$0xff] }
 0x1b7   : > { %2432 = vmatprep.mubr.f32.mxu0 %v11166_v1  ;;  %7029 = vmatpush1.bf16.msra.mxu0 %v8586_v0  ;;  %v11235_v33 = vld [vmem:[#allocation42_spill] sm:$0xff] }
 0x1b8   : > { %3037 = vmatprep.mubr.f32.mxu1 %v11166_v1  ;;  %7149 = vmatpush1.bf16.msra.mxu1 %v8586_v0  ;;  %v8002_v0 = vld [vmem:[%s8337_s29 + $0x18] sm:$0xff] }
 0x1b9   : > { %7031 = vmatprep.subr.bf16.mxu0 %v8592_v44  ;;  %7151 = vmatprep.subr.bf16.mxu1 %v8592_v44  ;;  %v8003_v44 = vld [vmem:[%s8337_s29 + $0x58] sm:$0xff] }
 0x1ba   : > { %6104 = vmatmul.mubr.msk.f32.gmra.mrb[32].mxu0 %vm557_vm0, %v7993_v38  ;;  %6146 = vmatmul.mubr.msk.f32.gmra.mrb[32].mxu1 %vm557_vm0, %v8796_v47  ;;  %v8009_v47 = vld [vmem:[%s8337_s29 + $0x70] sm:$0xff] }
 0x1bb   : > { %2438 = vmatprep.mubr.f32.mxu0 %v11166_v1  ;;  %3043 = vmatprep.mubr.f32.mxu1 %v11166_v1  ;;  %v6170_v38 = vld [vmem:[%s8337_s29 + $0xf0] sm:$0xff] }
 0x1bc   : > { %7033 = vmatpush1.bf16.msra.mxu0 %v8617_v16  ;;  %7153 = vmatpush1.bf16.msra.mxu1 %v8617_v16  ;;  %v11212_v16 = vld [vmem:[#allocation19_spill] sm:$0xff] }
 0x1bd   : > { %7035 = vmatprep.subr.bf16.mxu0 %v8621_v17  ;;  %7155 = vmatprep.subr.bf16.mxu1 %v8621_v17  ;;  %v8004_v17 = vld [vmem:[%s8337_s29 + $0x20] sm:$0xff] }
 0x1be   : > { %6105 = vmatmul.mubr.msk.f32.gmra.mrb[34].mxu0 %vm557_vm0, %v7994_v39  ;;  %6147 = vmatmul.mubr.msk.f32.gmra.mrb[34].mxu1 %vm557_vm0, %v8825_v29  ;;  %v11217_v29 = vld [vmem:[#allocation24_spill] sm:$0xff]  ;;  %v11236_v39 = vld [vmem:[#allocation43_spill] sm:$0xff] }
 0x1bf   : > { %2444 = vmatprep.mubr.f32.mxu0 %v11166_v1  ;;  %3049 = vmatprep.mubr.f32.mxu1 %v11166_v1 }
 0x1c0   : > { %7037 = vmatpush1.bf16.msra.mxu0 %v8646_v41  ;;  %7157 = vmatpush1.bf16.msra.mxu1 %v8646_v41  ;;  %v11213_v41 = vld [vmem:[#allocation20_spill] sm:$0xff] }
 0x1c1   : > { %7039 = vmatprep.subr.bf16.mxu0 %v8650_v42  ;;  %7159 = vmatprep.subr.bf16.mxu1 %v8650_v42  ;;  %v11214_v42 = vld [vmem:[#allocation21_spill] sm:$0xff] }
 0x1c2   : > { %6106 = vmatmul.mubr.msk.f32.gmra.mrb[36].mxu0 %vm557_vm0, %v7995_v46  ;;  %6148 = vmatmul.mubr.msk.f32.gmra.mrb[36].mxu1 %vm557_vm0, %v8854_v12  ;;  %v6123_v12 = vld [vmem:[%s8337_s29 + $0x88] sm:$0xff]  ;;  %v11237_v46 = vld [vmem:[#allocation44_spill] sm:$0xff] }
 0x1c3   : > { %2450 = vmatprep.mubr.f32.mxu0 %v11166_v1  ;;  %3055 = vmatprep.mubr.f32.mxu1 %v11166_v1 }
 0x1c4   : > { %7041 = vmatpush1.bf16.msra.mxu0 %v11203_v49  ;;  %7161 = vmatpush1.bf16.msra.mxu1 %v11203_v49  ;;  %v6171_v49 = vld [vmem:[%s8337_s29 + $0xf8] sm:$0xff]  ;;  %s8010_s29 = scalar_lea.vmem %s11008_s17, 128 }
 0x1c5   : > { %7043 = vmatprep.subr.bf16.mxu0 %v11204_v54  ;;  %7163 = vmatprep.subr.bf16.mxu1 %v11204_v54  ;;  %v11238_v54 = vld [vmem:[#allocation45_spill] sm:$0xff]  ;;  %p8011_p11 = scmp.ne.s32.totalorder %s11008_s17, %s8010_s29  ;;  %p8018_p1 = scmp.lt.s32.totalorder %s8016_s25, %s8010_s29 }
 0x1c6   : > { %6107 = vmatmul.mubr.msk.f32.gmra.mrb[38].mxu0 %vm557_vm0, %v7996_v55  ;;  %6149 = vmatmul.mubr.msk.f32.gmra.mrb[38].mxu1 %vm557_vm0, %v8883_v58  ;;  %v11219_v58 = vld [vmem:[#allocation26_spill] sm:$0xff] }
 0x1c7   : > { %2456 = vmatprep.mubr.f32.mxu0 %v11166_v1  ;;  %3061 = vmatprep.mubr.f32.mxu1 %v11166_v1  ;;  %v11239_v55 = vld [vmem:[#allocation46_spill] sm:$0xff]  ;;  %p8012_p12 = pnand %p8011_p11, %p8196_p5  ;;  %p8019_p2 = por %p8018_p1, %p8017_p0 }
 0x1c8   : > { %7045 = vmatpush1.bf16.msra.mxu0 %v11205_v62  ;;  %7165 = vmatpush1.bf16.msra.mxu1 %v11205_v62  ;;  %v11240_v62 = vld [vmem:[#allocation47_spill] sm:$0xff] }
 0x1c9   : > { %7047 = vmatprep.subr.bf16.mxu0 %v11206_v63  ;;  %7167 = vmatprep.subr.bf16.mxu1 %v11206_v63  ;;  %v11241_v63 = vld [vmem:[#allocation48_spill] sm:$0xff]  ;;  %p8013_p13 = pneg %p8012_p12 }
 0x1ca   : > { %6108 = vmatmul.mubr.msk.f32.gmra.mrb[40].mxu0 %vm557_vm0, %v7997_v10  ;;  %6150 = vmatmul.mubr.msk.f32.gmra.mrb[40].mxu1 %vm557_vm0, %v8900_v24  ;;  %v11218_v24 = vld [vmem:[#allocation25_spill] sm:$0xff] }
 0x1cb   : > { %2527 = vmatprep.mubr.f32.mxu0 %v11166_v1  ;;  %3132 = vmatprep.mubr.f32.mxu1 %v11166_v1  ;;  %v11242_v10 = vld [vmem:[#allocation49_spill] sm:$0xff]  ;;  %p8020_p3 = pnand %p8019_p2, %p8013_p13 }
 0x1ce   : > { %6109 = vmatmul.mubr.msk.f32.vlgmr.msra.gmra.mrb[28].mxu0 %vm557_vm0, %v7998_v11  ;;  %6151 = vmatmul.mubr.msk.f32.vlgmr.msra.gmra.mrb[28].mxu1 %vm557_vm0, %v9501_v22  ;;  %v11243_v11 = vld [vmem:[#allocation50_spill] sm:$0xff] }
 0x1cf   : > { %7049 = vmatpush1.bf16.msra.mxu0 %v11207_v23  ;;  %7169 = vmatpush1.bf16.msra.mxu1 %v11207_v23  ;;  %v11245_v23 = vld [vmem:[#allocation52_spill] sm:$0xff] }
 0x1d0   : > { %2533 = vmatprep.mubr.f32.mxu0 %v11166_v1  ;;  %3138 = vmatprep.mubr.f32.mxu1 %v11166_v1 }
 0x1d1   : > { %7051 = vmatprep.subr.bf16.mxu0 %v11208_v34  ;;  %7171 = vmatprep.subr.bf16.mxu1 %v11208_v34  ;;  %v11246_v34 = vld [vmem:[#allocation53_spill] sm:$0xff] }
 0x1d2   : > { %6110 = vmatmul.mubr.msk.f32.gmra.mrb[30].mxu0 %vm557_vm0, %v8000_v35  ;;  %6152 = vmatmul.mubr.msk.f32.gmra.mrb[30].mxu1 %vm557_vm0, %v8001_v48  ;;  %v11247_v35 = vld [vmem:[#allocation54_spill] sm:$0xff] }
 0x1d3   : > { %2539 = vmatprep.mubr.f32.mxu0 %v11166_v1  ;;  %7053 = vmatpush1.bf16.msra.mxu0 %v11209_v56 }
 0x1d4   : > { %3144 = vmatprep.mubr.f32.mxu1 %v11166_v1  ;;  %7173 = vmatpush1.bf16.msra.mxu1 %v11209_v56  ;;  %v11249_v56 = vld [vmem:[#allocation56_spill] sm:$0xff] }
 0x1d5   : > { %7055 = vmatprep.subr.bf16.mxu0 %v11210_v59  ;;  %7175 = vmatprep.subr.bf16.mxu1 %v11210_v59 }
 0x1d6   : > { %6111 = vmatmul.mubr.msk.f32.gmra.mrb[32].mxu0 %vm557_vm0, %v8002_v0  ;;  %6153 = vmatmul.mubr.msk.f32.gmra.mrb[32].mxu1 %vm557_vm0, %v8003_v44 }
 0x1d7   : > { %2545 = vmatprep.mubr.f32.mxu0 %v11166_v1  ;;  %3150 = vmatprep.mubr.f32.mxu1 %v11166_v1 }
 0x1d8   : > { %7057 = vmatpush1.bf16.msra.mxu0 %v11211_v13  ;;  %7177 = vmatpush1.bf16.msra.mxu1 %v11211_v13 }
 0x1d9   : > { %7059 = vmatprep.subr.bf16.mxu0 %v11212_v16  ;;  %7179 = vmatprep.subr.bf16.mxu1 %v11212_v16 }
 0x1da   : > { %6112 = vmatmul.mubr.msk.f32.gmra.mrb[34].mxu0 %vm557_vm0, %v8004_v17  ;;  %6154 = vmatmul.mubr.msk.f32.gmra.mrb[34].mxu1 %vm557_vm0, %v8005_v40 }
 0x1db   : > { %2551 = vmatprep.mubr.f32.mxu0 %v11166_v1  ;;  %3156 = vmatprep.mubr.f32.mxu1 %v11166_v1 }
 0x1dc   : > { %7061 = vmatpush1.bf16.msra.mxu0 %v11213_v41  ;;  %7181 = vmatpush1.bf16.msra.mxu1 %v11213_v41 }
 0x1dd   : > { %7063 = vmatprep.subr.bf16.mxu0 %v11214_v42  ;;  %7183 = vmatprep.subr.bf16.mxu1 %v11214_v42 }
 0x1de   : > { %6113 = vmatmul.mubr.msk.f32.gmra.mrb[36].mxu0 %vm557_vm0, %v8006_v57  ;;  %6155 = vmatmul.mubr.msk.f32.gmra.mrb[36].mxu1 %vm557_vm0, %v8007_v25 }
 0x1df   : > { %2557 = vmatprep.mubr.f32.mxu0 %v11166_v1  ;;  %3162 = vmatprep.mubr.f32.mxu1 %v11166_v1 }
 0x1e0   : > { %7065 = vmatpush1.bf16.msra.mxu0 %v11215_v43  ;;  %7185 = vmatpush1.bf16.msra.mxu1 %v11215_v43 }
 0x1e1   : > { %7067 = vmatprep.subr.bf16.mxu0 %v11216_v4  ;;  %7187 = vmatprep.subr.bf16.mxu1 %v11216_v4 }
 0x1e2   : > { %6114 = vmatmul.mubr.msk.f32.gmra.mrb[38].mxu0 %vm557_vm0, %v8008_v51  ;;  %6156 = vmatmul.mubr.msk.f32.gmra.mrb[38].mxu1 %vm557_vm0, %v8009_v47 }
 0x1e3   : > { %2563 = vmatprep.mubr.f32.mxu0 %v11166_v1  ;;  %3168 = vmatprep.mubr.f32.mxu1 %v11166_v1 }
 0x1e4   : > { %7069 = vmatpush1.bf16.msra.mxu0 %v11217_v29  ;;  %7189 = vmatpush1.bf16.msra.mxu1 %v11217_v29 }
 0x1e5   : > { %7071 = vmatprep.subr.bf16.mxu0 %v11218_v24  ;;  %7191 = vmatprep.subr.bf16.mxu1 %v11218_v24 }
 0x1e6   : > { %6115 = vmatmul.mubr.msk.f32.gmra.mrb[40].mxu0 %vm557_vm0, %v9057_v7  ;;  %6157 = vmatmul.mubr.msk.f32.gmra.mrb[40].mxu1 %vm557_vm0, %v9234_v45  ;;  %v11220_v7 = vld [vmem:[#allocation27_spill] sm:$0xff] }
 0x1e7   : > { %2648 = vmatprep.mubr.f32.mxu0 %v11166_v1  ;;  %3253 = vmatprep.mubr.f32.mxu1 %v11166_v1 }
 0x1ea   : > { %6116 = vmatmul.mubr.msk.f32.vlgmr.msra.gmra.mrb[28].mxu0 %vm557_vm0, %v9501_v22  ;;  %6158 = vmatmul.mubr.msk.f32.vlgmr.msra.gmra.mrb[28].mxu1 %vm557_vm0, %v6123_v12  ;;  %v11244_v22 = vld [vmem:[#allocation51_spill] sm:$0xff] }
 0x1eb   : > { %7073 = vmatpush1.bf16.msra.mxu0 %v11219_v58  ;;  %7193 = vmatpush1.bf16.msra.mxu1 %v11219_v58 }
 0x1ec   : > { %2654 = vmatprep.mubr.f32.mxu0 %v11166_v1  ;;  %3259 = vmatprep.mubr.f32.mxu1 %v11166_v1 }
 0x1ed   : > { %7075 = vmatprep.subr.bf16.mxu0 %v11220_v7  ;;  %7195 = vmatprep.subr.bf16.mxu1 %v11220_v7 }
 0x1ee   : > { %6117 = vmatmul.mubr.msk.f32.gmra.mrb[30].mxu0 %vm557_vm0, %v8001_v48  ;;  %6159 = vmatmul.mubr.msk.f32.gmra.mrb[30].mxu1 %vm557_vm0, %v9574_v52  ;;  %v11248_v48 = vld [vmem:[#allocation55_spill] sm:$0xff] }
 0x1ef   : > { %2660 = vmatprep.mubr.f32.mxu0 %v11166_v1  ;;  %7077 = vmatpush1.bf16.msra.mxu0 %v11221_v60 }
 0x1f0   : > { %3265 = vmatprep.mubr.f32.mxu1 %v11166_v1  ;;  %7197 = vmatpush1.bf16.msra.mxu1 %v11221_v60 }
 0x1f1   : > { %7079 = vmatprep.subr.bf16.mxu0 %v11222_v14  ;;  %7199 = vmatprep.subr.bf16.mxu1 %v11222_v14 }
 0x1f2   : > { %6118 = vmatmul.mubr.msk.f32.gmra.mrb[32].mxu0 %vm557_vm0, %v8003_v44  ;;  %6160 = vmatmul.mubr.msk.f32.gmra.mrb[32].mxu1 %vm557_vm0, %v9586_v5 }
 0x1f3   : > { %2666 = vmatprep.mubr.f32.mxu0 %v11166_v1  ;;  %3271 = vmatprep.mubr.f32.mxu1 %v11166_v1 }
 0x1f4   : > { %7081 = vmatpush1.bf16.msra.mxu0 %v11223_v61  ;;  %7201 = vmatpush1.bf16.msra.mxu1 %v11223_v61 }
 0x1f5   : > { %7083 = vmatprep.subr.bf16.mxu0 %v11224_v37  ;;  %7203 = vmatprep.subr.bf16.mxu1 %v11224_v37 }
 0x1f6   : > { %6119 = vmatmul.mubr.msk.f32.gmra.mrb[34].mxu0 %vm557_vm0, %v8005_v40  ;;  %6161 = vmatmul.mubr.msk.f32.gmra.mrb[34].mxu1 %vm557_vm0, %v9598_v15 }
 0x1f7   : > { %2672 = vmatprep.mubr.f32.mxu0 %v11166_v1  ;;  %3277 = vmatprep.mubr.f32.mxu1 %v11166_v1 }
 0x1f8   : > { %7085 = vmatpush1.bf16.msra.mxu0 %v11225_v3  ;;  %7205 = vmatpush1.bf16.msra.mxu1 %v11225_v3  ;;  %v6196_v3 = vld [vmem:[%s11053_s5 + $0xc8] sm:$0xff] }
 0x1f9   : > { %7087 = vmatprep.subr.bf16.mxu0 %v11226_v20  ;;  %7207 = vmatprep.subr.bf16.mxu1 %v11226_v20 }
 0x1fa   : > { %6120 = vmatmul.mubr.msk.f32.gmra.mrb[36].mxu0 %vm557_vm0, %v8007_v25  ;;  %6162 = vmatmul.mubr.msk.f32.gmra.mrb[36].mxu1 %vm557_vm0, %v9610_v50 }
 0x1fb   : > { %2678 = vmatprep.mubr.f32.mxu0 %v11166_v1  ;;  %3283 = vmatprep.mubr.f32.mxu1 %v11166_v1 }
 0x1fc   : > { %7089 = vmatpush1.bf16.msra.mxu0 %v11227_v36  ;;  %7209 = vmatpush1.bf16.msra.mxu1 %v11227_v36 }
 0x1fd   : > { %7091 = vmatprep.subr.bf16.mxu0 %v11228_v18  ;;  %7211 = vmatprep.subr.bf16.mxu1 %v11228_v18 }
 0x1fe   : > { %6121 = vmatmul.mubr.msk.f32.gmra.mrb[38].mxu0 %vm557_vm0, %v8009_v47  ;;  %6163 = vmatmul.mubr.msk.f32.gmra.mrb[38].mxu1 %vm557_vm0, %v9622_v21 }
 0x1ff   : > { %2684 = vmatprep.mubr.f32.mxu0 %v11166_v1  ;;  %3289 = vmatprep.mubr.f32.mxu1 %v11166_v1 }
 0x200   : > { %7093 = vmatpush1.bf16.msra.mxu0 %v11229_v30  ;;  %7213 = vmatpush1.bf16.msra.mxu1 %v11229_v30 }
 0x201   : > { %7214 = vmatprep.subr.bf16.mxu0 %v11184_v19  ;;  %7244 = vmatprep.subr.bf16.mxu1 %v11184_v19 }
 0x202   : > { %6122 = vmatmul.mubr.msk.f32.gmra.mrb[40].mxu0 %vm557_vm0, %v9234_v45  ;;  %6164 = vmatmul.mubr.msk.f32.gmra.mrb[40].mxu1 %vm557_vm0, %v9634_v2  ;;  %v11230_v45 = vld [vmem:[#allocation37_spill] sm:$0xff] }
 0x203   : > { %2797 = vmatprep.mubr.f32.mxu0 %v11166_v1  ;;  %3402 = vmatprep.mubr.f32.mxu1 %v11166_v1 }
 0x206   : > { %6130 = vmatmul.mubr.msk.f32.vlgmr.msra.gmra.mrb[28].mxu0 %vm557_vm0, %v6123_v12  ;;  %6172 = vmatmul.mubr.msk.f32.vlgmr.msra.gmra.mrb[28].mxu1 %vm557_vm0, %v6165_v26 }
 0x207   : > { %2803 = vmatprep.mubr.f32.mxu0 %v11166_v1  ;;  %3408 = vmatprep.mubr.f32.mxu1 %v11166_v1 }
 0x208   : > { %7216 = vmatpush1.bf16.msra.mxu0 %v9081_v31  ;;  %7246 = vmatpush1.bf16.msra.mxu1 %v11230_v45  ;;  %v11231_v31 = vld [vmem:[#allocation38_spill] sm:$0xff] }
 0x209   : > { %7217 = vmatprep.subr.bf16.mxu0 %v11184_v19  ;;  %7247 = vmatprep.subr.bf16.mxu1 %v11184_v19 }
 0x20a   : > { %6131 = vmatmul.mubr.msk.f32.gmra.mrb[30].mxu0 %vm557_vm0, %v9574_v52  ;;  %6173 = vmatmul.mubr.msk.f32.gmra.mrb[30].mxu1 %vm557_vm0, %v6166_v27 }
 0x20b   : > { %2809 = vmatprep.mubr.f32.mxu0 %v11166_v1  ;;  %3414 = vmatprep.mubr.f32.mxu1 %v11166_v1 }
 0x20c   : > { %7219 = vmatpush1.bf16.msra.mxu0 %v9105_v53  ;;  %7249 = vmatpush1.bf16.msra.mxu1 %v11231_v31  ;;  %v11233_v53 = vld [vmem:[#allocation40_spill] sm:$0xff] }
 0x20d   : > { %7220 = vmatprep.subr.bf16.mxu0 %v11184_v19  ;;  %7250 = vmatprep.subr.bf16.mxu1 %v11184_v19  ;;  %v6195_v31 = vld [vmem:[%s11053_s5 + $0xc0] sm:$0xff] }
 0x20e   : > { %6132 = vmatmul.mubr.msk.f32.gmra.mrb[32].mxu0 %vm557_vm0, %v9586_v5  ;;  %6174 = vmatmul.mubr.msk.f32.gmra.mrb[32].mxu1 %vm557_vm0, %v6167_v6  ;;  %v6193_v6 = vld [vmem:[%s11053_s5 + $0xb0] sm:$0xff] }
 0x20f   : > { %2815 = vmatprep.mubr.f32.mxu0 %v11166_v1  ;;  %3420 = vmatprep.mubr.f32.mxu1 %v11166_v1 }
 0x210   : > { %7222 = vmatpush1.bf16.msra.mxu0 %v11232_v9  ;;  %7252 = vmatpush1.bf16.msra.mxu1 %v11233_v53  ;;  %v6198_v53 = vld [vmem:[%s11053_s5 + $0xd8] sm:$0xff] }
 0x211   : > { %7223 = vmatprep.subr.bf16.mxu0 %v11184_v19  ;;  %7253 = vmatprep.subr.bf16.mxu1 %v11184_v19 }
 0x212   : > { %6133 = vmatmul.mubr.msk.f32.gmra.mrb[34].mxu0 %vm557_vm0, %v9598_v15  ;;  %6175 = vmatmul.mubr.msk.f32.gmra.mrb[34].mxu1 %vm557_vm0, %v6168_v8 }
 0x213   : > { %2821 = vmatprep.mubr.f32.mxu0 %v11166_v1  ;;  %3426 = vmatprep.mubr.f32.mxu1 %v11166_v1 }
 0x214   : > { %7225 = vmatpush1.bf16.msra.mxu0 %v11234_v32  ;;  %7255 = vmatpush1.bf16.msra.mxu1 %v11235_v33 }
 0x215   : > { %7226 = vmatprep.subr.bf16.mxu0 %v11184_v19  ;;  %7256 = vmatprep.subr.bf16.mxu1 %v11184_v19 }
 0x216   : > { %6134 = vmatmul.mubr.msk.f32.gmra.mrb[36].mxu0 %vm557_vm0, %v9610_v50  ;;  %6176 = vmatmul.mubr.msk.f32.gmra.mrb[36].mxu1 %vm557_vm0, %v6169_v28  ;;  %v6194_v50 = vld [vmem:[%s11053_s5 + $0xb8] sm:$0xff]  ;;  %v6200_v28 = vld [vmem:[%s11053_s5 + $0xe8] sm:$0xff] }
 0x217   : > { %2827 = vmatprep.mubr.f32.mxu0 %v11166_v1  ;;  %3432 = vmatprep.mubr.f32.mxu1 %v11166_v1  ;;  %v7274_v18 = vpack.c.bf16 %v6196_v3, %v6194_v50 }
 0x218   : > { %7228 = vmatpush1.bf16.msra.mxu0 %v11236_v39  ;;  %7258 = vmatpush1.bf16.msra.mxu1 %v11237_v46  ;;  %v7276_v46 = vpack.c.bf16 %v6195_v31, %v6193_v6  ;;  %v6212_v6 = vld [vmem:[%s11053_s5 + $0x148] sm:$0xff] }
 0x219   : > { %7229 = vmatprep.subr.bf16.mxu0 %v11184_v19  ;;  %7259 = vmatprep.subr.bf16.mxu1 %v11184_v19 }
 0x21a   : > { %6135 = vmatmul.mubr.msk.f32.gmra.mrb[38].mxu0 %vm557_vm0, %v9622_v21  ;;  %6177 = vmatmul.mubr.msk.f32.gmra.mrb[38].mxu1 %vm557_vm0, %v6170_v38 }
 0x21b   : > { %2833 = vmatprep.mubr.f32.mxu0 %v11166_v1  ;;  %3438 = vmatprep.mubr.f32.mxu1 %v11166_v1 }
 0x21c   : > { %7231 = vmatpush1.bf16.msra.mxu0 %v11238_v54  ;;  %7261 = vmatpush1.bf16.msra.mxu1 %v11239_v55  ;;  %v6197_v54 = vld [vmem:[%s11053_s5 + $0xd0] sm:$0xff]  ;;  %v6199_v55 = vld [vmem:[%s11053_s5 + $0xe0] sm:$0xff] }
 0x21d   : > { %7232 = vmatprep.subr.bf16.mxu0 %v11184_v19  ;;  %7262 = vmatprep.subr.bf16.mxu1 %v11184_v19 }
 0x21e   : > { %6136 = vmatmul.mubr.msk.f32.gmra.mrb[40].mxu0 %vm557_vm0, %v9634_v2  ;;  %6178 = vmatmul.mubr.msk.f32.gmra.mrb[40].mxu1 %vm557_vm0, %v6171_v49  ;;  %v7278_v49 = vpack.c.bf16 %v6200_v28, %v6198_v53 }
 0x220   : > { %7234 = vmatpush1.bf16.msra.mxu0 %v11240_v62  ;;  %7264 = vmatpush1.bf16.msra.mxu1 %v11241_v63 }
 0x221   : > { %7235 = vmatprep.subr.bf16.mxu0 %v11184_v19  ;;  %7265 = vmatprep.subr.bf16.mxu1 %v11184_v19 }
 0x224   : > { %7237 = vmatpush1.bf16.msra.mxu0 %v11242_v10  ;;  %7267 = vmatpush1.bf16.msra.mxu1 %v11243_v11  ;;  %v6202_v10 = vld [vmem:[%s11053_s5 + $0xf8] sm:$0xff]  ;;  %v6204_v11 = vld [vmem:[%s11053_s5 + $0x108] sm:$0xff] }
 0x225   : > { %7238 = vmatprep.subr.bf16.mxu0 %v11184_v19  ;;  %7268 = vmatprep.subr.bf16.mxu1 %v11184_v19 }
 0x228   : > { %7240 = vmatpush1.bf16.msra.mxu0 %v11244_v22  ;;  %7270 = vmatpush1.bf16.msra.mxu1 %v11245_v23 }
 0x229   : > { %7241 = vmatprep.subr.bf16.mxu0 %v11184_v19  ;;  %7271 = vmatprep.subr.bf16.mxu1 %v11184_v19 }
 0x22c   : > { %7243 = vmatpush1.bf16.msra.mxu0 %v11246_v34  ;;  %7273 = vmatpush1.bf16.msra.mxu1 %v11247_v35 }
 0x22d   : > { %3534 = vmatprep.subr.mxu0 %v11166_v1  ;;  %3634 = vmatprep.subr.mxu1 %v11166_v1 }
 0x230   : > { %3535 = vmatpush1.msra.mxu0 %v11248_v48  ;;  %3635 = vmatpush1.msra.mxu1 %v11249_v56  ;;  %v7280_v48 = vpack.c.bf16 %v6199_v55, %v6197_v54  ;;  %v7282_v56 = vpack.c.bf16 %v6204_v11, %v6202_v10  ;;  %v6214_v10 = vld [vmem:[%s11053_s5 + $0x158] sm:$0xf] }
 0x231   : > { %7375 = vmatprep.subr.bf16.mxu1 %v7274_v18  ;;  %7275 = vmatprep.subr.bf16.mxu0 %v7274_v18 }
 0x24d   : > { %v9727_v59 = vpop.f32.mrb[14].mxu0  ;;  %v9729_v0 = vpop.f32.mrb[14].mxu1 }
 0x24e   : > { %v2221_v44 = vmax.f32 %v9727_v59, %v9729_v0  ;;  %v2068_v13 = vpop.f32.mrb[15].mxu0  ;;  %v2189_v16 = vpop.f32.mrb[15].mxu1 }
 0x24f   : > { %v6201_v13 = vld [vmem:[%s11053_s5 + $0xf0] sm:$0xff]  ;;  %v6203_v16 = vld [vmem:[%s11053_s5 + $0x100] sm:$0xff] }
 0x250   : > { %v7284_v50 = vpack.c.bf16 %v6203_v16, %v6201_v13  ;;  %v6213_v16 = vld [vmem:[%s11053_s5 + $0x150] sm:$0xf] }
 0x251   : > { %v9733_v17 = vpop.f32.mrb[16].mxu0  ;;  %v9735_v40 = vpop.f32.mrb[16].mxu1 }
 0x252   : > { %v2222_v41 = vmax.f32 %v9733_v17, %v9735_v40  ;;  %v2073_v42 = vpop.f32.mrb[17].mxu0  ;;  %v2194_v57 = vpop.f32.mrb[17].mxu1  ;;  %v3720_v17 = vld [vmem:[%s11053_s5 + $0x28] sm:$0xff]  ;;  %v3722_v40 = vld [vmem:[%s11053_s5 + $0x38] sm:$0xff] }
 0x255   : > { %v9739_v25 = vpop.f32.mrb[18].mxu0  ;;  %v9741_v43 = vpop.f32.mrb[18].mxu1 }
 0x256   : > { %v2223_v4 = vmax.f32 %v9739_v25, %v9741_v43  ;;  %v2078_v51 = vpop.f32.mrb[19].mxu0  ;;  %v2199_v47 = vpop.f32.mrb[19].mxu1  ;;  %v3726_v25 = vld [vmem:[%s11053_s5 + $0x58] sm:$0xff] }
 0x257   : > { %v6206_v51 = vld [vmem:[%s11053_s5 + $0x118] sm:$0xff]  ;;  %v6208_v47 = vld [vmem:[%s11053_s5 + $0x128] sm:$0xff] }
 0x258   : > { %v7286_v3 = vpack.c.bf16 %v6208_v47, %v6206_v51 }
 0x259   : > { %v9745_v29 = vpop.f32.mrb[20].mxu0  ;;  %v9747_v24 = vpop.f32.mrb[20].mxu1 }
 0x25a   : > { %v2224_v12 = vmax.f32 %v9745_v29, %v9747_v24  ;;  %v2083_v58 = vpop.f32.mrb[21].mxu0  ;;  %v2204_v52 = vpop.f32.mrb[21].mxu1  ;;  %v3730_v29 = vld [vmem:[%s11053_s5 + $0x78] sm:$0xff] }
 0x25d   : > { %v9751_v7 = vpop.f32.mrb[22].mxu0  ;;  %v9753_v60 = vpop.f32.mrb[22].mxu1 }
 0x25e   : > { %v2225_v5 = vmax.f32 %v9751_v7, %v9753_v60  ;;  %v2088_v14 = vpop.f32.mrb[23].mxu0  ;;  %v2209_v15 = vpop.f32.mrb[23].mxu1 }
 0x261   : > { %v9757_v61 = vpop.f32.mrb[24].mxu0  ;;  %v9759_v37 = vpop.f32.mrb[24].mxu1 }
 0x262   : > { %v2226_v20 = vmax.f32 %v9757_v61, %v9759_v37  ;;  %v2093_v21 = vpop.f32.mrb[25].mxu0  ;;  %v2214_v36 = vpop.f32.mrb[25].mxu1  ;;  %v3732_v61 = vld [vmem:[%s11053_s5 + $0x88] sm:$0xff]  ;;  %v3734_v37 = vld [vmem:[%s11053_s5 + $0x98] sm:$0xff] }
 0x263   : > { %v6205_v21 = vld [vmem:[%s11053_s5 + $0x110] sm:$0xff]  ;;  %v6207_v36 = vld [vmem:[%s11053_s5 + $0x120] sm:$0xff] }
 0x264   : > { %v7288_v28 = vpack.c.bf16 %v6207_v36, %v6205_v21  ;;  %v3717_v21 = vld [vmem:[%s11053_s5 + $0x10] sm:$0xff] }
 0x265   : > { %v9769_v2 = vpop.f32.mrb[26].mxu0  ;;  %v9771_v30 = vpop.f32.mrb[26].mxu1 }
 0x266   : > { %v2227_v26 = vmax.f32 %v9769_v2, %v9771_v30  ;;  %v2098_v27 = vpop.f32.mrb[27].mxu0  ;;  %v2219_v45 = vpop.f32.mrb[27].mxu1 }
 0x267   : > { %v6210_v45 = vld [vmem:[%s11053_s5 + $0x138] sm:$0xff] }
 0x2d9   : > { %v2799_v8 = vpop.f32.mrb[28].mxu0  ;;  %v3404_v9 = vpop.f32.mrb[28].mxu1 }
 0x2da   : > { %v3459_v32 = vmax.f32 %v2799_v8, %v3404_v9  ;;  %v2801_v33 = vpop.f32.mrb[29].mxu0  ;;  %v3406_v38 = vpop.f32.mrb[29].mxu1 }
 0x2db   : > { %v3460_v39 = vmax.f32 %v2801_v33, %v3406_v38  ;;  %v6209_v33 = vld [vmem:[%s11053_s5 + $0x130] sm:$0xff]  ;;  %v6211_v38 = vld [vmem:[%s11053_s5 + $0x140] sm:$0xff] }
 0x2dd   : > { %v2805_v62 = vpop.f32.mrb[30].mxu0  ;;  %v3410_v63 = vpop.f32.mrb[30].mxu1  ;;  %6179 = vmatprep.mubr.msk.f32.mxu0 %vm1978_vm1, %v3460_v39  ;;  %6186 = vmatprep.mubr.msk.f32.mxu1 %vm1978_vm1, %v3460_v39 }
 0x2de   : > { %v3461_v22 = vmax.f32 %v2805_v62, %v3410_v63  ;;  %v2807_v23 = vpop.f32.mrb[31].mxu0  ;;  %v3412_v34 = vpop.f32.mrb[31].mxu1  ;;  %3559 = vmatmul.mubr.f32.vlgmr.msra.gmra.mrb[42].mxu0 %v3459_v32  ;;  %3659 = vmatmul.mubr.f32.vlgmr.msra.gmra.mrb[42].mxu1 %v3459_v32  ;;  %v7290_v32 = vpack.c.bf16 %v6212_v6, %v6210_v45  ;;  %v7292_v63 = vpack.c.bf16 %v6211_v38, %v6209_v33  ;;  %v3719_v45 = vld [vmem:[%s11053_s5 + $0x20] sm:$0xff]  ;;  %v3721_v6 = vld [vmem:[%s11053_s5 + $0x30] sm:$0xff] }
 0x2df   : > { %v3462_v35 = vmax.f32 %v2807_v23, %v3412_v34  ;;  %7377 = vmatpush1.bf16.msra.mxu1 %v7276_v46  ;;  %7277 = vmatpush1.bf16.msra.mxu0 %v7276_v46  ;;  %v3716_v23 = vld [vmem:[%s11053_s5 + $0x8] sm:$0xff]  ;;  %v3718_v34 = vld [vmem:[%s11053_s5 + $0x18] sm:$0xff]  ;;  %v9908_v43 = vpack.c.bf16 %v3721_v6, %v3719_v45 }
 0x2e0   : > { %7379 = vmatprep.subr.bf16.mxu1 %v7278_v49  ;;  %7279 = vmatprep.subr.bf16.mxu0 %v7278_v49 }
 0x2e1   : > { %v2811_v42 = vpop.f32.mrb[32].mxu0  ;;  %v3416_v57 = vpop.f32.mrb[32].mxu1  ;;  %6180 = vmatprep.mubr.msk.f32.mxu0 %vm1978_vm1, %v3462_v35  ;;  %6187 = vmatprep.mubr.msk.f32.mxu1 %vm1978_vm1, %v3462_v35 }
 0x2e2   : > { %v3463_v58 = vmax.f32 %v2811_v42, %v3416_v57  ;;  %v2813_v52 = vpop.f32.mrb[33].mxu0  ;;  %v3418_v14 = vpop.f32.mrb[33].mxu1  ;;  %3564 = vmatmul.mubr.f32.gmra.mrb[44].mxu0 %v3461_v22  ;;  %3664 = vmatmul.mubr.f32.gmra.mrb[44].mxu1 %v3461_v22  ;;  %v7294_v42 = vpack.c.bf16 %v3718_v34, %v3716_v23 }
 0x2e3   : > { %v3464_v15 = vmax.f32 %v2813_v52, %v3418_v14  ;;  %7381 = vmatpush1.bf16.msra.mxu1 %v7280_v48  ;;  %7281 = vmatpush1.bf16.msra.mxu0 %v7280_v48  ;;  %v9858_v14 = vld [vmem:[%s11052_s4] ss:$0 sm:$0xff] }
 0x2e4   : > { %7383 = vmatprep.subr.bf16.mxu1 %v7282_v56  ;;  %7283 = vmatprep.subr.bf16.mxu0 %v7282_v56  ;;  %v2239_v33 = vadd.f32 %v9858_v14, %v2225_v5  ;;  %v2240_v5 = vadd.f32 %v9858_v14, %v2226_v20  ;;  %v9980_v20 = vpack.c.bf16 %v3734_v37, %v3732_v61  ;;  %v6244_v37 = vld [vmem:[%s11053_s5 + $0x1d8] sm:$0xff] }
 0x2e5   : > { %v2817_v18 = vpop.f32.mrb[34].mxu0  ;;  %v3422_v27 = vpop.f32.mrb[34].mxu1  ;;  %6181 = vmatprep.mubr.msk.f32.mxu0 %vm1978_vm1, %v3464_v15  ;;  %6188 = vmatprep.mubr.msk.f32.mxu1 %vm1978_vm1, %v3464_v15 }
 0x2e6   : > { %v3465_v31 = vmax.f32 %v2817_v18, %v3422_v27  ;;  %v2819_v8 = vpop.f32.mrb[35].mxu0  ;;  %v3424_v9 = vpop.f32.mrb[35].mxu1  ;;  %3569 = vmatmul.mubr.f32.gmra.mrb[46].mxu0 %v3463_v58  ;;  %3669 = vmatmul.mubr.f32.gmra.mrb[46].mxu1 %v3463_v58  ;;  %v2237_v18 = vadd.f32 %v9858_v14, %v2223_v4  ;;  %v9890_v27 = vpack.c.bf16 %v3722_v40, %v3720_v17  ;;  %v9958_v60 = vmax.f32 %v2239_v33, 0.0  ;;  %v6233_v40 = vld [vmem:[%s11053_s5 + $0x180] sm:$0xff] }
 0x2e7   : > { %v3466_v53 = vmax.f32 %v2819_v8, %v3424_v9  ;;  %7385 = vmatpush1.bf16.msra.mxu1 %v7284_v50  ;;  %7285 = vmatpush1.bf16.msra.mxu0 %v7284_v50  ;;  %v2236_v50 = vadd.f32 %v9858_v14, %v2222_v41  ;;  %v2238_v8 = vadd.f32 %v9858_v14, %v2224_v12 }
 0x2e8   : > { %7387 = vmatprep.subr.bf16.mxu1 %v7286_v3  ;;  %7287 = vmatprep.subr.bf16.mxu0 %v7286_v3  ;;  %v3715_v3 = vld [vmem:[%s11053_s5] sm:$0xff]  ;;  %v9910_v4 = vmax.f32 %v2237_v18, 0.0  ;;  %v6235_v18 = vld [vmem:[%s11053_s5 + $0x190] sm:$0xff] }
 0x2e9   : > { %v2823_v39 = vpop.f32.mrb[36].mxu0  ;;  %v3428_v46 = vpop.f32.mrb[36].mxu1  ;;  %6182 = vmatprep.mubr.msk.f32.mxu0 %vm1978_vm1, %v3466_v53  ;;  %6189 = vmatprep.mubr.msk.f32.mxu1 %vm1978_vm1, %v3466_v53  ;;  %v9881_v41 = vpack.c.bf16 %v3717_v21, %v3715_v3  ;;  %v9884_v36 = vmax.f32 %v2236_v50, 0.0  ;;  %v3723_v53 = vld [vmem:[%s11053_s5 + $0x40] sm:$0xff]  ;;  %v9937_v12 = vmax.f32 %v2238_v8, 0.0 }
 0x2ea   : > { %v3467_v49 = vmax.f32 %v2823_v39, %v3428_v46  ;;  %v2825_v54 = vpop.f32.mrb[37].mxu0  ;;  %v3430_v55 = vpop.f32.mrb[37].mxu1  ;;  %3574 = vmatmul.mubr.f32.gmra.mrb[48].mxu0 %v3465_v31  ;;  %3674 = vmatmul.mubr.f32.gmra.mrb[48].mxu1 %v3465_v31  ;;  %v3724_v31 = vld [vmem:[%s11053_s5 + $0x48] sm:$0xff]  ;;  %v3727_v39 = vld [vmem:[%s11053_s5 + $0x60] sm:$0xff]  ;;  %v3729_v46 = vld [vmem:[%s11053_s5 + $0x70] sm:$0xff] }
 0x2eb   : > { %v3468_v62 = vmax.f32 %v2825_v54, %v3430_v55  ;;  %7389 = vmatpush1.bf16.msra.mxu1 %v7288_v28  ;;  %7289 = vmatpush1.bf16.msra.mxu0 %v7288_v28  ;;  %v9917_v9 = vpack.c.bf16 %v3726_v25, %v3724_v31  ;;  %v3725_v28 = vld [vmem:[%s11053_s5 + $0x50] sm:$0xff]  ;;  %v9956_v7 = vpack.c.bf16 %v3729_v46, %v3727_v39  ;;  %v3731_v54 = vld [vmem:[%s11053_s5 + $0x80] sm:$0xff]  ;;  %v6238_v31 = vld [vmem:[%s11053_s5 + $0x1a8] sm:$0xff] }
 0x2ec   : > { %7391 = vmatprep.subr.bf16.mxu1 %v7290_v32  ;;  %7291 = vmatprep.subr.bf16.mxu0 %v7290_v32  ;;  %v3728_v32 = vld [vmem:[%s11053_s5 + $0x68] sm:$0xff]  ;;  %v9935_v24 = vpack.c.bf16 %v3725_v28, %v3723_v53  ;;  %v3733_v55 = vld [vmem:[%s11053_s5 + $0x90] sm:$0xff]  ;;  %v6240_v25 = vld [vmem:[%s11053_s5 + $0x1b8] sm:$0xff]  ;;  %v10049_v28 = vpack.c.bf16 %v6235_v18, %v6233_v40 }
 0x2ed   : > { %v2829_v11 = vpop.f32.mrb[38].mxu0  ;;  %v3434_v22 = vpop.f32.mrb[38].mxu1  ;;  %6183 = vmatprep.mubr.msk.f32.mxu0 %vm1978_vm1, %v3468_v62  ;;  %6190 = vmatprep.mubr.msk.f32.mxu1 %vm1978_vm1, %v3468_v62  ;;  %v9944_v38 = vpack.c.bf16 %v3730_v29, %v3728_v32  ;;  %v9988_v62 = vpack.c.bf16 %v3733_v55, %v3731_v54  ;;  %v6237_v46 = vld [vmem:[%s11053_s5 + $0x1a0] sm:$0xff] }
 0x2ee   : > { %v3469_v35 = vmax.f32 %v2829_v11, %v3434_v22  ;;  %v2831_v48 = vpop.f32.mrb[39].mxu0  ;;  %v3436_v56 = vpop.f32.mrb[39].mxu1  ;;  %3579 = vmatmul.mubr.f32.gmra.mrb[50].mxu0 %v3467_v49  ;;  %3679 = vmatmul.mubr.f32.gmra.mrb[50].mxu1 %v3467_v49  ;;  %v9969_v49 = vmax.f32 %v2240_v5, 0.0  ;;  %v6232_v11 = vld [vmem:[%s11053_s5 + $0x178] sm:$0xff]  ;;  %v10008_v22 = vld [vmem:[%s11053_s5 + $0xa0] sm:$0xf]  ;;  %v10063_v5 = vpack.c.bf16 %v6240_v25, %v6238_v31 }
 0x2ef   : > { %v3470_v13 = vmax.f32 %v2831_v48, %v3436_v56  ;;  %7393 = vmatpush1.bf16.msra.mxu1 %v7292_v63  ;;  %7293 = vmatpush1.bf16.msra.mxu0 %v7292_v63  ;;  %v9995_v63 = vld [vmem:[%s11053_s5 + $0xa8] sm:$0xf] }
 0x2f0   : > { %6316 = vmatprep.subr.msk.mxu1 %vm3776_vm2, %v6214_v10  ;;  %6215 = vmatprep.subr.msk.mxu0 %vm3776_vm2, %v6214_v10  ;;  %v6230_v10 = vld [vmem:[%s11053_s5 + $0x168] sm:$0xff] }
 0x2f1   : > { %v2835_v57 = vpop.f32.mrb[40].mxu0  ;;  %v3440_v51 = vpop.f32.mrb[40].mxu1  ;;  %6184 = vmatprep.mubr.msk.f32.mxu0 %vm1978_vm1, %v3470_v13  ;;  %6191 = vmatprep.mubr.msk.f32.mxu1 %vm1978_vm1, %v3470_v13  ;;  %v10010_v23 = vpack.c.bf16 %v6232_v11, %v6230_v10 }
 0x2f2   : > { %v3471_v47 = vmax.f32 %v2835_v57, %v3440_v51  ;;  %v2837_v58 = vpop.f32.mrb[41].mxu0  ;;  %v3442_v52 = vpop.f32.mrb[41].mxu1  ;;  %3584 = vmatmul.mubr.f32.gmra.mrb[52].mxu0 %v3469_v35  ;;  %3684 = vmatmul.mubr.f32.gmra.mrb[52].mxu1 %v3469_v35  ;;  %v6234_v51 = vld [vmem:[%s11053_s5 + $0x188] sm:$0xff] }
 0x2f3   : > { %v3472_v15 = vmax.f32 %v2837_v58, %v3442_v52  ;;  %6317 = vmatpush1.msk.msra.mxu1 %vm3776_vm2, %v6213_v16  ;;  %6216 = vmatpush1.msk.msra.mxu0 %vm3776_vm2, %v6213_v16  ;;  %v6229_v16 = vld [vmem:[%s11053_s5 + $0x160] sm:$0xff] }
 0x2f4   : > { %7395 = vmatprep.subr.bf16.mxu1 %v7294_v42  ;;  %7295 = vmatprep.subr.bf16.mxu0 %v7294_v42  ;;  %v6231_v42 = vld [vmem:[%s11053_s5 + $0x170] sm:$0xff] }
 0x2f5   : > { %6185 = vmatprep.mubr.msk.f32.mxu0 %vm1978_vm1, %v3472_v15  ;;  %6192 = vmatprep.mubr.msk.f32.mxu1 %vm1978_vm1, %v3472_v15  ;;  %v10028_v15 = vpack.c.bf16 %v6231_v42, %v6229_v16  ;;  %v6248_v42 = vld [vmem:[%s11053_s5 + $0x1f8] sm:$0xff] }
 0x2f6   : > { %3589 = vmatmul.mubr.f32.gmra.mrb[54].mxu0 %v3471_v47  ;;  %3689 = vmatmul.mubr.f32.gmra.mrb[54].mxu1 %v3471_v47  ;;  %v6236_v47 = vld [vmem:[%s11053_s5 + $0x198] sm:$0xff] }
 0x2f7   : > { %4469 = vmatprep.mubr.f32.mxu1 %v11166_v1  ;;  %3847 = vmatprep.mubr.f32.mxu0 %v11166_v1  ;;  %v10036_v45 = vpack.c.bf16 %v6236_v47, %v6234_v51 }
 0x2fa   : > { %6318 = vmatmul.mubr.msk.f32.vlgmr.msra.gmra.mrb[56].mxu1 %vm3760_vm3, %v9884_v36 }
 0x2fb   : > { %4475 = vmatprep.mubr.f32.mxu1 %v11166_v1  ;;  %7397 = vmatpush1.bf16.msra.mxu1 %v9881_v41 }
 0x2fc   : > { %7399 = vmatprep.subr.bf16.mxu1 %v9890_v27 }
 0x2fe   : > { %6319 = vmatmul.mubr.msk.f32.gmra.mrb[58].mxu1 %vm3760_vm3, %v9910_v4 }
 0x2ff   : > { %4481 = vmatprep.mubr.f32.mxu1 %v11166_v1  ;;  %7401 = vmatpush1.bf16.msra.mxu1 %v9908_v43 }
 0x300   : > { %7403 = vmatprep.subr.bf16.mxu1 %v9917_v9 }
 0x302   : > { %6320 = vmatmul.mubr.msk.f32.gmra.mrb[60].mxu1 %vm3760_vm3, %v9937_v12 }
 0x303   : > { %4487 = vmatprep.mubr.f32.mxu1 %v11166_v1  ;;  %7405 = vmatpush1.bf16.msra.mxu1 %v9935_v24 }
 0x304   : > { %7407 = vmatprep.subr.bf16.mxu1 %v9944_v38 }
 0x306   : > { %6321 = vmatmul.mubr.msk.f32.gmra.mrb[62].mxu1 %vm3760_vm3, %v9958_v60 }
 0x307   : > { %4493 = vmatprep.mubr.f32.mxu1 %v11166_v1  ;;  %7409 = vmatpush1.bf16.msra.mxu1 %v9956_v7 }
 0x308   : > { %7411 = vmatprep.subr.bf16.mxu1 %v9980_v20 }
 0x30a   : > { %6322 = vmatmul.mubr.msk.f32.gmra.mrb[64].mxu1 %vm3760_vm3, %v9969_v49 }
 0x30b   : > { %4564 = vmatprep.mubr.f32.mxu1 %v11166_v1  ;;  %7413 = vmatpush1.bf16.msra.mxu1 %v9988_v62 }
 0x30c   : > { %6323 = vmatprep.subr.msk.mxu1 %vm3776_vm2, %v9995_v63 }
 0x30f   : > { %6324 = vmatpush1.msk.msra.mxu1 %vm3776_vm2, %v10008_v22 }
 0x310   : > { %7415 = vmatprep.subr.bf16.mxu1 %v10010_v23 }
 0x3b1   : > { %v3560_v34 = vpop.f32.mrb[42].mxu0  ;;  %v3660_v35 = vpop.f32.mrb[42].mxu1 }
 0x3b2   : > { %v3694_v48 = vmax.f32 %v3560_v34, %v3660_v35  ;;  %v3562_v56 = vpop.f32.mrb[43].mxu0  ;;  %v3662_v13 = vpop.f32.mrb[43].mxu1 }
 0x3b3   : > { %v6241_v56 = vld [vmem:[%s11053_s5 + $0x1c0] sm:$0xff] }
 0x3b4   : > { %v3701_v57 = vadd.f32 %v9858_v14, %v3694_v48 }
 0x3b5   : > { %v3565_v58 = vpop.f32.mrb[44].mxu0  ;;  %v3665_v52 = vpop.f32.mrb[44].mxu1 }
 0x3b6   : > { %v3708_v50 = vmax.f32 %v3701_v57, 0.0  ;;  %v3695_v3 = vmax.f32 %v3565_v58, %v3665_v52  ;;  %v3567_v21 = vpop.f32.mrb[45].mxu0  ;;  %v3667_v17 = vpop.f32.mrb[45].mxu1 }
 0x3b7   : > { %v6245_v21 = vld [vmem:[%s11053_s5 + $0x1e0] sm:$0xff] }
 0x3b8   : > { %v3702_v6 = vadd.f32 %v9858_v14, %v3695_v3  ;;  %6217 = vmatmul.mubr.msk.f32.vlgmr.msra.gmra.mrb[56].mxu0 %vm3760_vm3, %v3708_v50  ;;  %6325 = vmatmul.mubr.msk.f32.vlgmr.msra.gmra.mrb[56].mxu1 %vm3760_vm3, %v3708_v50 }
 0x3b9   : > { %7297 = vmatpush1.bf16.msra.mxu0 %v9881_v41  ;;  %7417 = vmatpush1.bf16.msra.mxu1 %v10028_v15  ;;  %v3570_v8 = vpop.f32.mrb[46].mxu0  ;;  %v3670_v53 = vpop.f32.mrb[46].mxu1  ;;  %v6239_v41 = vld [vmem:[%s11053_s5 + $0x1b0] sm:$0xff] }
 0x3ba   : > { %v10051_v32 = vmax.f32 %v3702_v6, 0.0  ;;  %v3696_v29 = vmax.f32 %v3570_v8, %v3670_v53  ;;  %v3572_v33 = vpop.f32.mrb[47].mxu0  ;;  %v3672_v39 = vpop.f32.mrb[47].mxu1  ;;  %3853 = vmatprep.mubr.f32.mxu0 %v11166_v1  ;;  %7299 = vmatprep.subr.bf16.mxu0 %v9890_v27  ;;  %v6242_v27 = vld [vmem:[%s11053_s5 + $0x1c8] sm:$0xff]  ;;  %v10078_v10 = vpack.c.bf16 %v6239_v41, %v6237_v46 }
 0x3bb   : > { %4570 = vmatprep.mubr.f32.mxu1 %v11166_v1  ;;  %7419 = vmatprep.subr.bf16.mxu1 %v10036_v45  ;;  %v10092_v13 = vpack.c.bf16 %v6244_v37, %v6242_v27  ;;  %v6261_v33 = vld [vmem:[%s11053_s5 + $0x228] sm:$0xff]  ;;  %v6260_v39 = vld [vmem:[%s11053_s5 + $0x220] sm:$0xff] }
 0x3bc   : > { %v3703_v61 = vadd.f32 %v9858_v14, %v3696_v29  ;;  %6218 = vmatmul.mubr.msk.f32.gmra.mrb[58].mxu0 %vm3760_vm3, %v10051_v32  ;;  %6326 = vmatmul.mubr.msk.f32.gmra.mrb[58].mxu1 %vm3760_vm3, %v10051_v32  ;;  %v2235_v29 = vadd.f32 %v9858_v14, %v2221_v44  ;;  %v6258_v44 = vld [vmem:[%s11053_s5 + $0x210] sm:$0xff] }
 0x3bd   : > { %7301 = vmatpush1.bf16.msra.mxu0 %v9908_v43  ;;  %7421 = vmatpush1.bf16.msra.mxu1 %v10049_v28  ;;  %v3575_v54 = vpop.f32.mrb[48].mxu0  ;;  %v3675_v55 = vpop.f32.mrb[48].mxu1  ;;  %v6243_v43 = vld [vmem:[%s11053_s5 + $0x1d0] sm:$0xff] }
 0x3be   : > { %v10080_v11 = vmax.f32 %v3703_v61, 0.0  ;;  %v3697_v34 = vmax.f32 %v3575_v54, %v3675_v55  ;;  %v3577_v35 = vpop.f32.mrb[49].mxu0  ;;  %v3677_v48 = vpop.f32.mrb[49].mxu1  ;;  %3859 = vmatprep.mubr.f32.mxu0 %v11166_v1  ;;  %7303 = vmatprep.subr.bf16.mxu0 %v9917_v9  ;;  %v6246_v9 = vld [vmem:[%s11053_s5 + $0x1e8] sm:$0xff]  ;;  %v10107_v47 = vpack.c.bf16 %v6243_v43, %v6241_v56  ;;  %v2242_v37 = vmax.f32 %v2235_v29, 0.0  ;;  %v6267_v56 = vld [vmem:[%s11053_s5 + $0x258] sm:$0xff] }
 0x3bf   : > { %4576 = vmatprep.mubr.f32.mxu1 %v11166_v1  ;;  %7423 = vmatprep.subr.bf16.mxu1 %v10063_v5  ;;  %v10121_v17 = vpack.c.bf16 %v6248_v42, %v6246_v9  ;;  %v10190_v54 = vpack.c.bf16 %v6260_v39, %v6258_v44  ;;  %v6265_v55 = vld [vmem:[%s11053_s5 + $0x248] sm:$0xff]  ;;  %v6264_v35 = vld [vmem:[%s11053_s5 + $0x240] sm:$0xff]  ;;  %v6271_v42 = vld [vmem:[%s11053_s5 + $0x278] sm:$0xff] }
 0x3c0   : > { %v3704_v16 = vadd.f32 %v9858_v14, %v3697_v34  ;;  %6219 = vmatmul.mubr.msk.f32.gmra.mrb[60].mxu0 %vm3760_vm3, %v10080_v11  ;;  %6327 = vmatmul.mubr.msk.f32.gmra.mrb[60].mxu1 %vm3760_vm3, %v10080_v11  ;;  %v6262_v34 = vld [vmem:[%s11053_s5 + $0x230] sm:$0xff]  ;;  %v6268_v43 = vld [vmem:[%s11053_s5 + $0x260] sm:$0xff]  ;;  %v6294_v29 = vld [vmem:[%s11053_s5 + $0x2f8] sm:$0xff] }
 0x3c1   : > { %7305 = vmatpush1.bf16.msra.mxu0 %v9935_v24  ;;  %7425 = vmatpush1.bf16.msra.mxu1 %v10078_v10  ;;  %v3580_v57 = vpop.f32.mrb[50].mxu0  ;;  %v3680_v51 = vpop.f32.mrb[50].mxu1  ;;  %v6247_v24 = vld [vmem:[%s11053_s5 + $0x1f0] sm:$0xff]  ;;  %v10217_v48 = vpack.c.bf16 %v6264_v35, %v6262_v34 }
 0x3c2   : > { %v10109_v58 = vmax.f32 %v3704_v16, 0.0  ;;  %v3698_v52 = vmax.f32 %v3580_v57, %v3680_v51  ;;  %v3582_v50 = vpop.f32.mrb[51].mxu0  ;;  %v3682_v3 = vpop.f32.mrb[51].mxu1  ;;  %3865 = vmatprep.mubr.f32.mxu0 %v11166_v1  ;;  %7307 = vmatprep.subr.bf16.mxu0 %v9944_v38  ;;  %v10134_v6 = vpack.c.bf16 %v6247_v24, %v6245_v21  ;;  %v6272_v57 = vld [vmem:[%s11053_s5 + $0x280] sm:$0xff]  ;;  %v6301_v34 = vld [vmem:[%s11053_s5 + $0x330] sm:$0xff] }
 0x3c3   : > { %4582 = vmatprep.mubr.f32.mxu1 %v11166_v1  ;;  %7427 = vmatprep.subr.bf16.mxu1 %v10092_v13  ;;  %v6275_v50 = vld [vmem:[%s11053_s5 + $0x298] sm:$0xff]  ;;  %v6276_v21 = vld [vmem:[%s11053_s5 + $0x2a0] sm:$0xff] }
 0x3c4   : > { %v3705_v40 = vadd.f32 %v9858_v14, %v3698_v52  ;;  %6220 = vmatmul.mubr.msk.f32.gmra.mrb[62].mxu0 %vm3760_vm3, %v10109_v58  ;;  %6328 = vmatmul.mubr.msk.f32.gmra.mrb[62].mxu1 %vm3760_vm3, %v10109_v58 }
 0x3c5   : > { %7309 = vmatpush1.bf16.msra.mxu0 %v9956_v7  ;;  %7429 = vmatpush1.bf16.msra.mxu1 %v10107_v47  ;;  %v10130_v38 = vpop.f32.mrb[52].mxu0  ;;  %v10132_v18 = vpop.f32.mrb[52].mxu1  ;;  %v10147_v7 = vld [vmem:[%s11053_s5 + $0x208] sm:$0xf] }
 0x3c6   : > { %v10136_v31 = vmax.f32 %v3705_v40, 0.0  ;;  %v3699_v25 = vmax.f32 %v10130_v38, %v10132_v18  ;;  %v3587_v8 = vpop.f32.mrb[53].mxu0  ;;  %v3687_v53 = vpop.f32.mrb[53].mxu1  ;;  %3871 = vmatprep.mubr.f32.mxu0 %v11166_v1  ;;  %7311 = vmatprep.subr.bf16.mxu0 %v9980_v20  ;;  %v6259_v20 = vld [vmem:[%s11053_s5 + $0x218] sm:$0xff] }
 0x3c7   : > { %4588 = vmatprep.mubr.f32.mxu1 %v11166_v1  ;;  %7431 = vmatprep.subr.bf16.mxu1 %v10121_v17  ;;  %v10188_v27 = vpack.c.bf16 %v6261_v33, %v6259_v20  ;;  %v6290_v18 = vld [vmem:[%s11053_s5 + $0x2d8] sm:$0xff]  ;;  %v6291_v20 = vld [vmem:[%s11053_s5 + $0x2e0] sm:$0xff]  ;;  %v6293_v33 = vld [vmem:[%s11053_s5 + $0x2f0] sm:$0xff] }
 0x3c8   : > { %6221 = vmatmul.mubr.msk.f32.gmra.mrb[64].mxu0 %vm3760_vm3, %v10136_v31  ;;  %6329 = vmatmul.mubr.msk.f32.gmra.mrb[64].mxu1 %vm3760_vm3, %v10136_v31  ;;  %v3706_v3 = vadd.f32 %v9858_v14, %v3699_v25  ;;  %v6289_v25 = vld [vmem:[%s11053_s5 + $0x2d0] sm:$0xff]  ;;  %v10371_v39 = vpack.c.bf16 %v6293_v33, %v6291_v20  ;;  %v5060_v20 = vld [vmem:[%s11055_s7 + $0x58] sm:$0xff] }
 0x3c9   : > { %7313 = vmatpush1.bf16.msra.mxu0 %v9988_v62  ;;  %7433 = vmatpush1.bf16.msra.mxu1 %v10134_v6  ;;  %v10165_v59 = vpop.f32.mrb[54].mxu0  ;;  %v10167_v0 = vpop.f32.mrb[54].mxu1  ;;  %v10184_v62 = vld [vmem:[%s11053_s5 + $0x200] sm:$0xf] }
 0x3ca   : > { %v3700_v46 = vmax.f32 %v10165_v59, %v10167_v0  ;;  %v3592_v41 = vpop.f32.mrb[55].mxu0  ;;  %v3692_v61 = vpop.f32.mrb[55].mxu1  ;;  %6222 = vmatprep.subr.msk.mxu0 %vm3776_vm2, %v9995_v63  ;;  %6330 = vmatprep.subr.msk.mxu1 %vm3776_vm2, %v10147_v7  ;;  %v6263_v63 = vld [vmem:[%s11053_s5 + $0x238] sm:$0xff]  ;;  %v10301_v38 = vmax.f32 %v3706_v3, 0.0  ;;  %v4925_v0 = vld [vmem:[%s11054_s6 + $0x10] sm:$0xff] }
 0x3cb   : > { %3963 = vmatprep.mubr.f32.mxu0 %v11166_v1  ;;  %4659 = vmatprep.mubr.f32.mxu1 %v11166_v1  ;;  %v6296_v41 = vld [vmem:[%s11053_s5 + $0x308] sm:$0xff]  ;;  %v6295_v61 = vld [vmem:[%s11053_s5 + $0x300] sm:$0xff] }
 0x3cd   : > { %6223 = vmatpush1.msk.msra.mxu0 %vm3776_vm2, %v10008_v22  ;;  %6331 = vmatpush1.msk.msra.mxu1 %vm3776_vm2, %v10184_v62  ;;  %v10213_v22 = vpack.c.bf16 %v6265_v55, %v6263_v63  ;;  %v6302_v63 = vld [vmem:[%s11053_s5 + $0x338] sm:$0xff]  ;;  %v6299_v55 = vld [vmem:[%s11053_s5 + $0x320] sm:$0xff] }
 0x3ce   : > { %6224 = vmatmul.mubr.msk.f32.vlgmr.msra.gmra.mrb[56].mxu0 %vm3760_vm3, %v2242_v37  ;;  %7315 = vmatprep.subr.bf16.mxu0 %v10010_v23  ;;  %v6269_v23 = vld [vmem:[%s11053_s5 + $0x268] sm:$0xff] }
 0x3cf   : > { %6332 = vmatmul.mubr.msk.f32.vlgmr.msra.gmra.mrb[56].mxu1 %vm3760_vm3, %v10051_v32  ;;  %7435 = vmatprep.subr.bf16.mxu1 %v10188_v27  ;;  %v10239_v16 = vpack.c.bf16 %v6269_v23, %v6267_v56  ;;  %v6306_v56 = vld [vmem:[%s11053_s5 + $0x358] sm:$0xff]  ;;  %v10435_v23 = vadd.f32 %v9858_v14, %v2227_v26 }
 0x3d0   : > { %7317 = vmatpush1.bf16.msra.mxu0 %v10028_v15  ;;  %7437 = vmatpush1.bf16.msra.mxu1 %v10190_v54  ;;  %v6266_v15 = vld [vmem:[%s11053_s5 + $0x250] sm:$0xff] }
 0x3d1   : > { %3969 = vmatprep.mubr.f32.mxu0 %v11166_v1  ;;  %4665 = vmatprep.mubr.f32.mxu1 %v11166_v1  ;;  %v10243_v9 = vpack.c.bf16 %v6268_v43, %v6266_v15  ;;  %v6303_v15 = vld [vmem:[%s11053_s5 + $0x340] sm:$0xff]  ;;  %v6305_v43 = vld [vmem:[%s11053_s5 + $0x350] sm:$0xff]  ;;  %v2248_v26 = vmax.f32 %v10435_v23, 0.0  ;;  %v5066_v23 = vld [vmem:[%s11055_s7 + $0x88] sm:$0xff] }
 0x3d2   : > { %6225 = vmatmul.mubr.msk.f32.gmra.mrb[58].mxu0 %vm3760_vm3, %v9884_v36  ;;  %7319 = vmatprep.subr.bf16.mxu0 %v10036_v45  ;;  %v6273_v45 = vld [vmem:[%s11053_s5 + $0x288] sm:$0xff]  ;;  %v10453_v30 = vpack.c.bf16 %v6305_v43, %v6303_v15  ;;  %v4941_v43 = vld [vmem:[%s11054_s6 + $0x90] sm:$0xff] }
 0x3d3   : > { %6333 = vmatmul.mubr.msk.f32.gmra.mrb[58].mxu1 %vm3760_vm3, %v10080_v11  ;;  %7439 = vmatprep.subr.bf16.mxu1 %v10213_v22  ;;  %v10265_v51 = vpack.c.bf16 %v6273_v45, %v6271_v42  ;;  %v5049_v42 = vld [vmem:[%s11055_s7] sm:$0xff]  ;;  %v5050_v45 = vld [vmem:[%s11055_s7 + $0x8] sm:$0xff] }
 0x3d4   : > { %7321 = vmatpush1.bf16.msra.mxu0 %v10049_v28  ;;  %7441 = vmatpush1.bf16.msra.mxu1 %v10217_v48  ;;  %v6270_v28 = vld [vmem:[%s11053_s5 + $0x270] sm:$0xff] }
 0x3d5   : > { %3975 = vmatprep.mubr.f32.mxu0 %v11166_v1  ;;  %4671 = vmatprep.mubr.f32.mxu1 %v11166_v1  ;;  %v10269_v52 = vpack.c.bf16 %v6272_v57, %v6270_v28  ;;  %v7505_v28 = vpack.c.bf16 %v5050_v45, %v5049_v42  ;;  %v5051_v57 = vld [vmem:[%s11055_s7 + $0x10] sm:$0xff] }
 0x3d6   : > { %6226 = vmatmul.mubr.msk.f32.gmra.mrb[60].mxu0 %vm3760_vm3, %v9910_v4  ;;  %7323 = vmatprep.subr.bf16.mxu0 %v10063_v5  ;;  %v6277_v5 = vld [vmem:[%s11053_s5 + $0x2a8] sm:$0xff] }
 0x3d7   : > { %6334 = vmatmul.mubr.msk.f32.gmra.mrb[60].mxu1 %vm3760_vm3, %v10109_v58  ;;  %7443 = vmatprep.subr.bf16.mxu1 %v10239_v16  ;;  %v10295_v24 = vpack.c.bf16 %v6277_v5, %v6275_v50  ;;  %v5054_v50 = vld [vmem:[%s11055_s7 + $0x28] sm:$0xff]  ;;  %v3707_v5 = vadd.f32 %v9858_v14, %v3700_v46  ;;  %v4923_v14 = vld [vmem:[%s11054_s6] sm:$0xff]  ;;  %v4926_v46 = vld [vmem:[%s11054_s6 + $0x18] sm:$0xff] }
 0x3d8   : > { %7325 = vmatpush1.bf16.msra.mxu0 %v10078_v10  ;;  %7445 = vmatpush1.bf16.msra.mxu1 %v10243_v9  ;;  %v6274_v10 = vld [vmem:[%s11053_s5 + $0x290] sm:$0xff]  ;;  %v7478_v3 = vpack.c.bf16 %v4926_v46, %v4925_v0 }
 0x3d9   : > { %3981 = vmatprep.mubr.f32.mxu0 %v11166_v1  ;;  %4677 = vmatprep.mubr.f32.mxu1 %v11166_v1  ;;  %v10299_v40 = vpack.c.bf16 %v6276_v21, %v6274_v10  ;;  %v4927_v10 = vld [vmem:[%s11054_s6 + $0x20] sm:$0xff]  ;;  %v4928_v21 = vld [vmem:[%s11054_s6 + $0x28] sm:$0xff] }
 0x3da   : > { %6227 = vmatmul.mubr.msk.f32.gmra.mrb[62].mxu0 %vm3760_vm3, %v9937_v12  ;;  %7327 = vmatprep.subr.bf16.mxu0 %v10092_v13  ;;  %v10311_v13 = vld [vmem:[%s11053_s5 + $0x2b8] sm:$0xf] }
 0x3db   : > { %6335 = vmatmul.mubr.msk.f32.gmra.mrb[62].mxu1 %vm3760_vm3, %v10136_v31  ;;  %7447 = vmatprep.subr.bf16.mxu1 %v10265_v51 }
 0x3dc   : > { %7329 = vmatpush1.bf16.msra.mxu0 %v10107_v47  ;;  %7449 = vmatpush1.bf16.msra.mxu1 %v10269_v52  ;;  %v6288_v47 = vld [vmem:[%s11053_s5 + $0x2c8] sm:$0xff] }
 0x3dd   : > { %3987 = vmatprep.mubr.f32.mxu0 %v11166_v1  ;;  %4683 = vmatprep.mubr.f32.mxu1 %v11166_v1  ;;  %v10341_v8 = vpack.c.bf16 %v6290_v18, %v6288_v47  ;;  %v4932_v47 = vld [vmem:[%s11054_s6 + $0x48] sm:$0xff]  ;;  %v5057_v18 = vld [vmem:[%s11055_s7 + $0x40] sm:$0xff] }
 0x3de   : > { %6228 = vmatmul.mubr.msk.f32.gmra.mrb[64].mxu0 %vm3760_vm3, %v9958_v60  ;;  %7331 = vmatprep.subr.bf16.mxu0 %v10121_v17  ;;  %v6287_v17 = vld [vmem:[%s11053_s5 + $0x2c0] sm:$0xff] }
 0x3df   : > { %6336 = vmatmul.mubr.msk.f32.gmra.mrb[64].mxu1 %vm3760_vm3, %v10301_v38  ;;  %7451 = vmatprep.subr.bf16.mxu1 %v10295_v24  ;;  %v10343_v53 = vpack.c.bf16 %v6289_v25, %v6287_v17  ;;  %v5058_v25 = vld [vmem:[%s11055_s7 + $0x48] sm:$0xff] }
 0x3e0   : > { %7333 = vmatpush1.bf16.msra.mxu0 %v10134_v6  ;;  %7453 = vmatpush1.bf16.msra.mxu1 %v10299_v40  ;;  %v10337_v6 = vld [vmem:[%s11053_s5 + $0x2b0] sm:$0xf] }
 0x3e1   : > { %6251 = vmatprep.subr.msk.mxu0 %vm3776_vm2, %v10147_v7  ;;  %6337 = vmatprep.subr.msk.mxu1 %vm3776_vm2, %v10311_v13  ;;  %v6292_v7 = vld [vmem:[%s11053_s5 + $0x2e8] sm:$0xff] }
 0x3e2   : > { %4090 = vmatprep.mubr.f32.mxu0 %v11166_v1  ;;  %4764 = vmatprep.mubr.f32.mxu1 %v11166_v1  ;;  %v10367_v44 = vpack.c.bf16 %v6294_v29, %v6292_v7  ;;  %v5059_v7 = vld [vmem:[%s11055_s7 + $0x50] sm:$0xff] }
 0x3e3   : > { %v7520_v33 = vpack.c.bf16 %v5060_v20, %v5059_v7 }
 0x3e4   : > { %6252 = vmatpush1.msk.msra.mxu0 %vm3776_vm2, %v10184_v62  ;;  %6338 = vmatpush1.msk.msra.mxu1 %vm3776_vm2, %v10337_v6  ;;  %v6297_v62 = vld [vmem:[%s11053_s5 + $0x310] sm:$0xff] }
 0x3e5   : > { %6253 = vmatmul.mubr.msk.f32.vlgmr.msra.gmra.mrb[56].mxu0 %vm3760_vm3, %v9884_v36  ;;  %7335 = vmatprep.subr.bf16.mxu0 %v10188_v27  ;;  %v6298_v36 = vld [vmem:[%s11053_s5 + $0x318] sm:$0xff]  ;;  %v10397_v37 = vpack.c.bf16 %v6297_v62, %v6295_v61  ;;  %v5062_v61 = vld [vmem:[%s11055_s7 + $0x68] sm:$0xff] }
 0x3e6   : > { %6339 = vmatmul.mubr.msk.f32.vlgmr.msra.gmra.mrb[56].mxu1 %vm3760_vm3, %v9910_v4  ;;  %7455 = vmatprep.subr.bf16.mxu1 %v10341_v8  ;;  %v10393_v27 = vpack.c.bf16 %v6298_v36, %v6296_v41  ;;  %v5061_v41 = vld [vmem:[%s11055_s7 + $0x60] sm:$0xff] }
 0x3e7   : > { %7337 = vmatpush1.bf16.msra.mxu0 %v10190_v54  ;;  %7457 = vmatpush1.bf16.msra.mxu1 %v10343_v53  ;;  %v6300_v54 = vld [vmem:[%s11053_s5 + $0x328] sm:$0xff]  ;;  %v7523_v62 = vpack.c.bf16 %v5062_v61, %v5061_v41  ;;  %v5187_v41 = vld [vmem:[%s11057_s9 + $0x30] sm:$0xff] }
 0x3e8   : > { %4096 = vmatprep.mubr.f32.mxu0 %v11166_v1  ;;  %4770 = vmatprep.mubr.f32.mxu1 %v11166_v1  ;;  %v10419_v35 = vpack.c.bf16 %v6302_v63, %v6300_v54  ;;  %v5063_v54 = vld [vmem:[%s11055_s7 + $0x70] sm:$0xff] }
 0x3e9   : > { %6254 = vmatmul.mubr.msk.f32.gmra.mrb[58].mxu0 %vm3760_vm3, %v9910_v4  ;;  %7339 = vmatprep.subr.bf16.mxu0 %v10213_v22  ;;  %v10423_v22 = vpack.c.bf16 %v6301_v34, %v6299_v55  ;;  %v5064_v55 = vld [vmem:[%s11055_s7 + $0x78] sm:$0xff] }
 0x3ea   : > { %6340 = vmatmul.mubr.msk.f32.gmra.mrb[58].mxu1 %vm3760_vm3, %v9937_v12  ;;  %7459 = vmatprep.subr.bf16.mxu1 %v10367_v44  ;;  %v7526_v34 = vpack.c.bf16 %v5064_v55, %v5063_v54 }
 0x3eb   : > { %7341 = vmatpush1.bf16.msra.mxu0 %v10217_v48  ;;  %7461 = vmatpush1.bf16.msra.mxu1 %v10371_v39  ;;  %v6304_v48 = vld [vmem:[%s11053_s5 + $0x348] sm:$0xff] }
 0x3ec   : > { %4102 = vmatprep.mubr.f32.mxu0 %v11166_v1  ;;  %4776 = vmatprep.mubr.f32.mxu1 %v11166_v1  ;;  %v7370_v2 = vpack.c.bf16 %v6306_v56, %v6304_v48  ;;  %v5065_v48 = vld [vmem:[%s11055_s7 + $0x80] sm:$0xff] }
 0x3ed   : > { %6255 = vmatmul.mubr.msk.f32.gmra.mrb[60].mxu0 %vm3760_vm3, %v9937_v12  ;;  %7343 = vmatprep.subr.bf16.mxu0 %v10239_v16  ;;  %v6308_v16 = vld [vmem:[%s11053_s5 + $0x368] sm:$0xf]  ;;  %v7529_v15 = vpack.c.bf16 %v5066_v23, %v5065_v48  ;;  %v5189_v23 = vld [vmem:[%s11057_s9 + $0x40] sm:$0xff] }
 0x3ee   : > { %6341 = vmatmul.mubr.msk.f32.gmra.mrb[60].mxu1 %vm3760_vm3, %v9958_v60  ;;  %7463 = vmatprep.subr.bf16.mxu1 %v10393_v27  ;;  %v6369_v48 = vld [vmem:[%s11057_s9 + $0x88] sm:$0xff] }
 0x3ef   : > { %7345 = vmatpush1.bf16.msra.mxu0 %v10243_v9  ;;  %7465 = vmatpush1.bf16.msra.mxu1 %v10397_v37  ;;  %v6307_v9 = vld [vmem:[%s11053_s5 + $0x360] sm:$0xf] }
 0x3f0   : > { %4108 = vmatprep.mubr.f32.mxu0 %v11166_v1  ;;  %4782 = vmatprep.mubr.f32.mxu1 %v11166_v1 }
 0x3f1   : > { %6256 = vmatmul.mubr.msk.f32.gmra.mrb[62].mxu0 %vm3760_vm3, %v9958_v60  ;;  %7347 = vmatprep.subr.bf16.mxu0 %v10265_v51  ;;  %v5052_v51 = vld [vmem:[%s11055_s7 + $0x18] sm:$0xff] }
 0x3f2   : > { %6342 = vmatmul.mubr.msk.f32.gmra.mrb[62].mxu1 %vm3760_vm3, %v9969_v49  ;;  %7467 = vmatprep.subr.bf16.mxu1 %v10419_v35 }
 0x3f3   : > { %7349 = vmatpush1.bf16.msra.mxu0 %v10269_v52  ;;  %7469 = vmatpush1.bf16.msra.mxu1 %v10423_v22  ;;  %v5053_v52 = vld [vmem:[%s11055_s7 + $0x20] sm:$0xff] }
 0x3f4   : > { %4114 = vmatprep.mubr.f32.mxu0 %v11166_v1  ;;  %4788 = vmatprep.mubr.f32.mxu1 %v11166_v1 }
 0x3f5   : > { %6257 = vmatmul.mubr.msk.f32.gmra.mrb[64].mxu0 %vm3760_vm3, %v9969_v49  ;;  %7351 = vmatprep.subr.bf16.mxu0 %v10295_v24  ;;  %v5055_v24 = vld [vmem:[%s11055_s7 + $0x30] sm:$0xff] }
 0x3f6   : > { %6343 = vmatmul.mubr.msk.f32.gmra.mrb[64].mxu1 %vm3760_vm3, %v2248_v26  ;;  %7471 = vmatprep.subr.bf16.mxu1 %v7370_v2 }
 0x3f7   : > { %7353 = vmatpush1.bf16.msra.mxu0 %v10299_v40  ;;  %7473 = vmatpush1.bf16.msra.mxu1 %v10453_v30 }
 0x3f8   : > { %6280 = vmatprep.subr.msk.mxu0 %vm3776_vm2, %v10311_v13  ;;  %6344 = vmatprep.subr.msk.mxu1 %vm3776_vm2, %v6308_v16  ;;  %v4931_v13 = vld [vmem:[%s11054_s6 + $0x40] sm:$0xff] }
 0x3f9   : > { %4227 = vmatprep.mubr.f32.mxu0 %v11166_v1  ;;  %4872 = vmatprep.mubr.f32.mxu1 %v11166_v1  ;;  %v7487_v17 = vpack.c.bf16 %v4932_v47, %v4931_v13 }
 0x3fb   : > { %6281 = vmatpush1.msk.msra.mxu0 %vm3776_vm2, %v10337_v6  ;;  %6345 = vmatpush1.msk.msra.mxu1 %vm3776_vm2, %v6307_v9  ;;  %v7517_v6 = vpack.c.bf16 %v5058_v25, %v5057_v18  ;;  %v5185_v25 = vld [vmem:[%s11057_s9 + $0x20] sm:$0xff] }
 0x3fc   : > { %6282 = vmatmul.mubr.msk.f32.vlgmr.msra.gmra.mrb[56].mxu0 %vm3760_vm3, %v10051_v32  ;;  %7355 = vmatprep.subr.bf16.mxu0 %v10341_v8  ;;  %v7508_v32 = vpack.c.bf16 %v5052_v51, %v5051_v57  ;;  %v4933_v8 = vld [vmem:[%s11054_s6 + $0x50] sm:$0xff] }
 0x3fd   : > { %6346 = vmatmul.mubr.msk.f32.vlgmr.msra.gmra.mrb[56].mxu1 %vm3760_vm3, %v10080_v11  ;;  %7357 = vmatpush1.bf16.msra.mxu0 %v10343_v53  ;;  %v4934_v53 = vld [vmem:[%s11054_s6 + $0x58] sm:$0xff] }
 0x3fe   : > { %4233 = vmatprep.mubr.f32.mxu0 %v11166_v1  ;;  %4878 = vmatprep.mubr.f32.mxu1 %v11166_v1  ;;  %v7490_v29 = vpack.c.bf16 %v4934_v53, %v4933_v8  ;;  %v6366_v8 = vld [vmem:[%s11057_s9 + $0x70] sm:$0xff]  ;;  %v6367_v53 = vld [vmem:[%s11057_s9 + $0x78] sm:$0xff] }
 0x3ff   : > { %7359 = vmatprep.subr.bf16.mxu0 %v10367_v44  ;;  %7504 = vmatprep.subr.bf16.mxu1 %v11184_v19  ;;  %v4935_v44 = vld [vmem:[%s11054_s6 + $0x60] sm:$0xff] }
 0x400   : > { %6283 = vmatmul.mubr.msk.f32.gmra.mrb[58].mxu0 %vm3760_vm3, %v10080_v11  ;;  %7506 = vmatpush1.bf16.msra.mxu1 %v7505_v28  ;;  %v7511_v11 = vpack.c.bf16 %v5054_v50, %v5053_v52 }
 0x401   : > { %6347 = vmatmul.mubr.msk.f32.gmra.mrb[58].mxu1 %vm3760_vm3, %v10109_v58  ;;  %7361 = vmatpush1.bf16.msra.mxu0 %v10371_v39  ;;  %v4936_v39 = vld [vmem:[%s11054_s6 + $0x68] sm:$0xff] }
 0x402   : > { %4239 = vmatprep.mubr.f32.mxu0 %v11166_v1  ;;  %4884 = vmatprep.mubr.f32.mxu1 %v11166_v1  ;;  %v7493_v36 = vpack.c.bf16 %v4936_v39, %v4935_v44  ;;  %v7541_v39 = vpack.c.bf16 %v6367_v53, %v6366_v8 }
 0x403   : > { %7363 = vmatprep.subr.bf16.mxu0 %v10393_v27  ;;  %7507 = vmatprep.subr.bf16.mxu1 %v11184_v19  ;;  %v4937_v27 = vld [vmem:[%s11054_s6 + $0x70] sm:$0xff] }
 0x404   : > { %6284 = vmatmul.mubr.msk.f32.gmra.mrb[60].mxu0 %vm3760_vm3, %v10109_v58  ;;  %7509 = vmatpush1.bf16.msra.mxu1 %v7508_v32  ;;  %v3714_v58 = vmax.f32 %v3707_v5, 0.0 }
 0x405   : > { %6348 = vmatmul.mubr.msk.f32.gmra.mrb[60].mxu1 %vm3760_vm3, %v10136_v31  ;;  %7365 = vmatpush1.bf16.msra.mxu0 %v10397_v37  ;;  %v4938_v37 = vld [vmem:[%s11054_s6 + $0x78] sm:$0xff] }
 0x406   : > { %4245 = vmatprep.mubr.f32.mxu0 %v11166_v1  ;;  %4890 = vmatprep.mubr.f32.mxu1 %v11166_v1  ;;  %v7496_v63 = vpack.c.bf16 %v4938_v37, %v4937_v27 }
 0x407   : > { %7367 = vmatprep.subr.bf16.mxu0 %v10419_v35  ;;  %7510 = vmatprep.subr.bf16.mxu1 %v11184_v19  ;;  %v4939_v35 = vld [vmem:[%s11054_s6 + $0x80] sm:$0xff] }
 0x408   : > { %6285 = vmatmul.mubr.msk.f32.gmra.mrb[62].mxu0 %vm3760_vm3, %v10136_v31  ;;  %7512 = vmatpush1.bf16.msra.mxu1 %v7511_v11  ;;  %v4924_v31 = vld [vmem:[%s11054_s6 + $0x8] sm:$0xff] }
 0x409   : > { %6349 = vmatmul.mubr.msk.f32.gmra.mrb[62].mxu1 %vm3760_vm3, %v10301_v38  ;;  %7369 = vmatpush1.bf16.msra.mxu0 %v10423_v22  ;;  %v7475_v59 = vpack.c.bf16 %v4924_v31, %v4923_v14  ;;  %v4940_v22 = vld [vmem:[%s11054_s6 + $0x88] sm:$0xff]  ;;  %v6362_v31 = vld [vmem:[%s11057_s9 + $0x50] sm:$0xff] }
 0x40a   : > { %4251 = vmatprep.mubr.f32.mxu0 %v11166_v1  ;;  %4896 = vmatprep.mubr.f32.mxu1 %v11166_v1  ;;  %v7499_v56 = vpack.c.bf16 %v4940_v22, %v4939_v35  ;;  %v5182_v14 = vld [vmem:[%s11057_s9 + $0x8] sm:$0xff]  ;;  %v6368_v22 = vld [vmem:[%s11057_s9 + $0x80] sm:$0xff] }
 0x40b   : > { %7371 = vmatprep.subr.bf16.mxu0 %v7370_v2  ;;  %7513 = vmatprep.subr.bf16.mxu1 %v11184_v19  ;;  %v4942_v2 = vld [vmem:[%s11054_s6 + $0x98] sm:$0xff] }
 0x40c   : > { %6286 = vmatmul.mubr.msk.f32.gmra.mrb[64].mxu0 %vm3760_vm3, %v10301_v38 }
 0x40d   : > { %6350 = vmatmul.mubr.msk.f32.gmra.mrb[64].mxu1 %vm3760_vm3, %v3714_v58  ;;  %7373 = vmatpush1.bf16.msra.mxu0 %v10453_v30  ;;  %v5067_v30 = vld [vmem:[%s11055_s7 + $0x90] sm:$0xff]  ;;  %v5181_v58 = vld [vmem:[%s11057_s9] sm:$0xff] }
 0x40e   : > { %6309 = vmatprep.subr.msk.mxu0 %vm3776_vm2, %v6308_v16  ;;  %4364 = vmatprep.mubr.f32.mxu0 %v11166_v1  ;;  %v5068_v16 = vld [vmem:[%s11055_s7 + $0x98] sm:$0xff] }
 0x411   : > { %6310 = vmatpush1.msk.msra.mxu0 %vm3776_vm2, %v6307_v9  ;;  %v7532_v9 = vpack.c.bf16 %v5068_v16, %v5067_v30  ;;  %v6371_v30 = vld [vmem:[%s11057_s9 + $0x98] sm:$0xff] }
 0x412   : > { %6311 = vmatmul.mubr.msk.f32.vlgmr.msra.gmra.mrb[56].mxu0 %vm3760_vm3, %v9910_v4  ;;  %7474 = vmatprep.subr.bf16.mxu0 %v11184_v19  ;;  %v7481_v4 = vpack.c.bf16 %v4928_v21, %v4927_v10  ;;  %v7550_v21 = vpack.c.bf16 %v5182_v14, %v5181_v58  ;;  %v6374_v58 = vld [vmem:[%s11057_s9 + $0xa0] sm:$0xff] }
 0x413   : > { %4370 = vmatprep.mubr.f32.mxu0 %v11166_v1  ;;  %7476 = vmatpush1.bf16.msra.mxu0 %v7475_v59  ;;  %v6363_v59 = vld [vmem:[%s11057_s9 + $0x58] sm:$0xff] }
 0x414   : > { %7477 = vmatprep.subr.bf16.mxu0 %v11184_v19 }
 0x416   : > { %6312 = vmatmul.mubr.msk.f32.gmra.mrb[58].mxu0 %vm3760_vm3, %v9937_v12  ;;  %v4929_v12 = vld [vmem:[%s11054_s6 + $0x30] sm:$0xff] }
 0x417   : > { %4376 = vmatprep.mubr.f32.mxu0 %v11166_v1  ;;  %7479 = vmatpush1.bf16.msra.mxu0 %v7478_v3 }
 0x418   : > { %7480 = vmatprep.subr.bf16.mxu0 %v11184_v19 }
 0x41a   : > { %6313 = vmatmul.mubr.msk.f32.gmra.mrb[60].mxu0 %vm3760_vm3, %v9958_v60  ;;  %v4930_v60 = vld [vmem:[%s11054_s6 + $0x38] sm:$0xff] }
 0x41b   : > { %4382 = vmatprep.mubr.f32.mxu0 %v11166_v1  ;;  %7482 = vmatpush1.bf16.msra.mxu0 %v7481_v4  ;;  %v7484_v40 = vpack.c.bf16 %v4930_v60, %v4929_v12  ;;  %v7535_v4 = vpack.c.bf16 %v6363_v59, %v6362_v31  ;;  %v5183_v12 = vld [vmem:[%s11057_s9 + $0x10] sm:$0xff]  ;;  %v5184_v60 = vld [vmem:[%s11057_s9 + $0x18] sm:$0xff] }
 0x41c   : > { %7483 = vmatprep.subr.bf16.mxu0 %v11184_v19  ;;  %v7553_v18 = vpack.c.bf16 %v5184_v60, %v5183_v12 }
 0x41e   : > { %6314 = vmatmul.mubr.msk.f32.gmra.mrb[62].mxu0 %vm3760_vm3, %v9969_v49  ;;  %v5056_v49 = vld [vmem:[%s11055_s7 + $0x38] sm:$0xff] }
 0x41f   : > { %4388 = vmatprep.mubr.f32.mxu0 %v11166_v1  ;;  %v7514_v38 = vpack.c.bf16 %v5056_v49, %v5055_v24  ;;  %7485 = vmatpush1.bf16.msra.mxu0 %v7484_v40  ;;  %v6364_v24 = vld [vmem:[%s11057_s9 + $0x60] sm:$0xff]  ;;  %v6365_v40 = vld [vmem:[%s11057_s9 + $0x68] sm:$0xff] }
 0x420   : > { %7486 = vmatprep.subr.bf16.mxu0 %v11184_v19 }
 0x421   : > { %7515 = vmatpush1.bf16.msra.mxu1 %v7514_v38 }
 0x422   : > { %6315 = vmatmul.mubr.msk.f32.gmra.mrb[64].mxu0 %vm3760_vm3, %v2248_v26  ;;  %7516 = vmatprep.subr.bf16.mxu1 %v11184_v19  ;;  %v7502_v26 = vpack.c.bf16 %v4942_v2, %v4941_v43  ;;  %v6370_v2 = vld [vmem:[%s11057_s9 + $0x90] sm:$0xff] }
 0x423   : > { %7488 = vmatpush1.bf16.msra.mxu0 %v7487_v17  ;;  %v7538_v17 = vpack.c.bf16 %v6365_v40, %v6364_v24  ;;  %v6376_v40 = vld [vmem:[%s11057_s9 + $0xb0] sm:$0xff] }
 0x424   : > { %7489 = vmatprep.subr.bf16.mxu0 %v11184_v19 }
 0x425   : > { %7518 = vmatpush1.bf16.msra.mxu1 %v7517_v6  ;;  %v5186_v6 = vld [vmem:[%s11057_s9 + $0x28] sm:$0xff] }
 0x426   : > { %7519 = vmatprep.subr.bf16.mxu1 %v11184_v19  ;;  %v7556_v44 = vpack.c.bf16 %v5186_v6, %v5185_v25  ;;  %v6390_v25 = vld [vmem:[%s11057_s9 + $0x118] sm:$0xff] }
 0x427   : > { %7491 = vmatpush1.bf16.msra.mxu0 %v7490_v29 }
 0x428   : > { %7492 = vmatprep.subr.bf16.mxu0 %v11184_v19 }
 0x429   : > { %7521 = vmatpush1.bf16.msra.mxu1 %v7520_v33 }
 0x42a   : > { %7522 = vmatprep.subr.bf16.mxu1 %v11184_v19 }
 0x42b   : > { %7494 = vmatpush1.bf16.msra.mxu0 %v7493_v36  ;;  %v5188_v36 = vld [vmem:[%s11057_s9 + $0x38] sm:$0xff] }
 0x42c   : > { %7495 = vmatprep.subr.bf16.mxu0 %v11184_v19  ;;  %v7559_v54 = vpack.c.bf16 %v5188_v36, %v5187_v41  ;;  %v6391_v41 = vld [vmem:[%s11057_s9 + $0x120] sm:$0xff]  ;;  %v6392_v36 = vld [vmem:[%s11057_s9 + $0x128] sm:$0xff] }
 0x42d   : > { %7524 = vmatpush1.bf16.msra.mxu1 %v7523_v62 }
 0x42e   : > { %7525 = vmatprep.subr.bf16.mxu1 %v11184_v19 }
 0x42f   : > { %7497 = vmatpush1.bf16.msra.mxu0 %v7496_v63 }
 0x430   : > { %7498 = vmatprep.subr.bf16.mxu0 %v11184_v19 }
 0x431   : > { %7527 = vmatpush1.bf16.msra.mxu1 %v7526_v34 }
 0x432   : > { %7528 = vmatprep.subr.bf16.mxu1 %v11184_v19 }
 0x433   : > { %7500 = vmatpush1.bf16.msra.mxu0 %v7499_v56  ;;  %v7544_v56 = vpack.c.bf16 %v6369_v48, %v6368_v22  ;;  %v6393_v22 = vld [vmem:[%s11057_s9 + $0x130] sm:$0xff]  ;;  %v6394_v48 = vld [vmem:[%s11057_s9 + $0x138] sm:$0xff] }
 0x434   : > { %7501 = vmatprep.subr.bf16.mxu0 %v11184_v19 }
 0x435   : > { %7530 = vmatpush1.bf16.msra.mxu1 %v7529_v15  ;;  %v5190_v15 = vld [vmem:[%s11057_s9 + $0x48] sm:$0xff] }
 0x436   : > { %7531 = vmatprep.subr.bf16.mxu1 %v11184_v19  ;;  %v7562_v43 = vpack.c.bf16 %v5190_v15, %v5189_v23  ;;  %v7592_v23 = vpack.c.bf16 %v6394_v48, %v6393_v22 }
 0x437   : > { %7503 = vmatpush1.bf16.msra.mxu0 %v7502_v26  ;;  %v7547_v26 = vpack.c.bf16 %v6371_v30, %v6370_v2  ;;  %v6383_v2 = vld [vmem:[%s11057_s9 + $0xe8] sm:$0xff] }
 0x438   : > { %7534 = vmatprep.subr.bf16.mxu0 %v11184_v19 }
 0x439   : > { %7533 = vmatpush1.bf16.msra.mxu1 %v7532_v9 }
 0x43a   : > { %7549 = vmatprep.subr.bf16.mxu1 %v11184_v19 }
 0x4d0   : > { %v4874_v42 = vpop.f32.mrb[56].mxu1 }
 0x4d1   : > { %v4876_v45 = vpop.f32.mrb[57].mxu1 }
 0x4d4   : > { %v4880_v28 = vpop.f32.mrb[58].mxu1 }
 0x4d5   : > { %v4882_v57 = vpop.f32.mrb[59].mxu1 }
 0x4d8   : > { %v4886_v51 = vpop.f32.mrb[60].mxu1 }
 0x4d9   : > { %v4888_v32 = vpop.f32.mrb[61].mxu1 }
 0x4dc   : > { %v4892_v52 = vpop.f32.mrb[62].mxu1 }
 0x4dd   : > { %v4894_v50 = vpop.f32.mrb[63].mxu1 }
 0x4e0   : > { %v10680_v11 = vpop.f32.mrb[64].mxu1 }
 0x4e1   : > { %v10682_v5 = vpop.f32.mrb[65].mxu1 }
 0x4e5   : > { %v4366_v0 = vpop.f32.mrb[56].mxu0 }
 0x4e6   : > { %v4913_v46 = vmax.f32 %v4366_v0, %v4874_v42  ;;  %v4368_v3 = vpop.f32.mrb[57].mxu0  ;;  %v10773_v42 = vld [vmem:[%s11056_s8] ss:$0 sm:$0xff] }
 0x4e7   : > { %v4914_v10 = vmax.f32 %v4368_v3, %v4876_v45  ;;  %v6387_v3 = vld [vmem:[%s11057_s9 + $0x100] sm:$0xff] }
 0x4e9   : > { %v4372_v49 = vpop.f32.mrb[58].mxu0  ;;  %6351 = vmatprep.mubr.msk.f32.mxu0 %vm4943_vm4, %v4914_v10  ;;  %6356 = vmatprep.mubr.msk.f32.mxu1 %vm4943_vm4, %v4914_v10  ;;  %v6388_v10 = vld [vmem:[%s11057_s9 + $0x108] sm:$0xff] }
 0x4ea   : > { %v4915_v38 = vmax.f32 %v4372_v49, %v4880_v28  ;;  %v4374_v13 = vpop.f32.mrb[59].mxu0  ;;  %5024 = vmatmul.mubr.f32.vlgmr.msra.gmra.mrb[66].mxu0 %v4913_v46  ;;  %5134 = vmatmul.mubr.f32.vlgmr.msra.gmra.mrb[66].mxu1 %v4913_v46  ;;  %v6375_v46 = vld [vmem:[%s11057_s9 + $0xa8] sm:$0xff]  ;;  %v7583_v24 = vpack.c.bf16 %v6388_v10, %v6387_v3 }
 0x4eb   : > { %v4916_v47 = vmax.f32 %v4374_v13, %v4882_v57  ;;  %7551 = vmatpush3.bf16.msra.mxu1 %v7550_v21  ;;  %7536 = vmatpush3.bf16.msra.mxu0 %v7535_v4  ;;  %v7565_v60 = vpack.c.bf16 %v6375_v46, %v6374_v58  ;;  %v6402_v58 = vld [vmem:[%s11057_s9 + $0x170] sm:$0xff] }
 0x4ec   : > { %7552 = vmatprep.subr.bf16.mxu1 %v11184_v19  ;;  %7537 = vmatprep.subr.bf16.mxu0 %v11184_v19 }
 0x4ed   : > { %v4378_v7 = vpop.f32.mrb[60].mxu0  ;;  %6352 = vmatprep.mubr.msk.f32.mxu0 %vm4943_vm4, %v4916_v47  ;;  %6357 = vmatprep.mubr.msk.f32.mxu1 %vm4943_vm4, %v4916_v47 }
 0x4ee   : > { %v4917_v29 = vmax.f32 %v4378_v7, %v4886_v51  ;;  %v4380_v20 = vpop.f32.mrb[61].mxu0  ;;  %5029 = vmatmul.mubr.f32.gmra.mrb[68].mxu0 %v4915_v38  ;;  %5139 = vmatmul.mubr.f32.gmra.mrb[68].mxu1 %v4915_v38  ;;  %v6385_v51 = vld [vmem:[%s11057_s9 + $0xf0] sm:$0xff] }
 0x4ef   : > { %v4918_v33 = vmax.f32 %v4380_v20, %v4888_v32  ;;  %7554 = vmatpush3.bf16.msra.mxu1 %v7553_v18  ;;  %7539 = vmatpush3.bf16.msra.mxu0 %v7538_v17  ;;  %v6386_v32 = vld [vmem:[%s11057_s9 + $0xf8] sm:$0xff]  ;;  %v6389_v17 = vld [vmem:[%s11057_s9 + $0x110] sm:$0xff] }
 0x4f0   : > { %7555 = vmatprep.subr.bf16.mxu1 %v11184_v19  ;;  %7540 = vmatprep.subr.bf16.mxu0 %v11184_v19  ;;  %v6377_v18 = vld [vmem:[%s11057_s9 + $0xb8] sm:$0xff]  ;;  %v7586_v7 = vpack.c.bf16 %v6390_v25, %v6389_v17  ;;  %v5621_v17 = vld [vmem:[%s11059_s11 + $0x40] sm:$0xff]  ;;  %v5622_v25 = vld [vmem:[%s11059_s11 + $0x48] sm:$0xff] }
 0x4f1   : > { %v4384_v61 = vpop.f32.mrb[62].mxu0  ;;  %6353 = vmatprep.mubr.msk.f32.mxu0 %vm4943_vm4, %v4918_v33  ;;  %6358 = vmatprep.mubr.msk.f32.mxu1 %vm4943_vm4, %v4918_v33  ;;  %v7568_v53 = vpack.c.bf16 %v6377_v18, %v6376_v40  ;;  %v5617_v40 = vld [vmem:[%s11059_s11 + $0x20] sm:$0xff] }
 0x4f2   : > { %v4919_v62 = vmax.f32 %v4384_v61, %v4892_v52  ;;  %v4386_v27 = vpop.f32.mrb[63].mxu0  ;;  %5034 = vmatmul.mubr.f32.gmra.mrb[70].mxu0 %v4917_v29  ;;  %5144 = vmatmul.mubr.f32.gmra.mrb[70].mxu1 %v4917_v29  ;;  %v6378_v29 = vld [vmem:[%s11057_s9 + $0xc0] sm:$0xff] }
 0x4f3   : > { %v4920_v37 = vmax.f32 %v4386_v27, %v4894_v50  ;;  %7557 = vmatpush3.bf16.msra.mxu1 %v7556_v44  ;;  %7542 = vmatpush3.bf16.msra.mxu0 %v7541_v39  ;;  %v6379_v39 = vld [vmem:[%s11057_s9 + $0xc8] sm:$0xff] }
 0x4f4   : > { %7558 = vmatprep.subr.bf16.mxu1 %v11184_v19  ;;  %7543 = vmatprep.subr.bf16.mxu0 %v11184_v19  ;;  %v7571_v27 = vpack.c.bf16 %v6379_v39, %v6378_v29  ;;  %v5625_v29 = vld [vmem:[%s11059_s11 + $0x60] sm:$0xff] }
 0x4f5   : > { %v4390_v63 = vpop.f32.mrb[64].mxu0  ;;  %6354 = vmatprep.mubr.msk.f32.mxu0 %vm4943_vm4, %v4920_v37  ;;  %6359 = vmatprep.mubr.msk.f32.mxu1 %vm4943_vm4, %v4920_v37  ;;  %v7589_v37 = vpack.c.bf16 %v6392_v36, %v6391_v41  ;;  %v5710_v39 = vld [vmem:[%s11061_s13] sm:$0xff]  ;;  %v5711_v41 = vld [vmem:[%s11061_s13 + $0x8] sm:$0xff]  ;;  %v5712_v36 = vld [vmem:[%s11061_s13 + $0x10] sm:$0xff] }
 0x4f6   : > { %v4921_v55 = vmax.f32 %v4390_v63, %v10680_v11  ;;  %v4392_v34 = vpop.f32.mrb[65].mxu0  ;;  %5039 = vmatmul.mubr.f32.gmra.mrb[72].mxu0 %v4919_v62  ;;  %5149 = vmatmul.mubr.f32.gmra.mrb[72].mxu1 %v4919_v62 }
 0x4f7   : > { %v4922_v35 = vmax.f32 %v4392_v34, %v10682_v5  ;;  %7560 = vmatpush3.bf16.msra.mxu1 %v7559_v54  ;;  %7545 = vmatpush3.bf16.msra.mxu0 %v7544_v56  ;;  %v7580_v5 = vpack.c.bf16 %v6386_v32, %v6385_v51  ;;  %v6380_v54 = vld [vmem:[%s11057_s9 + $0xd0] sm:$0xff]  ;;  %v6399_v32 = vld [vmem:[%s11057_s9 + $0x158] sm:$0xff] }
 0x4f8   : > { %7561 = vmatprep.subr.bf16.mxu1 %v11184_v19  ;;  %7546 = vmatprep.subr.bf16.mxu0 %v11184_v19  ;;  %v6398_v51 = vld [vmem:[%s11057_s9 + $0x150] sm:$0xff] }
 0x4f9   : > { %6355 = vmatprep.mubr.msk.f32.mxu0 %vm4943_vm4, %v4922_v35  ;;  %6360 = vmatprep.mubr.msk.f32.mxu1 %vm4943_vm4, %v4922_v35  ;;  %v6381_v35 = vld [vmem:[%s11057_s9 + $0xd8] sm:$0xff] }
 0x4fa   : > { %5044 = vmatmul.mubr.f32.gmra.mrb[74].mxu0 %v4921_v55  ;;  %5154 = vmatmul.mubr.f32.gmra.mrb[74].mxu1 %v4921_v55  ;;  %v7574_v56 = vpack.c.bf16 %v6381_v35, %v6380_v54  ;;  %v5715_v54 = vld [vmem:[%s11061_s13 + $0x28] sm:$0xff] }
 0x4fb   : > { %7563 = vmatpush3.bf16.msra.mxu1 %v7562_v43  ;;  %6544 = vmatprep.mubr.msk.f32.mxu1 %vm8076_vm5, %v11166_v1  ;;  %v6382_v43 = vld [vmem:[%s11057_s9 + $0xe0] sm:$0xff] }
 0x4fc   : > { %7579 = vmatprep.subr.bf16.mxu1 %v11184_v19  ;;  %6521 = vmatprep.mubr.msk.f32.mxu0 %vm8076_vm5, %v11166_v1  ;;  %v7577_v30 = vpack.c.bf16 %v6383_v2, %v6382_v43 }
 0x4fd   : > { %7548 = vmatpush3.bf16.msra.mxu0 %v7547_v26 }
 0x4fe   : > { %7564 = vmatprep.subr.bf16.mxu0 %v11184_v19 }
 0x5bd   : > { %v5025_v16 = vpop.f32.mrb[66].mxu0  ;;  %v5135_v9 = vpop.f32.mrb[66].mxu1 }
 0x5be   : > { %v5159_v45 = vmax.f32 %v5025_v16, %v5135_v9  ;;  %v5027_v28 = vpop.f32.mrb[67].mxu0  ;;  %v5137_v57 = vpop.f32.mrb[67].mxu1  ;;  %v6396_v9 = vld [vmem:[%s11057_s9 + $0x140] sm:$0xff] }
 0x5c0   : > { %v5171_v52 = vadd.f32 %v10773_v42, %v5159_v45  ;;  %v6397_v45 = vld [vmem:[%s11057_s9 + $0x148] sm:$0xff] }
 0x5c1   : > { %v5030_v50 = vpop.f32.mrb[68].mxu0  ;;  %v5140_v11 = vpop.f32.mrb[68].mxu1  ;;  %v7595_v28 = vpack.c.bf16 %v6397_v45, %v6396_v9 }
 0x5c2   : > { %v5176_v14 = vmax.f32 %v5171_v52, 0.0  ;;  %v5160_v31 = vmax.f32 %v5030_v50, %v5140_v11  ;;  %v5032_v59 = vpop.f32.mrb[69].mxu0  ;;  %v5142_v0 = vpop.f32.mrb[69].mxu1  ;;  %v7598_v52 = vpack.c.bf16 %v6399_v32, %v6398_v51  ;;  %v6400_v50 = vld [vmem:[%s11057_s9 + $0x160] sm:$0xff]  ;;  %v6401_v11 = vld [vmem:[%s11057_s9 + $0x168] sm:$0xff] }
 0x5c3   : > { %v6404_v59 = vld [vmem:[%s11057_s9 + $0x180] sm:$0xff]  ;;  %v6405_v0 = vld [vmem:[%s11057_s9 + $0x188] sm:$0xff] }
 0x5c4   : > { %v5172_v21 = vadd.f32 %v10773_v42, %v5160_v31  ;;  %6545 = vmatmul.mubr.msk.f32.vlgmr.msra.gmra.mrb[76].mxu1 %vm5202_vm6, %v5176_v14  ;;  %v6403_v14 = vld [vmem:[%s11057_s9 + $0x178] sm:$0xff]  ;;  %v7607_v46 = vpack.c.bf16 %v6405_v0, %v6404_v59 }
 0x5c5   : > { %7581 = vmatpush3.bf16.msra.mxu1 %v7580_v5  ;;  %v5035_v4 = vpop.f32.mrb[70].mxu0  ;;  %v5145_v12 = vpop.f32.mrb[70].mxu1  ;;  %6590 = vmatprep.mubr.msk.f32.mxu1 %vm8076_vm5, %v11166_v1  ;;  %v7601_v5 = vpack.c.bf16 %v6401_v11, %v6400_v50  ;;  %v7604_v31 = vpack.c.bf16 %v6403_v14, %v6402_v58  ;;  %v5719_v50 = vld [vmem:[%s11061_s13 + $0x48] sm:$0xff]  ;;  %v6408_v58 = vld [vmem:[%s11060_s12] ss:$0 sm:$0xff] }
 0x5c6   : > { %v5177_v49 = vmax.f32 %v5172_v21, 0.0  ;;  %v5161_v38 = vmax.f32 %v5035_v4, %v5145_v12  ;;  %v5037_v13 = vpop.f32.mrb[71].mxu0  ;;  %v5147_v47 = vpop.f32.mrb[71].mxu1  ;;  %7582 = vmatprep.subr.bf16.mxu1 %v11184_v19  ;;  %v5613_v21 = vld [vmem:[%s11059_s11] sm:$0xff]  ;;  %v5614_v4 = vld [vmem:[%s11059_s11 + $0x8] sm:$0xff]  ;;  %v5615_v12 = vld [vmem:[%s11059_s11 + $0x10] sm:$0xff] }
 0x5c7   : > { %v5619_v13 = vld [vmem:[%s11059_s11 + $0x30] sm:$0xff]  ;;  %v5620_v47 = vld [vmem:[%s11059_s11 + $0x38] sm:$0xff] }
 0x5c8   : > { %6522 = vmatmul.mubr.msk.f32.vlgmr.msra.gmra.mrb[76].mxu0 %vm5202_vm6, %v5177_v49  ;;  %v5173_v26 = vadd.f32 %v10773_v42, %v5161_v38  ;;  %v5618_v49 = vld [vmem:[%s11059_s11 + $0x28] sm:$0xff]  ;;  %v7619_v18 = vpack.c.bf16 %v5620_v47, %v5619_v13 }
 0x5c9   : > { %7566 = vmatpush3.bf16.msra.mxu0 %v7565_v60  ;;  %7584 = vmatpush3.bf16.msra.mxu1 %v7583_v24  ;;  %v5040_v6 = vpop.f32.mrb[72].mxu0  ;;  %v5150_v8 = vpop.f32.mrb[72].mxu1  ;;  %v5616_v60 = vld [vmem:[%s11059_s11 + $0x18] sm:$0xff]  ;;  %v7616_v38 = vpack.c.bf16 %v5618_v49, %v5617_v40 }
 0x5ca   : > { %v5162_v20 = vmax.f32 %v5040_v6, %v5150_v8  ;;  %v5042_v33 = vpop.f32.mrb[73].mxu0  ;;  %v5152_v44 = vpop.f32.mrb[73].mxu1  ;;  %7567 = vmatprep.subr.bf16.mxu0 %v11184_v19  ;;  %7585 = vmatprep.subr.bf16.mxu1 %v11184_v19  ;;  %v5178_v57 = vmax.f32 %v5173_v26, 0.0  ;;  %v7613_v24 = vpack.c.bf16 %v5616_v60, %v5615_v12  ;;  %v7622_v6 = vpack.c.bf16 %v5622_v25, %v5621_v17  ;;  %v5623_v8 = vld [vmem:[%s11059_s11 + $0x50] sm:$0xff] }
 0x5cb   : > { %6567 = vmatprep.mubr.msk.f32.mxu0 %vm8076_vm5, %v11166_v1  ;;  %v5627_v44 = vld [vmem:[%s11059_s11 + $0x70] sm:$0xff] }
 0x5cc   : > { %v5174_v15 = vadd.f32 %v10773_v42, %v5162_v20  ;;  %v5626_v20 = vld [vmem:[%s11059_s11 + $0x68] sm:$0xff] }
 0x5cd   : > { %7569 = vmatpush3.bf16.msra.mxu0 %v7568_v53  ;;  %7587 = vmatpush3.bf16.msra.mxu1 %v7586_v7  ;;  %v5045_v61 = vpop.f32.mrb[74].mxu0  ;;  %v5155_v62 = vpop.f32.mrb[74].mxu1  ;;  %v5624_v53 = vld [vmem:[%s11059_s11 + $0x58] sm:$0xff]  ;;  %v7628_v33 = vpack.c.bf16 %v5626_v20, %v5625_v29 }
 0x5ce   : > { %v5163_v63 = vmax.f32 %v5045_v61, %v5155_v62  ;;  %v5047_v55 = vpop.f32.mrb[75].mxu0  ;;  %v5157_v34 = vpop.f32.mrb[75].mxu1  ;;  %7570 = vmatprep.subr.bf16.mxu0 %v11184_v19  ;;  %7588 = vmatprep.subr.bf16.mxu1 %v11184_v19  ;;  %v5179_v16 = vmax.f32 %v5174_v15, 0.0  ;;  %v7625_v7 = vpack.c.bf16 %v5624_v53, %v5623_v8  ;;  %v7631_v61 = vpack.c.bf16 %v5711_v41, %v5710_v39  ;;  %v5713_v62 = vld [vmem:[%s11061_s13 + $0x18] sm:$0xff] }
 0x5cf   : > { %v5716_v55 = vld [vmem:[%s11061_s13 + $0x30] sm:$0xff]  ;;  %v5717_v34 = vld [vmem:[%s11061_s13 + $0x38] sm:$0xff] }
 0x5d0   : > { %v5175_v3 = vadd.f32 %v10773_v42, %v5163_v63  ;;  %v7610_v42 = vpack.c.bf16 %v5614_v4, %v5613_v21  ;;  %v7640_v35 = vpack.c.bf16 %v5717_v34, %v5716_v55 }
 0x5d1   : > { %7572 = vmatpush3.bf16.msra.mxu0 %v7571_v27  ;;  %7590 = vmatpush3.bf16.msra.mxu1 %v7589_v37  ;;  %v7634_v27 = vpack.c.bf16 %v5713_v62, %v5712_v36  ;;  %v5714_v37 = vld [vmem:[%s11061_s13 + $0x20] sm:$0xff] }
 0x5d2   : > { %7573 = vmatprep.subr.bf16.mxu0 %v11184_v19  ;;  %7591 = vmatprep.subr.bf16.mxu1 %v11184_v19  ;;  %v5180_v10 = vmax.f32 %v5175_v3, 0.0  ;;  %v7637_v63 = vpack.c.bf16 %v5715_v54, %v5714_v37 }
 0x5d5   : > { %7575 = vmatpush3.bf16.msra.mxu0 %v7574_v56  ;;  %7593 = vmatpush3.bf16.msra.mxu1 %v7592_v23 }
 0x5d6   : > { %7576 = vmatprep.subr.bf16.mxu0 %v11184_v19  ;;  %7609 = vmatprep.subr.bf16.mxu1 %v11184_v19 }
 0x5d8   : > { %6591 = vmatmul.mubr.msk.f32.vlgmr.msra.gmra.mrb[78].mxu1 %vm5202_vm6, %v5179_v16 }
 0x5d9   : > { %7578 = vmatpush3.bf16.msra.mxu0 %v7577_v30  ;;  %6646 = vmatprep.mubr.msk.f32.mxu1 %vm8076_vm5, %v11166_v1 }
 0x5da   : > { %7594 = vmatprep.subr.bf16.mxu0 %v11184_v19  ;;  %7611 = vmatpush3.bf16.msra.mxu1 %v7610_v42 }
 0x5db   : > { %7612 = vmatprep.subr.bf16.mxu1 %v11184_v19 }
 0x5dc   : > { %6568 = vmatmul.mubr.msk.f32.vlgmr.msra.gmra.mrb[78].mxu0 %vm5202_vm6, %v5178_v57 }
 0x5dd   : > { %7596 = vmatpush3.bf16.msra.mxu0 %v7595_v28  ;;  %6613 = vmatprep.mubr.msk.f32.mxu0 %vm8076_vm5, %v11166_v1  ;;  %v6407_v28 = vld [vmem:[%s11058_s10] ss:$0 sm:$0xff] }
 0x5de   : > { %7597 = vmatprep.subr.bf16.mxu0 %v11184_v19  ;;  %7614 = vmatpush3.bf16.msra.mxu1 %v7613_v24 }
 0x5df   : > { %7615 = vmatprep.subr.bf16.mxu1 %v11184_v19 }
 0x5e1   : > { %7599 = vmatpush3.bf16.msra.mxu0 %v7598_v52  ;;  %v5718_v52 = vld [vmem:[%s11061_s13 + $0x40] sm:$0xff] }
 0x5e2   : > { %7600 = vmatprep.subr.bf16.mxu0 %v11184_v19  ;;  %7617 = vmatpush3.bf16.msra.mxu1 %v7616_v38  ;;  %v7643_v11 = vpack.c.bf16 %v5719_v50, %v5718_v52 }
 0x5e3   : > { %7618 = vmatprep.subr.bf16.mxu1 %v11184_v19 }
 0x5e5   : > { %7602 = vmatpush3.bf16.msra.mxu0 %v7601_v5  ;;  %v5720_v5 = vld [vmem:[%s11061_s13 + $0x50] sm:$0xf] }
 0x5e6   : > { %7603 = vmatprep.subr.bf16.mxu0 %v11184_v19  ;;  %7620 = vmatpush3.bf16.msra.mxu1 %v7619_v18 }
 0x5e7   : > { %7621 = vmatprep.subr.bf16.mxu1 %v11184_v19 }
 0x5e9   : > { %7605 = vmatpush3.bf16.msra.mxu0 %v7604_v31 }
 0x5ea   : > { %7606 = vmatprep.subr.bf16.mxu0 %v11184_v19  ;;  %7623 = vmatpush3.bf16.msra.mxu1 %v7622_v6 }
 0x5eb   : > { %7624 = vmatprep.subr.bf16.mxu1 %v11184_v19 }
 0x5ed   : > { %7608 = vmatpush3.bf16.msra.mxu0 %v7607_v46 }
 0x5ee   : > { %7630 = vmatprep.subr.bf16.mxu0 %v11184_v19  ;;  %7626 = vmatpush3.bf16.msra.mxu1 %v7625_v7 }
 0x5ef   : > { %7627 = vmatprep.subr.bf16.mxu1 %v11184_v19 }
 0x5f0   : > { %6614 = vmatmul.mubr.msk.f32.vlgmr.msra.gmra.mrb[80].mxu0 %vm5202_vm6, %v5180_v10 }
 0x5f1   : > { %6671 = vmatprep.mubr.msk.f32.mxu0 %vm8076_vm5, %v11166_v1  ;;  %7632 = vmatpush3.bf16.msra.mxu0 %v7631_v61 }
 0x5f2   : > { %7629 = vmatpush3.bf16.msra.mxu1 %v7628_v33  ;;  %7633 = vmatprep.subr.bf16.mxu0 %v11184_v19 }
 0x5f3   : > { %6644 = vmatprep.subr.mxu1 %v11166_v1 }
 0x5f5   : > { %7635 = vmatpush3.bf16.msra.mxu0 %v7634_v27 }
 0x5f6   : > { %6645 = vmatpush3.msra.mxu1 %v5627_v44  ;;  %7636 = vmatprep.subr.bf16.mxu0 %v11184_v19 }
 0x5f9   : > { %7638 = vmatpush3.bf16.msra.mxu0 %v7637_v63 }
 0x5fa   : > { %7639 = vmatprep.subr.bf16.mxu0 %v11184_v19 }
 0x5fd   : > { %7641 = vmatpush3.bf16.msra.mxu0 %v7640_v35 }
 0x5fe   : > { %7642 = vmatprep.subr.bf16.mxu0 %v11184_v19 }
 0x601   : > { %7644 = vmatpush3.bf16.msra.mxu0 %v7643_v11 }
 0x602   : > { %6669 = vmatprep.subr.mxu0 %v11166_v1  ;;  %v6410_v1 = vld [vmem:[%s11062_s14] ss:$0 sm:$0xff] }
 0x605   : > { %6670 = vmatpush3.msk.msra.mxu0 %vm3776_vm2, %v5720_v5 }
 0x697   : > { %v5345_v22 = vpop.f32.mrb[76].mxu1 }
 0x698   : > { %v6546_v48 = vpop.f32.mrb[77].mxu1 }
 0x69b   : > { %v5272_v56 = vpop.f32.mrb[76].mxu0 }
 0x69c   : > { %v5346_v23 = vadd.f32 %v5345_v22, %v5272_v56  ;;  %v6523_v15 = vpop.f32.mrb[77].mxu0 }
 0x6ab   : > { %v5514_v43 = vpop.f32.mrb[78].mxu1 }
 0x6ac   : > { %v6592_v2 = vpop.f32.mrb[79].mxu1 }
 0x6af   : > { %v5429_v30 = vpop.f32.mrb[78].mxu0 }
 0x6b0   : > { %v5433_v26 = vadd.f32 %v5429_v30, %v5346_v23  ;;  %v6569_v16 = vpop.f32.mrb[79].mxu0 }
 0x6b2   : > { %v5518_v9 = vadd.f32 %v5514_v43, %v5433_v26 }
 0x6c3   : > { %v5599_v45 = vpop.f32.mrb[80].mxu0 }
 0x6c4   : > { %v5603_v57 = vadd.f32 %v5599_v45, %v5518_v9  ;;  %v6615_v51 = vpop.f32.mrb[81].mxu0 }
 0x6c6   : > { %v5611_v32 = vadd.f32 %v6407_v28, %v5603_v57 }
 0x6c8   : > { %v5612_v19 = vmax.f32 %v5611_v32, 0.0 }
 0x6ca   : > { %6647 = vmatmul.mubr.msk.f32.vlgmr.msra.gmra.mrb[80].mxu1 %vm5635_vm7, %v5612_v19 }
 0x79d   : > { %v5705_v14 = vpop.f32.mrb[80].mxu1 }
 0x79e   : > { %v5706_v31 = vadd.f32 %v6408_v58, %v5705_v14  ;;  %v6648_v59 = vpop.f32.mrb[81].mxu1 }
 0x7a0   : > { %v5709_v0 = vmax.f32 %v5706_v31, 0.0 }
 0x7a2   : > { %6672 = vmatmul.mubr.msk.f32.vlgmr.msra.gmra.mrb[82].mxu0 %vm3760_vm3, %v5709_v0 }
 0x875   : > { %v5800_v46 = vpop.f32.mrb[82].mxu0 }
 0x876   : > { %v5801_v3 = vadd.f32 %v6410_v1, %v5800_v46  ;;  %v6673_v10 = vpop.f32.mrb[83].mxu0 }
 0x878   : > { %5805 = vst.msk [vmem:[%s487_s16] sm:$0xff] %vm5804_vm8, %v5801_v3 }
 0x879   : > { %8023 = shalt.err (!%p8020_p3)
}
 0x87a   : > { %s8024_s27 = scalar_lea.hbm %s11006_s26, 128  ;;  %s8028_s20 = scalar_lea.hbm %s11063_s15, 256 }
 0x87b   : > { %p8025_p4 = scmp.ne.s32.totalorder %s11006_s26, %s8024_s27  ;;  %p8029_p9 = scmp.lt.u32.totalorder %s11006_s26, %s11063_s15 }
 0x87c   : > { %p8030_p10 = scmp.lt.u32.totalorder %s8028_s20, %s8024_s27  ;;  %p8032_p12 = scmp.lt.u32.totalorder %s8024_s27, %s11006_s26 }
 0x87d   : > { %p8026_p7 = pnand %p8025_p4, %p8196_p5 }
 0x87e   : > { %p8031_p11 = por %p8030_p10, %p8029_p9 }
 0x87f   : > { %p8027_p8 = pneg %p8026_p7 }
 0x880   : > { %p8033_p13 = por %p8032_p12, %p8031_p11 }
 0x882   : > { %p8034_p0 = pnand %p8033_p13, %p8027_p8 }
 0x884   : > { %8037 = shalt.err (!%p8034_p0)
}
 0x885   : > { %7949 = dma.vmem_to_hbm [thread:$0]  (%p8196_p5), %s11008_s17, 128, %s11006_s26, %s5807_s18  }
 0x886 PF: > { %s11250_s29 = sld [smem:[#allocation5_spill]]  ;;  %p7955_p1 = scmp.ge.s32.totalorder %s8072_s21, 2 }
 0x888   : > { %p7952_p2 = pnand %p7955_p1, %p8200_p6 }
 0x88c   : > { %s5832_s25 = sand.u32 1, %s11250_s29  }
 0x88d   : > { %s5833_s30 = scalar_lea.sflag [#allocation3], %s5832_s25 }
 0x88e   : > { %8055 = dma.done.wait (!%p7952_p2), %s5833_s30, 128  }
 0x88f   : > { %8057 = vsyncadd (!%p7952_p2), %s5833_s30, 4294967168  ;;  %s11252_s21 = sld [smem:[#allocation7_spill]]  ;;  %s11253_s27 = sld [smem:[#allocation6_spill]] }
 0x890   : > { %s11254_s20 = sld [smem:[#allocation8_spill]]  ;;  %s11255_s18 = smov %s8064_s19 }
 0x895   : > { %p25_p3 = scmp.ge.s32.totalorder %s11252_s21, 4   ;;  %s11256_s19 = smov %s11253_s27 }
 0x897   :  { %27 = sbr.rel (!%p25_p3) target bundleno = 3 (0x3), region = 130 }
 0x89e   :  { %5838 = vsyncpa [#allocation3], 1 }
 0x89f   :  { %5840 = vsyncpa [#allocation3 + $0x1], 1 }

</bundles_post_ra>
